<compile_context>
chip_gen: v5e
topology: v5e:2x2
jax: 0.10.0
libtpu: 0.0.40
codegen_flags: <defaults>
</compile_context>

<pallas_src>
import functools
import math

import numpy as np
import jax
import jax.numpy as jnp
from jax.experimental import pallas as pl
from jax.experimental.pallas import tpu as pltpu

# ----------------------------- configuration --------------------------------
BATCH = 2
STATE_DIM = 14
NUM_QUERIES = 8
HIDDEN = 32            # transformer.d_model
LATENT = 32            # fixed in the module
NUM_CAM = 2
IMG_C, IMG_H, IMG_W = 3, 16, 16
PATCH = 4              # backbone stand-in: 4x4 stride-4 conv
BB_CHANNELS = 8        # backbones[0].num_channels
EMB_R, EMB_C = 4, 8    # image_embedding_dim
TEXT_DIM = 384
MULTI_TASK = True      # -> additional_pos_embed has 3 entries

HG, WG = IMG_H // PATCH, IMG_W // PATCH
HW = HG * WG                               # tokens per camera
S_TOK = 2 + NUM_QUERIES                    # [cls | qpos | actions] tokens
LM = 3 + NUM_CAM * HW                      # decoder memory length
HEAD_DIM = STATE_DIM + EMB_R * EMB_C + 1   # 47
HEAD_PAD = 128                             # lane-dense heads output
LAT_PAD = 128                              # lane-dense mu|logvar output

# packed-constant row offsets (8-aligned sections inside the consts buffer)
OFF_CLS = 0
OFF_POS = 8
OFF_MEMPOS = OFF_POS + ((S_TOK + 7) // 8) * 8
CONST_ROWS = OFF_MEMPOS + ((LM + 7) // 8) * 8

# stacked-weight row indices
W_ENC_V, W_ENC_O, W_LAT_OUT, W_DEC_Q, W_DEC_K, W_DEC_V, W_DEC_O = range(7)      # (H, H)
W_ENC_QK, W_ENC_FF1, W_LAT_PROJ = range(3)                                      # (H, 2H)
W_JOINT, W_ACT, W_ROBOT = range(3)                                              # (14, H)
(B_JOINT, B_ACT, B_ROBOT, B_ENC_V, B_ENC_O, B_ENC_FF2, B_LAT_OUT, B_TEXT,
 B_DEC_Q, B_DEC_K, B_DEC_V, B_DEC_O, B_INPROJ) = range(13)                      # (H,)
B_ENC_QK, B_ENC_FF1, B_LAT_PROJ = range(3)                                      # (2H,)

_VMEM_LIMIT = 32 * 1024 * 1024


# ----------------------------- in-kernel math helpers -------------------------
def _batched_qk(q, k):
    """scores: (B, Lq, D) x (B, Lk, D) -> (B, Lq, Lk)  (both operands batched)."""
    return jax.lax.dot_general(q.astype(jnp.bfloat16), k.astype(jnp.bfloat16),
                               dimension_numbers=(((2,), (2,)), ((0,), (0,))),
                               preferred_element_type=jnp.float32)


def _batched_pv(p, v):
    """(B, Lq, Lk) x (B, Lk, D) -> (B, Lq, D)."""
    return jax.lax.dot_general(p.astype(jnp.bfloat16), v.astype(jnp.bfloat16),
                               dimension_numbers=(((2,), (1,)), ((0,), (0,))),
                               preferred_element_type=jnp.float32)


# ----------------------------- the single fused kernel ------------------------
def _foam_kernel(qpos_ref, actions_ref, is_pad_ref, task_ref, eps_ref, patches_ref,
                 conv_w_ref, conv_b_ref, pw_ref, wte_ref, w_s_ref, w_hh_ref, w_h2h_ref,
                 ff2_ref, w_heads_ref, qemb_ref, b_h_ref, b_2h_ref, b_heads_ref, consts_ref,
                 lat_ref, heads_ref, goal_ref, *, scale):
    f32 = jnp.float32
    H = HIDDEN
    bs, seq = actions_ref.shape[0], actions_ref.shape[1]
    S = 2 + seq
    num_cam = patches_ref.shape[0]
    hw = patches_ref.shape[1] // bs
    nq = qemb_ref.shape[0]

    # load the small packed parameter buffers once
    w_hh = w_hh_ref[...]          # (7, H, H)   bf16
    w_h2h = w_h2h_ref[...]        # (3, H, 2H)  bf16
    w_s = w_s_ref[...]            # (3, 14, H)  bf16
    b_h = b_h_ref[...]            # (13, H)     f32
    b_2h = b_2h_ref[...]          # (3, 2H)     f32
    consts = consts_ref[...]      # (CONST_ROWS, H) f32

    def bh(i):
        return b_h[i:i + 1]

    def b2(i):
        return b_2h[i:i + 1]

    def mm(x, w, b=None):
        """2D matmul, bf16 MXU inputs, f32 accumulation, f32 bias add."""
        out = jnp.dot(x.astype(jnp.bfloat16), w.astype(jnp.bfloat16),
                      preferred_element_type=f32)
        return out if b is None else out + b

    def softmax_attend(q, k, v, bias=None):
        s = _batched_qk(q, k) * scale
        if bias is not None:
            s = s + bias
        m = jnp.max(s, axis=-1, keepdims=True)
        p = jnp.exp(s - m)
        l = jnp.sum(p, axis=-1, keepdims=True)
        return _batched_pv(p, v) * pl.reciprocal(l, approx=True)

    # ---------------- CVAE encoder branch ----------------
    cls_row = consts[OFF_CLS:OFF_CLS + 1]                 # (1, H)
    pos_tab = consts[OFF_POS:OFF_POS + S]                 # (S, H)

    qpos = qpos_ref[...]                                  # (bs, 14) bf16
    qpos_emb = mm(qpos, w_s[W_JOINT], bh(B_JOINT))                          # (bs, H)
    act_emb = mm(actions_ref[...].reshape(bs * seq, 14), w_s[W_ACT], bh(B_ACT))
    x = jnp.concatenate([jnp.broadcast_to(cls_row[None], (bs, 1, H)),
                         qpos_emb[:, None, :],
                         act_emb.reshape(bs, seq, H)], axis=1)              # (bs, S, H)

    xp = (x + pos_tab[None]).reshape(bs * S, H)
    qk = mm(xp, w_h2h[W_ENC_QK], b2(B_ENC_QK)).reshape(bs, S, 2 * H)
    q, k = qk[..., :H], qk[..., H:]
    v = mm(x.reshape(bs * S, H), w_hh[W_ENC_V], bh(B_ENC_V)).reshape(bs, S, H)
    pad_bias = jnp.concatenate([jnp.zeros((bs, 2), f32),
                                is_pad_ref[...] * (-1e9)], axis=1)[:, None, :]  # (bs,1,S)
    attn = softmax_attend(q, k, v, pad_bias)                                # (bs, S, H)
    x = x + mm(attn.reshape(bs * S, H), w_hh[W_ENC_O], bh(B_ENC_O)).reshape(bs, S, H)
    hmid = jnp.maximum(mm(x.reshape(bs * S, H), w_h2h[W_ENC_FF1], b2(B_ENC_FF1)), 0.0)
    x = x + mm(hmid, ff2_ref[...], bh(B_ENC_FF2)).reshape(bs, S, H)

    latent_info = mm(x[:, 0, :], w_h2h[W_LAT_PROJ], b2(B_LAT_PROJ))         # (bs, 2*LATENT)
    lat_ref[...] = jnp.concatenate(
        [latent_info, jnp.zeros((bs, LAT_PAD - 2 * LATENT), f32)], axis=-1)

    mu, logvar = latent_info[:, :LATENT], latent_info[:, LATENT:]
    latent_sample = mu + jnp.exp(0.5 * logvar) * eps_ref[...]               # reparametrize
    latent_input = mm(latent_sample, w_hh[W_LAT_OUT], bh(B_LAT_OUT))        # (bs, H)
    task_proj = mm(task_ref[...], wte_ref[...], bh(B_TEXT))                 # (bs, H)
    proprio = mm(qpos, w_s[W_ROBOT], bh(B_ROBOT))                           # (bs, H)

    # ---------------- backbones (patch conv + ReLU) + 1x1 input_proj ----------------
    conv_w, conv_b, pw = conv_w_ref[...], conv_b_ref[...], pw_ref[...]
    feats = []
    for c in range(num_cam):                      # static loop: a couple of tiny matmuls
        f = jnp.maximum(mm(patches_ref[c], conv_w[c], conv_b[c]), 0.0)      # (bs*hw, BB)
        feats.append(mm(f, pw, bh(B_INPROJ)))                               # (bs*hw, H)
    # goal image embedding = last camera's projected features (no recompute)
    goal_ref[...] = feats[num_cam - 1].reshape(bs, hw, H)

    # ---------------- decoder cross-attention + fused output heads ----------------
    extra = jnp.stack([latent_input, proprio, task_proj], axis=1)           # (bs, 3, H)
    mem = jnp.concatenate([extra] + [f.reshape(bs, hw, H) for f in feats], axis=1)
    lm = 3 + num_cam * hw
    mem_pos = consts[OFF_MEMPOS:OFF_MEMPOS + lm]                            # (Lm, H)

    kv_in = (mem + mem_pos[None]).reshape(bs * lm, H)
    kk = mm(kv_in, w_hh[W_DEC_K], bh(B_DEC_K)).reshape(bs, lm, H)
    vv = mm(mem.reshape(bs * lm, H), w_hh[W_DEC_V], bh(B_DEC_V)).reshape(bs, lm, H)
    q2d = mm(qemb_ref[...], w_hh[W_DEC_Q], bh(B_DEC_Q))                     # (NQ, H)
    qq = jnp.broadcast_to(q2d[None], (bs,) + q2d.shape)
    attn = softmax_attend(qq, kk, vv)                                       # (bs, NQ, H)
    hs = mm(attn.reshape(bs * nq, H), w_hh[W_DEC_O], bh(B_DEC_O))           # (bs*NQ, H)
    heads = mm(hs, w_heads_ref[...], b_heads_ref[...])                      # (bs*NQ, 128)
    heads_ref[...] = heads.reshape(bs, nq, HEAD_PAD)


# ----------------------------- pallas_call wrapper ----------------------------
def _whole_spec(shape):
    nd = len(shape)
    return pl.BlockSpec(shape, lambda i, _nd=nd: (0,) * _nd)


def _foam_call(inputs, out_shapes, scale):
    return pl.pallas_call(
        functools.partial(_foam_kernel, scale=scale),
        out_shape=out_shapes,
        grid=(1,),
        in_specs=[_whole_spec(x.shape) for x in inputs],
        out_specs=[_whole_spec(s.shape) for s in out_shapes],
        compiler_params=pltpu.CompilerParams(
            dimension_semantics=("arbitrary",),
            vmem_limit_bytes=_VMEM_LIMIT),
    )(*inputs)


# ----------------------------- module helpers --------------------------------
def get_sinusoid_encoding_table(n_position, d_hid):
    pos = np.arange(n_position, dtype=np.float64)[:, None]
    j = np.arange(d_hid, dtype=np.float64)[None, :]
    table = pos / np.power(10000.0, 2.0 * (np.floor(j / 2.0)) / d_hid)
    table[:, 0::2] = np.sin(table[:, 0::2])
    table[:, 1::2] = np.cos(table[:, 1::2])
    return jnp.asarray(table[None], dtype=jnp.float32)   # (1, n_position, d_hid)


def _sinusoid_pos_map(hg, wg, hidden):
    idx = jnp.arange(hg * wg, dtype=jnp.float32)
    dim = jnp.arange(hidden)
    inv = jnp.power(10000.0, (2.0 * (dim // 2)) / hidden).astype(jnp.float32)
    ang = idx[:, None] / inv[None, :]
    return jnp.where((dim % 2 == 0)[None, :], jnp.sin(ang), jnp.cos(ang))   # (hg*wg, H)


# ----------------------------- parameter packing (once, outside jit) ----------
def prepare_params(params):
    """Re-pack the original-style parameters into a few kernel-ready buffers."""
    f32, bf16 = jnp.float32, jnp.bfloat16
    enc, tr = params["encoder"], params["transformer"]

    w_hh = jnp.stack([enc["wv"][0], enc["wo"][0], params["latent_out_proj"][0],
                      tr["wq"][0], tr["wk"][0], tr["wv"][0], tr["wo"][0]]).astype(bf16)
    w_h2h = jnp.stack([jnp.concatenate([enc["wq"][0], enc["wk"][0]], axis=1),
                       enc["ff1"][0], params["latent_proj"][0]]).astype(bf16)
    w_s = jnp.stack([params["encoder_joint_proj"][0], params["encoder_action_proj"][0],
                     params["input_proj_robot_state"][0]]).astype(bf16)
    b_h = jnp.stack([params["encoder_joint_proj"][1], params["encoder_action_proj"][1],
                     params["input_proj_robot_state"][1], enc["wv"][1], enc["wo"][1],
                     enc["ff2"][1], params["latent_out_proj"][1], params["proj_text_emb"][1],
                     tr["wq"][1], tr["wk"][1], tr["wv"][1], tr["wo"][1],
                     params["input_proj"][1]]).astype(f32)
    b_2h = jnp.stack([jnp.concatenate([enc["wq"][1], enc["wk"][1]]),
                      enc["ff1"][1], params["latent_proj"][1]]).astype(f32)

    # output heads padded to 128 lanes (unmasked vst on the biggest output)
    wa_h, ba_h = params["action_head"]
    wi_h, bi_h = params["image_embedding_head"]
    wp_h, bp_h = params["is_pad_head"]
    w_heads = jnp.concatenate([wa_h, wi_h, wp_h], axis=1)                   # (H, 47)
    w_heads = jnp.pad(w_heads, ((0, 0), (0, HEAD_PAD - HEAD_DIM))).astype(bf16)
    b_heads = jnp.pad(jnp.concatenate([ba_h, bi_h, bp_h]),
                      (0, HEAD_PAD - HEAD_DIM))[None, :].astype(f32)

    conv_w = jnp.stack([b["conv_w"] for b in params["backbones"]]).astype(bf16)
    conv_b = jnp.stack([b["conv_b"][None, :] for b in params["backbones"]]).astype(f32)

    # packed f32 constants: cls embedding | encoder pos table | decoder memory pos
    pos_hw = _sinusoid_pos_map(HG, WG, HIDDEN)                              # (HW, H)
    mem_pos = jnp.concatenate([params["additional_pos_embed"]] + [pos_hw] * NUM_CAM, axis=0)
    consts = jnp.zeros((CONST_ROWS, HIDDEN), f32)
    consts = consts.at[OFF_CLS].set(params["cls_embed"][0])
    consts = consts.at[OFF_POS:OFF_POS + S_TOK].set(params["pos_table"][0])
    consts = consts.at[OFF_MEMPOS:OFF_MEMPOS + LM].set(mem_pos)

    return dict(w_hh=w_hh, w_h2h=w_h2h, w_s=w_s, b_h=b_h, b_2h=b_2h,
                ff2=enc["ff2"][0].astype(bf16), wte=params["proj_text_emb"][0].astype(bf16),
                conv_w=conv_w, conv_b=conv_b, pw=params["input_proj"][0].astype(bf16),
                w_heads=w_heads, b_heads=b_heads,
                qemb=params["query_embed"].astype(bf16), consts=consts)


# ----------------------------- FoAM forward ----------------------------------
def foam_forward(kp, qpos, image, env_state, actions, is_pad, task_emb, eps_key):
    del env_state  # unused in the backbones-present training path
    f32, bf16 = jnp.float32, jnp.bfloat16
    bs = qpos.shape[0]
    seq = actions.shape[1]
    assert seq == NUM_QUERIES, "pos_table / consts are sized for seq == num_queries"
    num_cam = image.shape[1]
    B, _, C, Hi, Wi = image.shape
    hg, wg = Hi // PATCH, Wi // PATCH
    hw = hg * wg

    # reparametrize noise (torch .normal_() replaced by deterministic jax.random draw)
    eps = jax.random.normal(eps_key, (bs, LATENT), f32)

    # im2col patch extraction for the stand-in patch conv (tiny XLA glue)
    patches = image.transpose(1, 0, 2, 3, 4).reshape(num_cam, B, C, hg, PATCH, wg, PATCH)
    patches = jnp.transpose(patches, (0, 1, 3, 5, 2, 4, 6)).reshape(
        num_cam, B * hw, C * PATCH * PATCH).astype(bf16)

    inputs = [qpos.astype(bf16), actions.astype(bf16), is_pad.astype(f32),
              task_emb.astype(bf16), eps, patches,
              kp["conv_w"], kp["conv_b"], kp["pw"], kp["wte"], kp["w_s"], kp["w_hh"],
              kp["w_h2h"], kp["ff2"], kp["w_heads"], kp["qemb"],
              kp["b_h"], kp["b_2h"], kp["b_heads"], kp["consts"]]
    out_shapes = (jax.ShapeDtypeStruct((bs, LAT_PAD), f32),
                  jax.ShapeDtypeStruct((bs, NUM_QUERIES, HEAD_PAD), f32),
                  jax.ShapeDtypeStruct((bs, hw, HIDDEN), f32))

    lat, heads, goal = _foam_call(inputs, out_shapes, 1.0 / math.sqrt(HIDDEN))

    mu = lat[:, :LATENT]
    logvar = lat[:, LATENT:2 * LATENT]
    a_hat = heads[..., :STATE_DIM]
    image_embedding_hat = heads[..., STATE_DIM:STATE_DIM + EMB_R * EMB_C].reshape(
        bs, NUM_QUERIES, EMB_R, EMB_C)
    is_pad_hat = heads[..., STATE_DIM + EMB_R * EMB_C:HEAD_DIM]
    goal_image_embedding = jnp.transpose(goal, (1, 0, 2))                   # (hw, bs, H)

    # TODO(synk): as in the PyTorch reference, last_idx-1 wraps (negative index) when a sample
    # has zero non-padded actions; semantics kept unchanged.
    last_idx = jnp.sum(~is_pad, axis=1)
    last_image_embedding_hat = image_embedding_hat[jnp.arange(bs), last_idx - 1]
    last_image_embedding_hat = jnp.transpose(last_image_embedding_hat, (1, 0, 2))

    return a_hat, is_pad_hat, (mu, logvar), last_image_embedding_hat, goal_image_embedding


# ----------------------------- parameter init --------------------------------
def init_linear(key, fan_in, fan_out, scale=0.05):
    kw, kb = jax.random.split(key)
    w = jax.random.normal(kw, (fan_in, fan_out), jnp.float32) * scale
    b = jax.random.normal(kb, (fan_out,), jnp.float32) * scale
    return w, b


def build_params(key):
    keys = jax.random.split(key, 32)
    it = iter(keys)
    params = {
        "encoder_action_proj": init_linear(next(it), 14, HIDDEN),
        "encoder_joint_proj": init_linear(next(it), 14, HIDDEN),
        "cls_embed": jax.random.normal(next(it), (1, HIDDEN), jnp.float32) * 0.05,
        "latent_proj": init_linear(next(it), HIDDEN, LATENT * 2),
        "latent_out_proj": init_linear(next(it), LATENT, HIDDEN),
        "proj_text_emb": init_linear(next(it), TEXT_DIM, HIDDEN),
        "input_proj": init_linear(next(it), BB_CHANNELS, HIDDEN),       # 1x1 conv
        "input_proj_robot_state": init_linear(next(it), 14, HIDDEN),
        "query_embed": jax.random.normal(next(it), (NUM_QUERIES, HIDDEN),
                                         jnp.float32) * 0.05,
        "additional_pos_embed": jax.random.normal(
            next(it), (3 if MULTI_TASK else 2, HIDDEN), jnp.float32) * 0.05,
        "action_head": init_linear(next(it), HIDDEN, STATE_DIM),
        "image_embedding_head": init_linear(next(it), HIDDEN, EMB_R * EMB_C),
        "is_pad_head": init_linear(next(it), HIDDEN, 1),
        "pos_table": get_sinusoid_encoding_table(1 + 1 + NUM_QUERIES, HIDDEN),
    }
    params["encoder"] = {
        "wq": init_linear(next(it), HIDDEN, HIDDEN),
        "wk": init_linear(next(it), HIDDEN, HIDDEN),
        "wv": init_linear(next(it), HIDDEN, HIDDEN),
        "wo": init_linear(next(it), HIDDEN, HIDDEN),
        "ff1": init_linear(next(it), HIDDEN, 2 * HIDDEN),
        "ff2": init_linear(next(it), 2 * HIDDEN, HIDDEN),
    }
    params["transformer"] = {
        "wq": init_linear(next(it), HIDDEN, HIDDEN),
        "wk": init_linear(next(it), HIDDEN, HIDDEN),
        "wv": init_linear(next(it), HIDDEN, HIDDEN),
        "wo": init_linear(next(it), HIDDEN, HIDDEN),
    }
    params["backbones"] = []
    for _ in range(NUM_CAM):
        kcam = next(it)
        cw, cb = init_linear(kcam, IMG_C * PATCH * PATCH, BB_CHANNELS)
        params["backbones"].append({"conv_w": cw, "conv_b": cb})
    return params


# ----------------------------------- main -------------------------------------
if __name__ == "__main__":
    root = jax.random.PRNGKey(0)
    k_param, k_qpos, k_img, k_act, k_task, k_eps = jax.random.split(root, 6)

    params = build_params(k_param)
    kparams = prepare_params(params)          # one-time packing, outside jit

    qpos = jax.random.normal(k_qpos, (BATCH, 14), jnp.float32)
    image = jax.random.normal(k_img, (BATCH, NUM_CAM, IMG_C, IMG_H, IMG_W), jnp.float32)
    actions = jax.random.normal(k_act, (BATCH, NUM_QUERIES, 14), jnp.float32)
    task_emb = jax.random.normal(k_task, (BATCH, TEXT_DIM), jnp.float32)
    is_pad = jnp.array([[False] * 5 + [True] * 3,
                        [False] * 6 + [True] * 2], dtype=bool)
    env_state = None

    foam_fn = jax.jit(foam_forward)
    outs = foam_fn(kparams, qpos, image, env_state, actions, is_pad, task_emb, k_eps)
    a_hat, is_pad_hat, (mu, logvar), last_img_emb_hat, goal_img_emb = outs
    jax.block_until_ready((a_hat, is_pad_hat, mu, logvar,
                           last_img_emb_hat, goal_img_emb))

    assert a_hat.shape == (BATCH, NUM_QUERIES, STATE_DIM)
    assert is_pad_hat.shape == (BATCH, NUM_QUERIES, 1)
    assert mu.shape == (BATCH, LATENT) and logvar.shape == (BATCH, LATENT)
    assert last_img_emb_hat.shape == (EMB_R, BATCH, EMB_C)
    assert goal_img_emb.shape == (HW, BATCH, HIDDEN)

    print("KERNEL_OK")
</pallas_src>

<mosaic_0001>
module attributes {stable_mosaic.version = 11 : i64} {
  func.func @_foam_kernel(%arg0: i32, %arg1: memref<2x14xbf16, #tpu.memory_space<vmem>>, %arg2: memref<2x8x14xbf16, #tpu.memory_space<vmem>>, %arg3: memref<2x8xf32, #tpu.memory_space<vmem>>, %arg4: memref<2x384xbf16, #tpu.memory_space<vmem>>, %arg5: memref<2x32xf32, #tpu.memory_space<vmem>>, %arg6: memref<2x32x48xbf16, #tpu.memory_space<vmem>>, %arg7: memref<2x48x8xbf16, #tpu.memory_space<vmem>>, %arg8: memref<2x1x8xf32, #tpu.memory_space<vmem>>, %arg9: memref<8x32xbf16, #tpu.memory_space<vmem>>, %arg10: memref<384x32xbf16, #tpu.memory_space<vmem>>, %arg11: memref<3x14x32xbf16, #tpu.memory_space<vmem>>, %arg12: memref<7x32x32xbf16, #tpu.memory_space<vmem>>, %arg13: memref<3x32x64xbf16, #tpu.memory_space<vmem>>, %arg14: memref<64x32xbf16, #tpu.memory_space<vmem>>, %arg15: memref<32x128xbf16, #tpu.memory_space<vmem>>, %arg16: memref<8x32xbf16, #tpu.memory_space<vmem>>, %arg17: memref<13x32xf32, #tpu.memory_space<vmem>>, %arg18: memref<3x64xf32, #tpu.memory_space<vmem>>, %arg19: memref<1x128xf32, #tpu.memory_space<vmem>>, %arg20: memref<64x32xf32, #tpu.memory_space<vmem>>, %arg21: memref<2x128xf32, #tpu.memory_space<vmem>>, %arg22: memref<2x8x128xf32, #tpu.memory_space<vmem>>, %arg23: memref<2x16x32xf32, #tpu.memory_space<vmem>>) attributes {dimension_semantics = [#tpu.dimension_semantics<arbitrary>], iteration_bounds = array<i64: 1>, scalar_prefetch = 0 : i64, scratch_operands = 0 : i64, tpu.core_type = #tpu.core_type<tc>, window_params = [{pipeline_mode = #tpu.pipeline_mode<synchronous>, transform_indices = @transform_0, window_bounds = array<i64: 2, 14>}, {pipeline_mode = #tpu.pipeline_mode<synchronous>, transform_indices = @transform_1, window_bounds = array<i64: 2, 8, 14>}, {pipeline_mode = #tpu.pipeline_mode<synchronous>, transform_indices = @transform_2, window_bounds = array<i64: 2, 8>}, {pipeline_mode = #tpu.pipeline_mode<synchronous>, transform_indices = @transform_3, window_bounds = array<i64: 2, 384>}, {pipeline_mode = #tpu.pipeline_mode<synchronous>, transform_indices = @transform_4, window_bounds = array<i64: 2, 32>}, {pipeline_mode = #tpu.pipeline_mode<synchronous>, transform_indices = @transform_5, window_bounds = array<i64: 2, 32, 48>}, {pipeline_mode = #tpu.pipeline_mode<synchronous>, transform_indices = @transform_6, window_bounds = array<i64: 2, 48, 8>}, {pipeline_mode = #tpu.pipeline_mode<synchronous>, transform_indices = @transform_7, window_bounds = array<i64: 2, 1, 8>}, {pipeline_mode = #tpu.pipeline_mode<synchronous>, transform_indices = @transform_8, window_bounds = array<i64: 8, 32>}, {pipeline_mode = #tpu.pipeline_mode<synchronous>, transform_indices = @transform_9, window_bounds = array<i64: 384, 32>}, {pipeline_mode = #tpu.pipeline_mode<synchronous>, transform_indices = @transform_10, window_bounds = array<i64: 3, 14, 32>}, {pipeline_mode = #tpu.pipeline_mode<synchronous>, transform_indices = @transform_11, window_bounds = array<i64: 7, 32, 32>}, {pipeline_mode = #tpu.pipeline_mode<synchronous>, transform_indices = @transform_12, window_bounds = array<i64: 3, 32, 64>}, {pipeline_mode = #tpu.pipeline_mode<synchronous>, transform_indices = @transform_13, window_bounds = array<i64: 64, 32>}, {pipeline_mode = #tpu.pipeline_mode<synchronous>, transform_indices = @transform_14, window_bounds = array<i64: 32, 128>}, {pipeline_mode = #tpu.pipeline_mode<synchronous>, transform_indices = @transform_15, window_bounds = array<i64: 8, 32>}, {pipeline_mode = #tpu.pipeline_mode<synchronous>, transform_indices = @transform_16, window_bounds = array<i64: 13, 32>}, {pipeline_mode = #tpu.pipeline_mode<synchronous>, transform_indices = @transform_17, window_bounds = array<i64: 3, 64>}, {pipeline_mode = #tpu.pipeline_mode<synchronous>, transform_indices = @transform_18, window_bounds = array<i64: 1, 128>}, {pipeline_mode = #tpu.pipeline_mode<synchronous>, transform_indices = @transform_19, window_bounds = array<i64: 64, 32>}, {pipeline_mode = #tpu.pipeline_mode<synchronous>, transform_indices = @transform_20, window_bounds = array<i64: 2, 128>}, {pipeline_mode = #tpu.pipeline_mode<synchronous>, transform_indices = @transform_21, window_bounds = array<i64: 2, 8, 128>}, {pipeline_mode = #tpu.pipeline_mode<synchronous>, transform_indices = @transform_22, window_bounds = array<i64: 2, 16, 32>}]} {
    %c0 = arith.constant 0 : index
    %c0_0 = arith.constant 0 : index
    %c0_1 = arith.constant 0 : index
    %0 = vector.load %arg12[%c0, %c0_0, %c0_1] : memref<7x32x32xbf16, #tpu.memory_space<vmem>>, vector<7x32x32xbf16>
    %c0_2 = arith.constant 0 : index
    %c0_3 = arith.constant 0 : index
    %c0_4 = arith.constant 0 : index
    %1 = vector.load %arg13[%c0_2, %c0_3, %c0_4] : memref<3x32x64xbf16, #tpu.memory_space<vmem>>, vector<3x32x64xbf16>
    %c0_5 = arith.constant 0 : index
    %c0_6 = arith.constant 0 : index
    %c0_7 = arith.constant 0 : index
    %2 = vector.load %arg11[%c0_5, %c0_6, %c0_7] : memref<3x14x32xbf16, #tpu.memory_space<vmem>>, vector<3x14x32xbf16>
    %c0_8 = arith.constant 0 : index
    %c0_9 = arith.constant 0 : index
    %3 = vector.load %arg17[%c0_8, %c0_9] : memref<13x32xf32, #tpu.memory_space<vmem>>, vector<13x32xf32>
    %c0_10 = arith.constant 0 : index
    %c0_11 = arith.constant 0 : index
    %4 = vector.load %arg18[%c0_10, %c0_11] : memref<3x64xf32, #tpu.memory_space<vmem>>, vector<3x64xf32>
    %c0_12 = arith.constant 0 : index
    %c0_13 = arith.constant 0 : index
    %5 = vector.load %arg20[%c0_12, %c0_13] : memref<64x32xf32, #tpu.memory_space<vmem>>, vector<64x32xf32>
    %6 = vector.extract_strided_slice %5 {offsets = [0, 0], sizes = [1, 32], strides = [1, 1]} : vector<64x32xf32> to vector<1x32xf32>
    %7 = vector.extract_strided_slice %5 {offsets = [8, 0], sizes = [10, 32], strides = [1, 1]} : vector<64x32xf32> to vector<10x32xf32>
    %c0_14 = arith.constant 0 : index
    %c0_15 = arith.constant 0 : index
    %8 = vector.load %arg1[%c0_14, %c0_15] : memref<2x14xbf16, #tpu.memory_space<vmem>>, vector<2x14xbf16>
    %9 = vector.extract_strided_slice %2 {offsets = [0, 0, 0], sizes = [1, 14, 32], strides = [1, 1, 1]} : vector<3x14x32xbf16> to vector<1x14x32xbf16>
    %10 = vector.shape_cast %9 : vector<1x14x32xbf16> to vector<14x32xbf16>
    %11 = vector.extract_strided_slice %3 {offsets = [0, 0], sizes = [1, 32], strides = [1, 1]} : vector<13x32xf32> to vector<1x32xf32>
    %cst = arith.constant dense<0.000000e+00> : vector<2x32xf32>
    %12 = tpu.matmul %8, %10, %cst {dimension_numbers = #tpu.dot_dimension_numbers<[1], [0], [0], [1], [0, 0, 1, 1], [], []>} : vector<2x14xbf16>, vector<14x32xbf16>, vector<2x32xf32> -> vector<2x32xf32>
    %13 = vector.broadcast %11 : vector<1x32xf32> to vector<2x32xf32>
    %14 = arith.addf %12, %13 : vector<2x32xf32>
    %c0_16 = arith.constant 0 : index
    %c0_17 = arith.constant 0 : index
    %c0_18 = arith.constant 0 : index
    %15 = vector.load %arg2[%c0_16, %c0_17, %c0_18] : memref<2x8x14xbf16, #tpu.memory_space<vmem>>, vector<2x8x14xbf16>
    %16 = vector.shape_cast %15 : vector<2x8x14xbf16> to vector<16x14xbf16>
    %17 = vector.extract_strided_slice %2 {offsets = [1, 0, 0], sizes = [1, 14, 32], strides = [1, 1, 1]} : vector<3x14x32xbf16> to vector<1x14x32xbf16>
    %18 = vector.shape_cast %17 : vector<1x14x32xbf16> to vector<14x32xbf16>
    %19 = vector.extract_strided_slice %3 {offsets = [1, 0], sizes = [1, 32], strides = [1, 1]} : vector<13x32xf32> to vector<1x32xf32>
    %cst_19 = arith.constant dense<0.000000e+00> : vector<16x32xf32>
    %20 = tpu.matmul %16, %18, %cst_19 {dimension_numbers = #tpu.dot_dimension_numbers<[1], [0], [0], [1], [0, 0, 1, 1], [], []>} : vector<16x14xbf16>, vector<14x32xbf16>, vector<16x32xf32> -> vector<16x32xf32>
    %21 = vector.broadcast %19 : vector<1x32xf32> to vector<16x32xf32>
    %22 = arith.addf %20, %21 : vector<16x32xf32>
    %23 = vector.shape_cast %6 : vector<1x32xf32> to vector<1x1x32xf32>
    %24 = vector.shape_cast %23 : vector<1x1x32xf32> to vector<1x1x32xf32>
    %25 = vector.broadcast %24 : vector<1x1x32xf32> to vector<2x1x32xf32>
    %26 = vector.shape_cast %14 : vector<2x32xf32> to vector<2x1x32xf32>
    %27 = vector.shape_cast %22 : vector<16x32xf32> to vector<2x8x32xf32>
    %28 = tpu.concatenate %25, %26, %27 in 1 : vector<2x1x32xf32>, vector<2x1x32xf32>, vector<2x8x32xf32> -> vector<2x10x32xf32>
    %29 = vector.shape_cast %7 : vector<10x32xf32> to vector<1x10x32xf32>
    %30 = vector.broadcast %29 : vector<1x10x32xf32> to vector<2x10x32xf32>
    %31 = arith.addf %28, %30 : vector<2x10x32xf32>
    %32 = vector.shape_cast %31 : vector<2x10x32xf32> to vector<20x32xf32>
    %33 = vector.extract_strided_slice %1 {offsets = [0, 0, 0], sizes = [1, 32, 64], strides = [1, 1, 1]} : vector<3x32x64xbf16> to vector<1x32x64xbf16>
    %34 = vector.shape_cast %33 : vector<1x32x64xbf16> to vector<32x64xbf16>
    %35 = vector.extract_strided_slice %4 {offsets = [0, 0], sizes = [1, 64], strides = [1, 1]} : vector<3x64xf32> to vector<1x64xf32>
    %36 = arith.truncf %32 : vector<20x32xf32> to vector<20x32xbf16>
    %cst_20 = arith.constant dense<0.000000e+00> : vector<20x64xf32>
    %37 = tpu.matmul %36, %34, %cst_20 {dimension_numbers = #tpu.dot_dimension_numbers<[1], [0], [0], [1], [0, 0, 1, 1], [], []>} : vector<20x32xbf16>, vector<32x64xbf16>, vector<20x64xf32> -> vector<20x64xf32>
    %38 = vector.broadcast %35 : vector<1x64xf32> to vector<20x64xf32>
    %39 = arith.addf %37, %38 : vector<20x64xf32>
    %40 = vector.shape_cast %39 : vector<20x64xf32> to vector<2x10x64xf32>
    %41 = vector.extract_strided_slice %40 {offsets = [0, 0, 0], sizes = [2, 10, 32], strides = [1, 1, 1]} : vector<2x10x64xf32> to vector<2x10x32xf32>
    %42 = vector.extract_strided_slice %40 {offsets = [0, 0, 32], sizes = [2, 10, 32], strides = [1, 1, 1]} : vector<2x10x64xf32> to vector<2x10x32xf32>
    %43 = vector.shape_cast %28 : vector<2x10x32xf32> to vector<20x32xf32>
    %44 = vector.extract_strided_slice %0 {offsets = [0, 0, 0], sizes = [1, 32, 32], strides = [1, 1, 1]} : vector<7x32x32xbf16> to vector<1x32x32xbf16>
    %45 = vector.shape_cast %44 : vector<1x32x32xbf16> to vector<32x32xbf16>
    %46 = vector.extract_strided_slice %3 {offsets = [3, 0], sizes = [1, 32], strides = [1, 1]} : vector<13x32xf32> to vector<1x32xf32>
    %47 = arith.truncf %43 : vector<20x32xf32> to vector<20x32xbf16>
    %cst_21 = arith.constant dense<0.000000e+00> : vector<20x32xf32>
    %48 = tpu.matmul %47, %45, %cst_21 {dimension_numbers = #tpu.dot_dimension_numbers<[1], [0], [0], [1], [0, 0, 1, 1], [], []>} : vector<20x32xbf16>, vector<32x32xbf16>, vector<20x32xf32> -> vector<20x32xf32>
    %49 = vector.broadcast %46 : vector<1x32xf32> to vector<20x32xf32>
    %50 = arith.addf %48, %49 : vector<20x32xf32>
    %51 = vector.shape_cast %50 : vector<20x32xf32> to vector<2x10x32xf32>
    %cst_22 = arith.constant 0.000000e+00 : f32
    %52 = vector.broadcast %cst_22 : f32 to vector<2x2xf32>
    %c0_23 = arith.constant 0 : index
    %c0_24 = arith.constant 0 : index
    %53 = vector.load %arg3[%c0_23, %c0_24] : memref<2x8xf32, #tpu.memory_space<vmem>>, vector<2x8xf32>
    %cst_25 = arith.constant -1.000000e+09 : f32
    %54 = vector.broadcast %cst_25 : f32 to vector<2x8xf32>
    %55 = arith.mulf %53, %54 : vector<2x8xf32>
    %56 = tpu.concatenate %52, %55 in 1 : vector<2x2xf32>, vector<2x8xf32> -> vector<2x10xf32>
    %57 = vector.shape_cast %56 : vector<2x10xf32> to vector<2x1x10xf32>
    %58 = arith.truncf %41 : vector<2x10x32xf32> to vector<2x10x32xbf16>
    %59 = arith.truncf %42 : vector<2x10x32xf32> to vector<2x10x32xbf16>
    %cst_26 = arith.constant dense<0.000000e+00> : vector<2x10x10xf32>
    %60 = tpu.matmul %58, %59, %cst_26 {dimension_numbers = #tpu.dot_dimension_numbers<[2], [2], [1], [1], [0, 0, 0, 1, 1, 1], [0], [0]>} : vector<2x10x32xbf16>, vector<2x10x32xbf16>, vector<2x10x10xf32> -> vector<2x10x10xf32>
    %cst_27 = arith.constant 0.176776692 : f32
    %61 = vector.broadcast %cst_27 : f32 to vector<2x10x10xf32>
    %62 = arith.mulf %60, %61 : vector<2x10x10xf32>
    %63 = vector.broadcast %57 : vector<2x1x10xf32> to vector<2x10x10xf32>
    %64 = arith.addf %62, %63 : vector<2x10x10xf32>
    %cst_28 = arith.constant dense<0xFF800000> : vector<2x10xf32>
    %65 = vector.multi_reduction <maximumf>, %64, %cst_28 [2] : vector<2x10x10xf32> to vector<2x10xf32>
    %66 = vector.shape_cast %65 : vector<2x10xf32> to vector<2x10x1xf32>
    %67 = vector.broadcast %66 : vector<2x10x1xf32> to vector<2x10x10xf32>
    %68 = arith.subf %64, %67 : vector<2x10x10xf32>
    %69 = math.exp %68 : vector<2x10x10xf32>
    %cst_29 = arith.constant dense<0.000000e+00> : vector<2x10xf32>
    %70 = vector.multi_reduction <add>, %69, %cst_29 [2] : vector<2x10x10xf32> to vector<2x10xf32>
    %71 = vector.shape_cast %70 : vector<2x10xf32> to vector<2x10x1xf32>
    %72 = arith.truncf %69 : vector<2x10x10xf32> to vector<2x10x10xbf16>
    %73 = arith.truncf %51 : vector<2x10x32xf32> to vector<2x10x32xbf16>
    %cst_30 = arith.constant dense<0.000000e+00> : vector<2x10x32xf32>
    %74 = tpu.matmul %72, %73, %cst_30 {dimension_numbers = #tpu.dot_dimension_numbers<[2], [1], [1], [2], [0, 0, 0, 1, 1, 2], [0], [0]>} : vector<2x10x10xbf16>, vector<2x10x32xbf16>, vector<2x10x32xf32> -> vector<2x10x32xf32>
    %75 = tpu.reciprocal %71 {approx = true} : vector<2x10x1xf32> -> vector<2x10x1xf32>
    %76 = vector.broadcast %75 : vector<2x10x1xf32> to vector<2x10x32xf32>
    %77 = arith.mulf %74, %76 : vector<2x10x32xf32>
    %78 = vector.shape_cast %77 : vector<2x10x32xf32> to vector<20x32xf32>
    %79 = vector.extract_strided_slice %0 {offsets = [1, 0, 0], sizes = [1, 32, 32], strides = [1, 1, 1]} : vector<7x32x32xbf16> to vector<1x32x32xbf16>
    %80 = vector.shape_cast %79 : vector<1x32x32xbf16> to vector<32x32xbf16>
    %81 = vector.extract_strided_slice %3 {offsets = [4, 0], sizes = [1, 32], strides = [1, 1]} : vector<13x32xf32> to vector<1x32xf32>
    %82 = arith.truncf %78 : vector<20x32xf32> to vector<20x32xbf16>
    %cst_31 = arith.constant dense<0.000000e+00> : vector<20x32xf32>
    %83 = tpu.matmul %82, %80, %cst_31 {dimension_numbers = #tpu.dot_dimension_numbers<[1], [0], [0], [1], [0, 0, 1, 1], [], []>} : vector<20x32xbf16>, vector<32x32xbf16>, vector<20x32xf32> -> vector<20x32xf32>
    %84 = vector.broadcast %81 : vector<1x32xf32> to vector<20x32xf32>
    %85 = arith.addf %83, %84 : vector<20x32xf32>
    %86 = vector.shape_cast %85 : vector<20x32xf32> to vector<2x10x32xf32>
    %87 = arith.addf %28, %86 : vector<2x10x32xf32>
    %88 = vector.shape_cast %87 : vector<2x10x32xf32> to vector<20x32xf32>
    %89 = vector.extract_strided_slice %1 {offsets = [1, 0, 0], sizes = [1, 32, 64], strides = [1, 1, 1]} : vector<3x32x64xbf16> to vector<1x32x64xbf16>
    %90 = vector.shape_cast %89 : vector<1x32x64xbf16> to vector<32x64xbf16>
    %91 = vector.extract_strided_slice %4 {offsets = [1, 0], sizes = [1, 64], strides = [1, 1]} : vector<3x64xf32> to vector<1x64xf32>
    %92 = arith.truncf %88 : vector<20x32xf32> to vector<20x32xbf16>
    %cst_32 = arith.constant dense<0.000000e+00> : vector<20x64xf32>
    %93 = tpu.matmul %92, %90, %cst_32 {dimension_numbers = #tpu.dot_dimension_numbers<[1], [0], [0], [1], [0, 0, 1, 1], [], []>} : vector<20x32xbf16>, vector<32x64xbf16>, vector<20x64xf32> -> vector<20x64xf32>
    %94 = vector.broadcast %91 : vector<1x64xf32> to vector<20x64xf32>
    %95 = arith.addf %93, %94 : vector<20x64xf32>
    %cst_33 = arith.constant 0.000000e+00 : f32
    %96 = vector.broadcast %cst_33 : f32 to vector<20x64xf32>
    %97 = arith.maximumf %95, %96 : vector<20x64xf32>
    %c0_34 = arith.constant 0 : index
    %c0_35 = arith.constant 0 : index
    %98 = vector.load %arg14[%c0_34, %c0_35] : memref<64x32xbf16, #tpu.memory_space<vmem>>, vector<64x32xbf16>
    %99 = vector.extract_strided_slice %3 {offsets = [5, 0], sizes = [1, 32], strides = [1, 1]} : vector<13x32xf32> to vector<1x32xf32>
    %100 = arith.truncf %97 : vector<20x64xf32> to vector<20x64xbf16>
    %cst_36 = arith.constant dense<0.000000e+00> : vector<20x32xf32>
    %101 = tpu.matmul %100, %98, %cst_36 {dimension_numbers = #tpu.dot_dimension_numbers<[1], [0], [0], [1], [0, 0, 1, 1], [], []>} : vector<20x64xbf16>, vector<64x32xbf16>, vector<20x32xf32> -> vector<20x32xf32>
    %102 = vector.broadcast %99 : vector<1x32xf32> to vector<20x32xf32>
    %103 = arith.addf %101, %102 : vector<20x32xf32>
    %104 = vector.shape_cast %103 : vector<20x32xf32> to vector<2x10x32xf32>
    %105 = arith.addf %87, %104 : vector<2x10x32xf32>
    %106 = vector.extract_strided_slice %105 {offsets = [0, 0, 0], sizes = [2, 1, 32], strides = [1, 1, 1]} : vector<2x10x32xf32> to vector<2x1x32xf32>
    %107 = vector.shape_cast %106 : vector<2x1x32xf32> to vector<2x32xf32>
    %108 = vector.extract_strided_slice %1 {offsets = [2, 0, 0], sizes = [1, 32, 64], strides = [1, 1, 1]} : vector<3x32x64xbf16> to vector<1x32x64xbf16>
    %109 = vector.shape_cast %108 : vector<1x32x64xbf16> to vector<32x64xbf16>
    %110 = vector.extract_strided_slice %4 {offsets = [2, 0], sizes = [1, 64], strides = [1, 1]} : vector<3x64xf32> to vector<1x64xf32>
    %111 = arith.truncf %107 : vector<2x32xf32> to vector<2x32xbf16>
    %cst_37 = arith.constant dense<0.000000e+00> : vector<2x64xf32>
    %112 = tpu.matmul %111, %109, %cst_37 {dimension_numbers = #tpu.dot_dimension_numbers<[1], [0], [0], [1], [0, 0, 1, 1], [], []>} : vector<2x32xbf16>, vector<32x64xbf16>, vector<2x64xf32> -> vector<2x64xf32>
    %113 = vector.broadcast %110 : vector<1x64xf32> to vector<2x64xf32>
    %114 = arith.addf %112, %113 : vector<2x64xf32>
    %cst_38 = arith.constant 0.000000e+00 : f32
    %115 = vector.broadcast %cst_38 : f32 to vector<2x64xf32>
    %116 = tpu.concatenate %114, %115 in 1 : vector<2x64xf32>, vector<2x64xf32> -> vector<2x128xf32>
    %c0_39 = arith.constant 0 : index
    %c0_40 = arith.constant 0 : index
    %117 = vector.load %arg21[%c0_39, %c0_40] : memref<2x128xf32, #tpu.memory_space<vmem>>, vector<2x128xf32>
    tpu.vector_store %arg21[%c0_39, %c0_40], %116 {strides = array<i32>} : memref<2x128xf32, #tpu.memory_space<vmem>>, vector<2x128xf32>,
    %118 = vector.extract_strided_slice %114 {offsets = [0, 0], sizes = [2, 32], strides = [1, 1]} : vector<2x64xf32> to vector<2x32xf32>
    %119 = vector.extract_strided_slice %114 {offsets = [0, 32], sizes = [2, 32], strides = [1, 1]} : vector<2x64xf32> to vector<2x32xf32>
    %cst_41 = arith.constant 5.000000e-01 : f32
    %120 = vector.broadcast %cst_41 : f32 to vector<2x32xf32>
    %121 = arith.mulf %120, %119 : vector<2x32xf32>
    %122 = math.exp %121 : vector<2x32xf32>
    %c0_42 = arith.constant 0 : index
    %c0_43 = arith.constant 0 : index
    %123 = vector.load %arg5[%c0_42, %c0_43] : memref<2x32xf32, #tpu.memory_space<vmem>>, vector<2x32xf32>
    %124 = arith.mulf %122, %123 : vector<2x32xf32>
    %125 = arith.addf %118, %124 : vector<2x32xf32>
    %126 = vector.extract_strided_slice %0 {offsets = [2, 0, 0], sizes = [1, 32, 32], strides = [1, 1, 1]} : vector<7x32x32xbf16> to vector<1x32x32xbf16>
    %127 = vector.shape_cast %126 : vector<1x32x32xbf16> to vector<32x32xbf16>
    %128 = vector.extract_strided_slice %3 {offsets = [6, 0], sizes = [1, 32], strides = [1, 1]} : vector<13x32xf32> to vector<1x32xf32>
    %129 = arith.truncf %125 : vector<2x32xf32> to vector<2x32xbf16>
    %cst_44 = arith.constant dense<0.000000e+00> : vector<2x32xf32>
    %130 = tpu.matmul %129, %127, %cst_44 {dimension_numbers = #tpu.dot_dimension_numbers<[1], [0], [0], [1], [0, 0, 1, 1], [], []>} : vector<2x32xbf16>, vector<32x32xbf16>, vector<2x32xf32> -> vector<2x32xf32>
    %131 = vector.broadcast %128 : vector<1x32xf32> to vector<2x32xf32>
    %132 = arith.addf %130, %131 : vector<2x32xf32>
    %c0_45 = arith.constant 0 : index
    %c0_46 = arith.constant 0 : index
    %133 = vector.load %arg4[%c0_45, %c0_46] : memref<2x384xbf16, #tpu.memory_space<vmem>>, vector<2x384xbf16>
    %c0_47 = arith.constant 0 : index
    %c0_48 = arith.constant 0 : index
    %134 = vector.load %arg10[%c0_47, %c0_48] : memref<384x32xbf16, #tpu.memory_space<vmem>>, vector<384x32xbf16>
    %135 = vector.extract_strided_slice %3 {offsets = [7, 0], sizes = [1, 32], strides = [1, 1]} : vector<13x32xf32> to vector<1x32xf32>
    %cst_49 = arith.constant dense<0.000000e+00> : vector<2x32xf32>
    %136 = tpu.matmul %133, %134, %cst_49 {dimension_numbers = #tpu.dot_dimension_numbers<[1], [0], [0], [1], [0, 0, 1, 1], [], []>} : vector<2x384xbf16>, vector<384x32xbf16>, vector<2x32xf32> -> vector<2x32xf32>
    %137 = vector.broadcast %135 : vector<1x32xf32> to vector<2x32xf32>
    %138 = arith.addf %136, %137 : vector<2x32xf32>
    %139 = vector.extract_strided_slice %2 {offsets = [2, 0, 0], sizes = [1, 14, 32], strides = [1, 1, 1]} : vector<3x14x32xbf16> to vector<1x14x32xbf16>
    %140 = vector.shape_cast %139 : vector<1x14x32xbf16> to vector<14x32xbf16>
    %141 = vector.extract_strided_slice %3 {offsets = [2, 0], sizes = [1, 32], strides = [1, 1]} : vector<13x32xf32> to vector<1x32xf32>
    %cst_50 = arith.constant dense<0.000000e+00> : vector<2x32xf32>
    %142 = tpu.matmul %8, %140, %cst_50 {dimension_numbers = #tpu.dot_dimension_numbers<[1], [0], [0], [1], [0, 0, 1, 1], [], []>} : vector<2x14xbf16>, vector<14x32xbf16>, vector<2x32xf32> -> vector<2x32xf32>
    %143 = vector.broadcast %141 : vector<1x32xf32> to vector<2x32xf32>
    %144 = arith.addf %142, %143 : vector<2x32xf32>
    %c0_51 = arith.constant 0 : index
    %c0_52 = arith.constant 0 : index
    %c0_53 = arith.constant 0 : index
    %145 = vector.load %arg7[%c0_51, %c0_52, %c0_53] : memref<2x48x8xbf16, #tpu.memory_space<vmem>>, vector<2x48x8xbf16>
    %c0_54 = arith.constant 0 : index
    %c0_55 = arith.constant 0 : index
    %c0_56 = arith.constant 0 : index
    %146 = vector.load %arg8[%c0_54, %c0_55, %c0_56] : memref<2x1x8xf32, #tpu.memory_space<vmem>>, vector<2x1x8xf32>
    %c0_57 = arith.constant 0 : index
    %c0_58 = arith.constant 0 : index
    %147 = vector.load %arg9[%c0_57, %c0_58] : memref<8x32xbf16, #tpu.memory_space<vmem>>, vector<8x32xbf16>
    %c0_59 = arith.constant 0 : index
    %c0_60 = arith.constant 0 : index
    %c0_61 = arith.constant 0 : index
    %148 = vector.load %arg6[%c0_59, %c0_60, %c0_61] : memref<2x32x48xbf16, #tpu.memory_space<vmem>>, vector<1x32x48xbf16>
    %149 = vector.shape_cast %148 : vector<1x32x48xbf16> to vector<32x48xbf16>
    %150 = vector.extract_strided_slice %145 {offsets = [0, 0, 0], sizes = [1, 48, 8], strides = [1, 1, 1]} : vector<2x48x8xbf16> to vector<1x48x8xbf16>
    %151 = vector.shape_cast %150 : vector<1x48x8xbf16> to vector<48x8xbf16>
    %152 = vector.extract_strided_slice %146 {offsets = [0, 0, 0], sizes = [1, 1, 8], strides = [1, 1, 1]} : vector<2x1x8xf32> to vector<1x1x8xf32>
    %153 = vector.shape_cast %152 : vector<1x1x8xf32> to vector<1x8xf32>
    %cst_62 = arith.constant dense<0.000000e+00> : vector<32x8xf32>
    %154 = tpu.matmul %149, %151, %cst_62 {dimension_numbers = #tpu.dot_dimension_numbers<[1], [0], [0], [1], [0, 0, 1, 1], [], []>} : vector<32x48xbf16>, vector<48x8xbf16>, vector<32x8xf32> -> vector<32x8xf32>
    %155 = vector.broadcast %153 : vector<1x8xf32> to vector<32x8xf32>
    %156 = arith.addf %154, %155 : vector<32x8xf32>
    %cst_63 = arith.constant 0.000000e+00 : f32
    %157 = vector.broadcast %cst_63 : f32 to vector<32x8xf32>
    %158 = arith.maximumf %156, %157 : vector<32x8xf32>
    %159 = vector.extract_strided_slice %3 {offsets = [12, 0], sizes = [1, 32], strides = [1, 1]} : vector<13x32xf32> to vector<1x32xf32>
    %160 = arith.truncf %158 : vector<32x8xf32> to vector<32x8xbf16>
    %cst_64 = arith.constant dense<0.000000e+00> : vector<32x32xf32>
    %161 = tpu.matmul %160, %147, %cst_64 {dimension_numbers = #tpu.dot_dimension_numbers<[1], [0], [0], [1], [0, 0, 1, 1], [], []>} : vector<32x8xbf16>, vector<8x32xbf16>, vector<32x32xf32> -> vector<32x32xf32>
    %162 = vector.broadcast %159 : vector<1x32xf32> to vector<32x32xf32>
    %163 = arith.addf %161, %162 : vector<32x32xf32>
    %c1 = arith.constant 1 : index
    %c0_65 = arith.constant 0 : index
    %c0_66 = arith.constant 0 : index
    %164 = vector.load %arg6[%c1, %c0_65, %c0_66] : memref<2x32x48xbf16, #tpu.memory_space<vmem>>, vector<1x32x48xbf16>
    %165 = vector.shape_cast %164 : vector<1x32x48xbf16> to vector<32x48xbf16>
    %166 = vector.extract_strided_slice %145 {offsets = [1, 0, 0], sizes = [1, 48, 8], strides = [1, 1, 1]} : vector<2x48x8xbf16> to vector<1x48x8xbf16>
    %167 = vector.shape_cast %166 : vector<1x48x8xbf16> to vector<48x8xbf16>
    %168 = vector.extract_strided_slice %146 {offsets = [1, 0, 0], sizes = [1, 1, 8], strides = [1, 1, 1]} : vector<2x1x8xf32> to vector<1x1x8xf32>
    %169 = vector.shape_cast %168 : vector<1x1x8xf32> to vector<1x8xf32>
    %cst_67 = arith.constant dense<0.000000e+00> : vector<32x8xf32>
    %170 = tpu.matmul %165, %167, %cst_67 {dimension_numbers = #tpu.dot_dimension_numbers<[1], [0], [0], [1], [0, 0, 1, 1], [], []>} : vector<32x48xbf16>, vector<48x8xbf16>, vector<32x8xf32> -> vector<32x8xf32>
    %171 = vector.broadcast %169 : vector<1x8xf32> to vector<32x8xf32>
    %172 = arith.addf %170, %171 : vector<32x8xf32>
    %cst_68 = arith.constant 0.000000e+00 : f32
    %173 = vector.broadcast %cst_68 : f32 to vector<32x8xf32>
    %174 = arith.maximumf %172, %173 : vector<32x8xf32>
    %175 = vector.extract_strided_slice %3 {offsets = [12, 0], sizes = [1, 32], strides = [1, 1]} : vector<13x32xf32> to vector<1x32xf32>
    %176 = arith.truncf %174 : vector<32x8xf32> to vector<32x8xbf16>
    %cst_69 = arith.constant dense<0.000000e+00> : vector<32x32xf32>
    %177 = tpu.matmul %176, %147, %cst_69 {dimension_numbers = #tpu.dot_dimension_numbers<[1], [0], [0], [1], [0, 0, 1, 1], [], []>} : vector<32x8xbf16>, vector<8x32xbf16>, vector<32x32xf32> -> vector<32x32xf32>
    %178 = vector.broadcast %175 : vector<1x32xf32> to vector<32x32xf32>
    %179 = arith.addf %177, %178 : vector<32x32xf32>
    %180 = vector.shape_cast %179 : vector<32x32xf32> to vector<2x16x32xf32>
    %c0_70 = arith.constant 0 : index
    %c0_71 = arith.constant 0 : index
    %c0_72 = arith.constant 0 : index
    %181 = vector.load %arg23[%c0_70, %c0_71, %c0_72] : memref<2x16x32xf32, #tpu.memory_space<vmem>>, vector<2x16x32xf32>
    tpu.vector_store %arg23[%c0_70, %c0_71, %c0_72], %180 {strides = array<i32>} : memref<2x16x32xf32, #tpu.memory_space<vmem>>, vector<2x16x32xf32>,
    %182 = vector.shape_cast %132 : vector<2x32xf32> to vector<2x1x32xf32>
    %183 = vector.shape_cast %144 : vector<2x32xf32> to vector<2x1x32xf32>
    %184 = vector.shape_cast %138 : vector<2x32xf32> to vector<2x1x32xf32>
    %185 = tpu.concatenate %182, %183, %184 in 1 : vector<2x1x32xf32>, vector<2x1x32xf32>, vector<2x1x32xf32> -> vector<2x3x32xf32>
    %186 = vector.shape_cast %163 : vector<32x32xf32> to vector<2x16x32xf32>
    %187 = vector.shape_cast %179 : vector<32x32xf32> to vector<2x16x32xf32>
    %188 = tpu.concatenate %185, %186, %187 in 1 : vector<2x3x32xf32>, vector<2x16x32xf32>, vector<2x16x32xf32> -> vector<2x35x32xf32>
    %189 = vector.extract_strided_slice %5 {offsets = [24, 0], sizes = [35, 32], strides = [1, 1]} : vector<64x32xf32> to vector<35x32xf32>
    %190 = vector.shape_cast %189 : vector<35x32xf32> to vector<1x35x32xf32>
    %191 = vector.broadcast %190 : vector<1x35x32xf32> to vector<2x35x32xf32>
    %192 = arith.addf %188, %191 : vector<2x35x32xf32>
    %193 = vector.shape_cast %192 : vector<2x35x32xf32> to vector<70x32xf32>
    %194 = vector.extract_strided_slice %0 {offsets = [4, 0, 0], sizes = [1, 32, 32], strides = [1, 1, 1]} : vector<7x32x32xbf16> to vector<1x32x32xbf16>
    %195 = vector.shape_cast %194 : vector<1x32x32xbf16> to vector<32x32xbf16>
    %196 = vector.extract_strided_slice %3 {offsets = [9, 0], sizes = [1, 32], strides = [1, 1]} : vector<13x32xf32> to vector<1x32xf32>
    %197 = arith.truncf %193 : vector<70x32xf32> to vector<70x32xbf16>
    %cst_73 = arith.constant dense<0.000000e+00> : vector<70x32xf32>
    %198 = tpu.matmul %197, %195, %cst_73 {dimension_numbers = #tpu.dot_dimension_numbers<[1], [0], [0], [1], [0, 0, 1, 1], [], []>} : vector<70x32xbf16>, vector<32x32xbf16>, vector<70x32xf32> -> vector<70x32xf32>
    %199 = vector.broadcast %196 : vector<1x32xf32> to vector<70x32xf32>
    %200 = arith.addf %198, %199 : vector<70x32xf32>
    %201 = vector.shape_cast %200 : vector<70x32xf32> to vector<2x35x32xf32>
    %202 = vector.shape_cast %188 : vector<2x35x32xf32> to vector<70x32xf32>
    %203 = vector.extract_strided_slice %0 {offsets = [5, 0, 0], sizes = [1, 32, 32], strides = [1, 1, 1]} : vector<7x32x32xbf16> to vector<1x32x32xbf16>
    %204 = vector.shape_cast %203 : vector<1x32x32xbf16> to vector<32x32xbf16>
    %205 = vector.extract_strided_slice %3 {offsets = [10, 0], sizes = [1, 32], strides = [1, 1]} : vector<13x32xf32> to vector<1x32xf32>
    %206 = arith.truncf %202 : vector<70x32xf32> to vector<70x32xbf16>
    %cst_74 = arith.constant dense<0.000000e+00> : vector<70x32xf32>
    %207 = tpu.matmul %206, %204, %cst_74 {dimension_numbers = #tpu.dot_dimension_numbers<[1], [0], [0], [1], [0, 0, 1, 1], [], []>} : vector<70x32xbf16>, vector<32x32xbf16>, vector<70x32xf32> -> vector<70x32xf32>
    %208 = vector.broadcast %205 : vector<1x32xf32> to vector<70x32xf32>
    %209 = arith.addf %207, %208 : vector<70x32xf32>
    %210 = vector.shape_cast %209 : vector<70x32xf32> to vector<2x35x32xf32>
    %c0_75 = arith.constant 0 : index
    %c0_76 = arith.constant 0 : index
    %211 = vector.load %arg16[%c0_75, %c0_76] : memref<8x32xbf16, #tpu.memory_space<vmem>>, vector<8x32xbf16>
    %212 = vector.extract_strided_slice %0 {offsets = [3, 0, 0], sizes = [1, 32, 32], strides = [1, 1, 1]} : vector<7x32x32xbf16> to vector<1x32x32xbf16>
    %213 = vector.shape_cast %212 : vector<1x32x32xbf16> to vector<32x32xbf16>
    %214 = vector.extract_strided_slice %3 {offsets = [8, 0], sizes = [1, 32], strides = [1, 1]} : vector<13x32xf32> to vector<1x32xf32>
    %cst_77 = arith.constant dense<0.000000e+00> : vector<8x32xf32>
    %215 = tpu.matmul %211, %213, %cst_77 {dimension_numbers = #tpu.dot_dimension_numbers<[1], [0], [0], [1], [0, 0, 1, 1], [], []>} : vector<8x32xbf16>, vector<32x32xbf16>, vector<8x32xf32> -> vector<8x32xf32>
    %216 = vector.broadcast %214 : vector<1x32xf32> to vector<8x32xf32>
    %217 = arith.addf %215, %216 : vector<8x32xf32>
    %218 = vector.shape_cast %217 : vector<8x32xf32> to vector<1x8x32xf32>
    %219 = vector.shape_cast %218 : vector<1x8x32xf32> to vector<1x8x32xf32>
    %220 = vector.broadcast %219 : vector<1x8x32xf32> to vector<2x8x32xf32>
    %221 = arith.truncf %220 : vector<2x8x32xf32> to vector<2x8x32xbf16>
    %222 = arith.truncf %201 : vector<2x35x32xf32> to vector<2x35x32xbf16>
    %cst_78 = arith.constant dense<0.000000e+00> : vector<2x8x35xf32>
    %223 = tpu.matmul %221, %222, %cst_78 {dimension_numbers = #tpu.dot_dimension_numbers<[2], [2], [1], [1], [0, 0, 0, 1, 1, 1], [0], [0]>} : vector<2x8x32xbf16>, vector<2x35x32xbf16>, vector<2x8x35xf32> -> vector<2x8x35xf32>
    %cst_79 = arith.constant 0.176776692 : f32
    %224 = vector.broadcast %cst_79 : f32 to vector<2x8x35xf32>
    %225 = arith.mulf %223, %224 : vector<2x8x35xf32>
    %cst_80 = arith.constant dense<0xFF800000> : vector<2x8xf32>
    %226 = vector.multi_reduction <maximumf>, %225, %cst_80 [2] : vector<2x8x35xf32> to vector<2x8xf32>
    %227 = vector.shape_cast %226 : vector<2x8xf32> to vector<2x8x1xf32>
    %228 = vector.broadcast %227 : vector<2x8x1xf32> to vector<2x8x35xf32>
    %229 = arith.subf %225, %228 : vector<2x8x35xf32>
    %230 = math.exp %229 : vector<2x8x35xf32>
    %cst_81 = arith.constant dense<0.000000e+00> : vector<2x8xf32>
    %231 = vector.multi_reduction <add>, %230, %cst_81 [2] : vector<2x8x35xf32> to vector<2x8xf32>
    %232 = vector.shape_cast %231 : vector<2x8xf32> to vector<2x8x1xf32>
    %233 = arith.truncf %230 : vector<2x8x35xf32> to vector<2x8x35xbf16>
    %234 = arith.truncf %210 : vector<2x35x32xf32> to vector<2x35x32xbf16>
    %cst_82 = arith.constant dense<0.000000e+00> : vector<2x8x32xf32>
    %235 = tpu.matmul %233, %234, %cst_82 {dimension_numbers = #tpu.dot_dimension_numbers<[2], [1], [1], [2], [0, 0, 0, 1, 1, 2], [0], [0]>} : vector<2x8x35xbf16>, vector<2x35x32xbf16>, vector<2x8x32xf32> -> vector<2x8x32xf32>
    %236 = tpu.reciprocal %232 {approx = true} : vector<2x8x1xf32> -> vector<2x8x1xf32>
    %237 = vector.broadcast %236 : vector<2x8x1xf32> to vector<2x8x32xf32>
    %238 = arith.mulf %235, %237 : vector<2x8x32xf32>
    %239 = vector.shape_cast %238 : vector<2x8x32xf32> to vector<16x32xf32>
    %240 = vector.extract_strided_slice %0 {offsets = [6, 0, 0], sizes = [1, 32, 32], strides = [1, 1, 1]} : vector<7x32x32xbf16> to vector<1x32x32xbf16>
    %241 = vector.shape_cast %240 : vector<1x32x32xbf16> to vector<32x32xbf16>
    %242 = vector.extract_strided_slice %3 {offsets = [11, 0], sizes = [1, 32], strides = [1, 1]} : vector<13x32xf32> to vector<1x32xf32>
    %243 = arith.truncf %239 : vector<16x32xf32> to vector<16x32xbf16>
    %cst_83 = arith.constant dense<0.000000e+00> : vector<16x32xf32>
    %244 = tpu.matmul %243, %241, %cst_83 {dimension_numbers = #tpu.dot_dimension_numbers<[1], [0], [0], [1], [0, 0, 1, 1], [], []>} : vector<16x32xbf16>, vector<32x32xbf16>, vector<16x32xf32> -> vector<16x32xf32>
    %245 = vector.broadcast %242 : vector<1x32xf32> to vector<16x32xf32>
    %246 = arith.addf %244, %245 : vector<16x32xf32>
    %c0_84 = arith.constant 0 : index
    %c0_85 = arith.constant 0 : index
    %247 = vector.load %arg15[%c0_84, %c0_85] : memref<32x128xbf16, #tpu.memory_space<vmem>>, vector<32x128xbf16>
    %c0_86 = arith.constant 0 : index
    %c0_87 = arith.constant 0 : index
    %248 = vector.load %arg19[%c0_86, %c0_87] : memref<1x128xf32, #tpu.memory_space<vmem>>, vector<1x128xf32>
    %249 = arith.truncf %246 : vector<16x32xf32> to vector<16x32xbf16>
    %cst_88 = arith.constant dense<0.000000e+00> : vector<16x128xf32>
    %250 = tpu.matmul %249, %247, %cst_88 {dimension_numbers = #tpu.dot_dimension_numbers<[1], [0], [0], [1], [0, 0, 1, 1], [], []>} : vector<16x32xbf16>, vector<32x128xbf16>, vector<16x128xf32> -> vector<16x128xf32>
    %251 = vector.broadcast %248 : vector<1x128xf32> to vector<16x128xf32>
    %252 = arith.addf %250, %251 : vector<16x128xf32>
    %253 = vector.shape_cast %252 : vector<16x128xf32> to vector<2x8x128xf32>
    %c0_89 = arith.constant 0 : index
    %c0_90 = arith.constant 0 : index
    %c0_91 = arith.constant 0 : index
    %254 = vector.load %arg22[%c0_89, %c0_90, %c0_91] : memref<2x8x128xf32, #tpu.memory_space<vmem>>, vector<2x8x128xf32>
    tpu.vector_store %arg22[%c0_89, %c0_90, %c0_91], %253 {strides = array<i32>} : memref<2x8x128xf32, #tpu.memory_space<vmem>>, vector<2x8x128xf32>,
    return
  }
  func.func @transform_0(%arg0: i32) -> (i32, i32) {
    %c0_i32 = arith.constant 0 : i32
    %c0_i32_0 = arith.constant 0 : i32
    %c0_i32_1 = arith.constant 0 : i32
    return %c0_i32, %c0_i32_0 : i32, i32
  }
  func.func @transform_1(%arg0: i32) -> (i32, i32, i32) {
    %c0_i32 = arith.constant 0 : i32
    %c0_i32_0 = arith.constant 0 : i32
    %c0_i32_1 = arith.constant 0 : i32
    %c0_i32_2 = arith.constant 0 : i32
    return %c0_i32, %c0_i32_0, %c0_i32_1 : i32, i32, i32
  }
  func.func @transform_2(%arg0: i32) -> (i32, i32) {
    %c0_i32 = arith.constant 0 : i32
    %c0_i32_0 = arith.constant 0 : i32
    %c0_i32_1 = arith.constant 0 : i32
    return %c0_i32, %c0_i32_0 : i32, i32
  }
  func.func @transform_3(%arg0: i32) -> (i32, i32) {
    %c0_i32 = arith.constant 0 : i32
    %c0_i32_0 = arith.constant 0 : i32
    %c0_i32_1 = arith.constant 0 : i32
    return %c0_i32, %c0_i32_0 : i32, i32
  }
  func.func @transform_4(%arg0: i32) -> (i32, i32) {
    %c0_i32 = arith.constant 0 : i32
    %c0_i32_0 = arith.constant 0 : i32
    %c0_i32_1 = arith.constant 0 : i32
    return %c0_i32, %c0_i32_0 : i32, i32
  }
  func.func @transform_5(%arg0: i32) -> (i32, i32, i32) {
    %c0_i32 = arith.constant 0 : i32
    %c0_i32_0 = arith.constant 0 : i32
    %c0_i32_1 = arith.constant 0 : i32
    %c0_i32_2 = arith.constant 0 : i32
    return %c0_i32, %c0_i32_0, %c0_i32_1 : i32, i32, i32
  }
  func.func @transform_6(%arg0: i32) -> (i32, i32, i32) {
    %c0_i32 = arith.constant 0 : i32
    %c0_i32_0 = arith.constant 0 : i32
    %c0_i32_1 = arith.constant 0 : i32
    %c0_i32_2 = arith.constant 0 : i32
    return %c0_i32, %c0_i32_0, %c0_i32_1 : i32, i32, i32
  }
  func.func @transform_7(%arg0: i32) -> (i32, i32, i32) {
    %c0_i32 = arith.constant 0 : i32
    %c0_i32_0 = arith.constant 0 : i32
    %c0_i32_1 = arith.constant 0 : i32
    %c0_i32_2 = arith.constant 0 : i32
    return %c0_i32, %c0_i32_0, %c0_i32_1 : i32, i32, i32
  }
  func.func @transform_8(%arg0: i32) -> (i32, i32) {
    %c0_i32 = arith.constant 0 : i32
    %c0_i32_0 = arith.constant 0 : i32
    %c0_i32_1 = arith.constant 0 : i32
    return %c0_i32, %c0_i32_0 : i32, i32
  }
  func.func @transform_9(%arg0: i32) -> (i32, i32) {
    %c0_i32 = arith.constant 0 : i32
    %c0_i32_0 = arith.constant 0 : i32
    %c0_i32_1 = arith.constant 0 : i32
    return %c0_i32, %c0_i32_0 : i32, i32
  }
  func.func @transform_10(%arg0: i32) -> (i32, i32, i32) {
    %c0_i32 = arith.constant 0 : i32
    %c0_i32_0 = arith.constant 0 : i32
    %c0_i32_1 = arith.constant 0 : i32
    %c0_i32_2 = arith.constant 0 : i32
    return %c0_i32, %c0_i32_0, %c0_i32_1 : i32, i32, i32
  }
  func.func @transform_11(%arg0: i32) -> (i32, i32, i32) {
    %c0_i32 = arith.constant 0 : i32
    %c0_i32_0 = arith.constant 0 : i32
    %c0_i32_1 = arith.constant 0 : i32
    %c0_i32_2 = arith.constant 0 : i32
    return %c0_i32, %c0_i32_0, %c0_i32_1 : i32, i32, i32
  }
  func.func @transform_12(%arg0: i32) -> (i32, i32, i32) {
    %c0_i32 = arith.constant 0 : i32
    %c0_i32_0 = arith.constant 0 : i32
    %c0_i32_1 = arith.constant 0 : i32
    %c0_i32_2 = arith.constant 0 : i32
    return %c0_i32, %c0_i32_0, %c0_i32_1 : i32, i32, i32
  }
  func.func @transform_13(%arg0: i32) -> (i32, i32) {
    %c0_i32 = arith.constant 0 : i32
    %c0_i32_0 = arith.constant 0 : i32
    %c0_i32_1 = arith.constant 0 : i32
    return %c0_i32, %c0_i32_0 : i32, i32
  }
  func.func @transform_14(%arg0: i32) -> (i32, i32) {
    %c0_i32 = arith.constant 0 : i32
    %c0_i32_0 = arith.constant 0 : i32
    %c0_i32_1 = arith.constant 0 : i32
    return %c0_i32, %c0_i32_0 : i32, i32
  }
  func.func @transform_15(%arg0: i32) -> (i32, i32) {
    %c0_i32 = arith.constant 0 : i32
    %c0_i32_0 = arith.constant 0 : i32
    %c0_i32_1 = arith.constant 0 : i32
    return %c0_i32, %c0_i32_0 : i32, i32
  }
  func.func @transform_16(%arg0: i32) -> (i32, i32) {
    %c0_i32 = arith.constant 0 : i32
    %c0_i32_0 = arith.constant 0 : i32
    %c0_i32_1 = arith.constant 0 : i32
    return %c0_i32, %c0_i32_0 : i32, i32
  }
  func.func @transform_17(%arg0: i32) -> (i32, i32) {
    %c0_i32 = arith.constant 0 : i32
    %c0_i32_0 = arith.constant 0 : i32
    %c0_i32_1 = arith.constant 0 : i32
    return %c0_i32, %c0_i32_0 : i32, i32
  }
  func.func @transform_18(%arg0: i32) -> (i32, i32) {
    %c0_i32 = arith.constant 0 : i32
    %c0_i32_0 = arith.constant 0 : i32
    %c0_i32_1 = arith.constant 0 : i32
    return %c0_i32, %c0_i32_0 : i32, i32
  }
  func.func @transform_19(%arg0: i32) -> (i32, i32) {
    %c0_i32 = arith.constant 0 : i32
    %c0_i32_0 = arith.constant 0 : i32
    %c0_i32_1 = arith.constant 0 : i32
    return %c0_i32, %c0_i32_0 : i32, i32
  }
  func.func @transform_20(%arg0: i32) -> (i32, i32) {
    %c0_i32 = arith.constant 0 : i32
    %c0_i32_0 = arith.constant 0 : i32
    %c0_i32_1 = arith.constant 0 : i32
    return %c0_i32, %c0_i32_0 : i32, i32
  }
  func.func @transform_21(%arg0: i32) -> (i32, i32, i32) {
    %c0_i32 = arith.constant 0 : i32
    %c0_i32_0 = arith.constant 0 : i32
    %c0_i32_1 = arith.constant 0 : i32
    %c0_i32_2 = arith.constant 0 : i32
    return %c0_i32, %c0_i32_0, %c0_i32_1 : i32, i32, i32
  }
  func.func @transform_22(%arg0: i32) -> (i32, i32, i32) {
    %c0_i32 = arith.constant 0 : i32
    %c0_i32_0 = arith.constant 0 : i32
    %c0_i32_1 = arith.constant 0 : i32
    %c0_i32_2 = arith.constant 0 : i32
    return %c0_i32, %c0_i32_0, %c0_i32_1 : i32, i32, i32
  }
}

</mosaic_0001>

<bundles_post_ra>
// kernel: foam_forward.1
= control target key start
LH: loop header
LB: loop body
LE: loop exit
PB: predicated region body
PF: predicated region fallthrough
CT: control target
= control target key end

     0   :  { %vm137_vm0 = vcmask 1046528   ;;  %vm133_vm1 = vcmask 113664   ;;  %vm199_vm2 = vcmask 1040384   ;;  %vm202_vm3 = vcmask 1041408   ;;  %s3042_s28 = smov 2   ;;  %s3870_s10 = inlined_call_operand.vmem [shape: bf16[3,14,32], index: 10, kind: input, shape index: {}]   ;;  %s3871_s0 = inlined_call_operand.vmem [shape: bf16[2,14], index: 0, kind: input, shape index: {}]   ;;  %s3872_s1 = inlined_call_operand.vmem [shape: bf16[2,8,14], index: 1, kind: input, shape index: {}]   ;;  %s3873_s16 = inlined_call_operand.vmem [shape: f32[13,32], index: 16, kind: input, shape index: {}]   ;;  %s3874_s12 = inlined_call_operand.vmem [shape: bf16[3,32,64], index: 12, kind: input, shape index: {}]   ;;  %s3875_s19 = inlined_call_operand.vmem [shape: f32[64,32], index: 19, kind: input, shape index: {}]   ;;  %s3876_s11 = inlined_call_operand.vmem [shape: bf16[7,32,32], index: 11, kind: input, shape index: {}]   ;;  %s3877_s17 = inlined_call_operand.vmem [shape: f32[3,64], index: 17, kind: input, shape index: {}]   ;;  %s3878_s2 = inlined_call_operand.vmem [shape: f32[2,8], index: 2, kind: input, shape index: {}]   ;;  %s3879_s13 = inlined_call_operand.vmem [shape: bf16[64,32], index: 13, kind: input, shape index: {}]   ;;  %s3880_s9 = inlined_call_operand.vmem [shape: bf16[384,32], index: 9, kind: input, shape index: {}]   ;;  %s3881_s4 = inlined_call_operand.vmem [shape: f32[2,32], index: 4, kind: input, shape index: {}]   ;;  %s3882_s6 = inlined_call_operand.vmem [shape: bf16[2,48,8], index: 6, kind: input, shape index: {}]   ;;  %s3883_s3 = inlined_call_operand.vmem [shape: bf16[2,384], index: 3, kind: input, shape index: {}]   ;;  %s3884_s5 = inlined_call_operand.vmem [shape: bf16[2,32,48], index: 5, kind: input, shape index: {}]   ;;  %s3885_s7 = inlined_call_operand.vmem [shape: f32[2,1,8], index: 7, kind: input, shape index: {}]   ;;  %s3886_s8 = inlined_call_operand.vmem [shape: bf16[8,32], index: 8, kind: input, shape index: {}]   ;;  %s3887_s20 = inlined_call_operand.vmem [shape: f32[2,128], index: 20, kind: output, shape index: {0}]   ;;  %s3888_s22 = inlined_call_operand.vmem [shape: f32[2,16,32], index: 22, kind: output, shape index: {2}]   ;;  %s3889_s15 = inlined_call_operand.vmem [shape: bf16[8,32], index: 15, kind: input, shape index: {}]   ;;  %s3890_s18 = inlined_call_operand.vmem [shape: f32[1,128], index: 18, kind: input, shape index: {}]   ;;  %s3891_s14 = inlined_call_operand.vmem [shape: bf16[32,128], index: 14, kind: input, shape index: {}]   ;;  %s3892_s21 = inlined_call_operand.vmem [shape: f32[2,8,128], index: 21, kind: output, shape index: {1}]  }
   0x1   :  { %3899 = sst [smem:[#allocation2_spill]] %s3870_s10  ;;  %vm257_vm4 = vcmask 261120   ;;  %v3245_v62 = vld [vmem:[%s3877_s17] sm:$0x7]  ;;  %s3041_s17 = smov 96   ;;  %vm591_vm5 = vcmask 1044480  }
   0x2   :  { %3900 = sst [smem:[#allocation3_spill]] %s3871_s0  ;;  %v244_v63 = vperm.slane %v3245_v62, 0  ;;  %vm378_vm6 = vcmask 15360   ;;  %vm510_vm7 = vcmask 80896   ;;  %vm514_vm8 = vcmask 74752  }
   0x3   :  { %3901 = sst [smem:[#allocation4_spill]] %s3872_s1  ;;  %vm865_vm9 = vcmask 523264   ;;  %vm928_vm10 = vcmask 1041409   ;;  %vm1318_vm11 = vcmask 392192   ;;  %vm1358_vm12 = vcmask 1043456  }
   0x4   :  { %3902 = sst [smem:[#allocation5_spill]] %s3873_s16  ;;  %vm1351_vm13 = vcmask 64512   ;;  %vm1500_vm14 = vcmask 1042432   ;;  %vm2352_vm15 = vcmask 285696  }
   0x5   :  { %3903 = sst [smem:[#allocation6_spill]] %s3874_s12 }
   0x6   :  { %3904 = sst [smem:[#allocation7_spill]] %s3875_s19 }
   0x7   :  { %3905 = sst [smem:[#allocation8_spill]] %s3876_s11 }
   0x8   :  { %s3906_s29 = sld [smem:[#allocation2_spill]] }
   0x9   :  { %s3907_s25 = sld [smem:[#allocation3_spill]] }
   0xa   :  { %s3908_s27 = sld [smem:[#allocation4_spill]] }
   0xb   :  { %s3909_s30 = sld [smem:[#allocation5_spill]] }
   0xc   :  { %s3910_s23 = sld [smem:[#allocation6_spill]] }
   0xd   :  { %s3911_s26 = sld [smem:[#allocation7_spill]] }
   0xe   :  { %v2639_v0 = vld [vmem:[%s3906_s29] sm:$0xf]  ;;  %v2961_v1 = vld [vmem:[%s3906_s29] sm:$0x70]  ;;  %v2648_v2 = vld [vmem:[%s3906_s29 + $0x8] sm:$0xf] }
   0xf   :  { %v2640_v3 = vor.u32 %v2961_v1, %v2639_v0  ;;  %v2962_v4 = vld [vmem:[%s3906_s29 + $0x8] sm:$0x70]  ;;  %v126_v8 = vld [vmem:[%s3907_s25] sm:$0x1]  ;;  %s3912_s0 = sld [smem:[#allocation8_spill]] }
  0x10   :  { %v2649_v5 = vor.u32 %v2962_v4, %v2648_v2  ;;  %v2964_v9 = vld [vmem:[%s3908_s27] sm:$0xff] }
  0x11   :  { %v139_v6 = vsel %vm137_vm0, %v2640_v3, 0  ;;  %v3185_v10 = vld [vmem:[%s3909_s30] sm:$0xff] }
  0x12   :  { %148 = vmatpush.bf16.msra.mxu0 %v139_v6  ;;  %v171_v7 = vsel %vm137_vm0, %v2649_v5, 0  ;;  %v2956_v11 = vld [vmem:[%s3910_s23 + $0x8] sm:$0xff]  ;;  %v127_v12 = vperm.slane %v3185_v10, 0  ;;  %v156_v13 = vperm.slane %v3185_v10, 1  ;;  %v2955_v15 = vld [vmem:[%s3910_s23] sm:$0xff] }
  0x13   :  { %180 = vmatpush.bf16.msra.mxu1 %v171_v7  ;;  %270 = vmatpush.bf16.msra.mxu2 %v2956_v11  ;;  %v118_v18 = vld [vmem:[%s3911_s26] sm:$0xff]  ;;  %v120_v22 = vld [vmem:[%s3911_s26 + $0x10] sm:$0xff]  ;;  %v119_v23 = vld [vmem:[%s3911_s26 + $0x8] sm:$0xff] }
  0x15   :  { %2641 = vmatmul.msk.bf16.vlgmr.msra.gmra.mxu0 %vm133_vm1, %v126_v8  ;;  %v2942_v26 = vld [vmem:[%s3912_s0 + $0x8] sm:$0xff]  ;;  %v2941_v36 = vld [vmem:[%s3912_s0] sm:$0xff] }
  0x16   :  { %2650 = vmatmul.msk.bf16.vlgmr.msra.gmra.mxu1 %vm133_vm1, %v2964_v9  ;;  %350 = vmatpush.bf16.msra.mxu3 %v2942_v26 }
  0x17   :  { %271 = vmatpush.bf16.msra.mxu2 %v2955_v15 }
  0x1a   :  { %351 = vmatpush.bf16.msra.mxu3 %v2941_v36 }
  0x92   :  { %v150_v14 = vpop.f32.mrf.mxu0 }
  0x93   :  { %v151_v16 = vadd.f32 %v150_v14, %v127_v12  ;;  %v182_v17 = vpop.f32.mrf.mxu1 }
  0x94   :  { %v183_v19 = vadd.f32 %v182_v17, %v156_v13 }
  0x95   :  { %v188_v20 = vrot.slane %v151_v16, 1  ;;  %v189_v21 = vperm.slane %v151_v16, 0 }
  0x96   :  { %v3204_v24 = vrot.slane %v183_v19, 6 }
  0x97   :  { %v200_v25 = vsel %vm199_vm2, %v118_v18, %v189_v21  ;;  %v190_v29 = vperm.slane %v188_v20, 0 }
  0x98   :  { %v3212_v27 = vsel %vm202_vm3, %v200_v25, %v3204_v24  ;;  %v206_v28 = vadd.f32 %v3204_v24, %v120_v22 }
  0x99   :  { %v205_v30 = vadd.f32 %v3212_v27, %v119_v23  ;;  %v201_v38 = vsel %vm199_vm2, %v118_v18, %v190_v29  ;;  %v294_v49 = vrot.slane %v3212_v27, 2  ;;  %v295_v51 = vrot.slane %v3212_v27, 4 }
  0x9a   :  { %227 = vst [vmem:[#allocation1 + $0x20] ss:$4 sm:$0xff] %v206_v28  ;;  %v152_v31 = vpop.f32.mrf.mxu0  ;;  %v296_v52 = vrot.slane %v3212_v27, 6  ;;  %v325_v29 = vperm.slane %v3185_v10, 3 }
  0x9b   :  { %v214_v32 = vrot.slane %v205_v30, 4  ;;  %v215_v33 = vrot.slane %v205_v30, 6  ;;  %219 = vst [vmem:[#allocation1] ss:$4 sm:$0xff] %v205_v30  ;;  %v184_v34 = vpop.f32.mrf.mxu1  ;;  %v213_v35 = vrot.slane %v205_v30, 2 }
  0x9c   :  { %v185_v37 = vadd.f32 %v184_v34, %v156_v13 }
  0x9d   :  { %223 = vst [vmem:[#allocation1 + $0x2] ss:$4 sm:$0xff] %v214_v32 }
  0x9e   :  { %225 = vst [vmem:[#allocation1 + $0x3] ss:$4 sm:$0xff] %v215_v33  ;;  %v3220_v39 = vrot.slane %v185_v37, 6 }
  0x9f   :  { %221 = vst [vmem:[#allocation1 + $0x1] ss:$4 sm:$0xff] %v213_v35 }
  0xa0   :  { %v3224_v40 = vsel %vm202_vm3, %v201_v38, %v3220_v39  ;;  %v208_v45 = vadd.f32 %v3220_v39, %v120_v22 }
  0xa1   :  { %v207_v41 = vadd.f32 %v3224_v40, %v119_v23  ;;  %v297_v53 = vrot.slane %v3224_v40, 2  ;;  %v298_v54 = vrot.slane %v3224_v40, 4  ;;  %v299_v55 = vrot.slane %v3224_v40, 6 }
  0xa3   :  { %v216_v42 = vrot.slane %v207_v41, 2  ;;  %v217_v43 = vrot.slane %v207_v41, 4  ;;  %v218_v44 = vrot.slane %v207_v41, 6  ;;  %229 = vst [vmem:[#allocation1 + $0x21] ss:$4 sm:$0xff] %v207_v41 }
  0xa5   :  { %231 = vst [vmem:[#allocation1 + $0x22] ss:$4 sm:$0xff] %v216_v42 }
  0xa6   :  { %233 = vst [vmem:[#allocation1 + $0x23] ss:$4 sm:$0xff] %v217_v43  ;;  %v234_v46 = vld.sshfl [vmem:[#allocation1] sm:$0xff pattern:$0x73625140] }
  0xa7   :  { %236 = vst [vmem:[#allocation1] ss:$4 sm:$0xff] %v218_v44 }
  0xa8   :  { %237 = vst [vmem:[#allocation1 + $0x1] ss:$4 sm:$0xff] %v208_v45 }
  0xad   :  { %v235_v47 = vld.sshfl [vmem:[#allocation1 + $0x20] sm:$0xff pattern:$0x73625140] }
  0xae   :  { %308 = vst [vmem:[#allocation1 + $0x20] ss:$4 sm:$0xff] %v3204_v24  ;;  %v242_v48 = vpack.c.bf16 %v235_v47, %v234_v46 }
  0xaf   :  { %v238_v50 = vld.sshfl [vmem:[#allocation1] sm:$0xff pattern:$0x73625140]  ;;  %310 = vst [vmem:[#allocation1 + $0x21] ss:$4 sm:$0xff] %v3224_v40 }
  0xb0   :  { %300 = vst [vmem:[#allocation1] ss:$4 sm:$0xff] %v3212_v27  ;;  %2659 = vmatmul.msk.bf16.vlgmr.msra.gmra.mxu2 %vm257_vm4, %v242_v48  ;;  %v243_v59 = vpack.c.bf16 %v238_v50, %v238_v50 }
  0xb1   :  { %302 = vst [vmem:[#allocation1 + $0x1] ss:$4 sm:$0xff] %v294_v49 }
  0xb2   :  { %304 = vst [vmem:[#allocation1 + $0x2] ss:$4 sm:$0xff] %v295_v51 }
  0xb3   :  { %306 = vst [vmem:[#allocation1 + $0x3] ss:$4 sm:$0xff] %v296_v52 }
  0xb4   :  { %312 = vst [vmem:[#allocation1 + $0x22] ss:$4 sm:$0xff] %v297_v53 }
  0xb5   :  { %314 = vst [vmem:[#allocation1 + $0x23] ss:$4 sm:$0xff] %v298_v54  ;;  %v372_v54 = vld [vmem:[%s3878_s2] sm:$0x3] }
  0xba   :  { %v315_v56 = vld.sshfl [vmem:[#allocation1] sm:$0xff pattern:$0x73625140] }
  0xbb   :  { %317 = vst [vmem:[#allocation1] ss:$4 sm:$0xff] %v299_v55  ;;  %v373_v55 = vmul.f32 -1e+09, %v372_v54 }
  0xbc   :  { %v316_v57 = vld.sshfl [vmem:[#allocation1 + $0x20] sm:$0xff pattern:$0x73625140]  ;;  %318 = vst [vmem:[#allocation1 + $0x1] ss:$4 sm:$0xff] %v3220_v39 }
  0xbd   :  { %v323_v58 = vpack.c.bf16 %v316_v57, %v315_v56  ;;  %375 = vrot.lane.b32.xlu1 %v373_v55, %s3042_s28 }
  0xbf   :  { %2669 = vmatmul.msk.bf16.vlgmr.msra.gmra.mxu3 %vm257_vm4, %v323_v58 }
  0xc0   :  { %2660 = vmatmul.msk.bf16.gmra.mxu2 %vm257_vm4, %v243_v59 }
  0xc3   :  { %v319_v60 = vld.sshfl [vmem:[#allocation1] sm:$0xff pattern:$0x73625140] }
  0xc4   :  { %v324_v61 = vpack.c.bf16 %v319_v60, %v319_v60 }
  0xcf   :  { %2670 = vmatmul.msk.bf16.gmra.mxu3 %vm257_vm4, %v324_v61 }
 0x133   :  { %v273_v0 = vpop.f32.mrf.mxu2 }
 0x134   :  { %v274_v1 = vadd.f32 %v273_v0, %v244_v63 }
 0x136   :  { %v285_v2 = vrot.slane %v274_v1, 2  ;;  %v286_v3 = vrot.slane %v274_v1, 4  ;;  %v287_v4 = vrot.slane %v274_v1, 6  ;;  %382 = vst [vmem:[#allocation1] ss:$4 sm:$0xff] %v274_v1 }
 0x138   :  { %384 = vst [vmem:[#allocation1 + $0x1] ss:$4 sm:$0xff] %v285_v2 }
 0x139   :  { %386 = vst [vmem:[#allocation1 + $0x2] ss:$4 sm:$0xff] %v286_v3 }
 0x13a   :  { %388 = vst [vmem:[#allocation1 + $0x3] ss:$4 sm:$0xff] %v287_v4 }
 0x13b   :  { %v275_v5 = vpop.f32.mrf.mxu2 }
 0x13c   :  { %v276_v6 = vadd.f32 %v275_v5, %v244_v63 }
 0x13e   :  { %v288_v7 = vrot.slane %v276_v6, 2  ;;  %390 = vst [vmem:[#allocation1 + $0x20] ss:$4 sm:$0xff] %v276_v6  ;;  %v289_v8 = vrot.slane %v276_v6, 4  ;;  %v290_v9 = vrot.slane %v276_v6, 6 }
 0x141   :  { %v3248_v11 = vld.sshfl [vmem:[#allocation1] sm:$0xff pattern:$0x73625140] }
 0x142   :  { %393 = vst [vmem:[#allocation1] ss:$4 sm:$0xff] %v288_v7  ;;  %v353_v12 = vpop.f32.mrf.mxu3 }
 0x143   :  { %394 = vst [vmem:[#allocation1 + $0x1] ss:$4 sm:$0xff] %v289_v8  ;;  %v278_v13 = vpop.f32.mrf.mxu2  ;;  %v354_v33 = vadd.f32 %v353_v12, %v325_v29 }
 0x144   :  { %395 = vst [vmem:[#allocation1 + $0x2] ss:$4 sm:$0xff] %v290_v9  ;;  %v279_v14 = vadd.f32 %v278_v13, %v244_v63 }
 0x145   :  { %v3250_v16 = vld.sshfl [vmem:[#allocation1 + $0x20] sm:$0xff pattern:$0x73625140]  ;;  %v365_v34 = vrot.slane %v354_v33, 2  ;;  %v366_v36 = vrot.slane %v354_v33, 4  ;;  %v367_v41 = vrot.slane %v354_v33, 6 }
 0x146   :  { %v291_v15 = vrot.slane %v279_v14, 2  ;;  %396 = vst [vmem:[#allocation1 + $0x3] ss:$4 sm:$0xff] %v279_v14  ;;  %v405_v63 = vpack.c.bf16 %v3250_v16, %v3250_v16 }
 0x148   :  { %397 = vst [vmem:[#allocation1 + $0x20] ss:$4 sm:$0xff] %v291_v15 }
 0x14a   :  { %v355_v17 = vpop.f32.mrf.mxu3 }
 0x14b   :  { %v280_v18 = vpop.f32.mrf.mxu2  ;;  %v356_v43 = vadd.f32 %v355_v17, %v325_v29 }
 0x14d   :  { %v3252_v19 = vld.sshfl [vmem:[#allocation1] sm:$0xff pattern:$0x73625140]  ;;  %v368_v47 = vrot.slane %v356_v43, 2  ;;  %v369_v50 = vrot.slane %v356_v43, 4  ;;  %v370_v51 = vrot.slane %v356_v43, 6 }
 0x14e   :  { %408 = vst [vmem:[#allocation1] ss:$4 sm:$0xff] %v274_v1  ;;  %v406_v17 = vpack.c.bf16 %v3252_v19, %v3252_v19 }
 0x14f   :  { %v3254_v20 = vld.sshfl [vmem:[#allocation1 + $0x20] sm:$0xff pattern:$0x73625140]  ;;  %410 = vst [vmem:[#allocation1 + $0x1] ss:$4 sm:$0xff] %v285_v2 }
 0x150   :  { %412 = vst [vmem:[#allocation1 + $0x2] ss:$4 sm:$0xff] %v286_v3  ;;  %v404_v3 = vpack.c.bf16 %v3248_v11, %v3248_v11 }
 0x151   :  { %414 = vst [vmem:[#allocation1 + $0x3] ss:$4 sm:$0xff] %v287_v4 }
 0x152   :  { %416 = vst [vmem:[#allocation1 + $0x20] ss:$4 sm:$0xff] %v276_v6  ;;  %v358_v21 = vpop.f32.mrf.mxu3  ;;  %v437_v6 = vunpack.c.l.b16 %v405_v63 }
 0x153   :  { %v359_v48 = vadd.f32 %v358_v21, %v325_v29 }
 0x155   :  { %v371_v53 = vrot.slane %v359_v48, 2 }
 0x158   :  { %v417_v22 = vld.sshfl [vmem:[#allocation1] sm:$0xff pattern:$0x73625140] }
 0x159   :  { %v418_v23 = vld.sshfl [vmem:[#allocation1 + $0x20] sm:$0xff pattern:$0x73625140]  ;;  %419 = vst [vmem:[#allocation1] ss:$4 sm:$0xff] %v288_v7  ;;  %v430_v25 = vpack.c.bf16 %v417_v22, %v417_v22  ;;  %v468_v22 = vunpack.c.l.b16 %v406_v17 }
 0x15a   :  { %420 = vst [vmem:[#allocation1 + $0x1] ss:$4 sm:$0xff] %v289_v8  ;;  %v360_v26 = vpop.f32.mrf.mxu3  ;;  %v431_v28 = vpack.c.bf16 %v418_v23, %v418_v23  ;;  %v436_v8 = vunpack.c.l.b16 %v404_v3 }
 0x15b   :  { %421 = vst [vmem:[#allocation1 + $0x2] ss:$4 sm:$0xff] %v290_v9  ;;  %v441_v30 = vunpack.c.l.b16 %v430_v25  ;;  %v376_v25 = vpop.permute.xlu1 %375 }
 0x15c   :  { %422 = vst [vmem:[#allocation1 + $0x3] ss:$4 sm:$0xff] %v279_v14  ;;  %v442_v31 = vunpack.c.l.b16 %v431_v28  ;;  %v438_v12 = vpack.c.b16 %v437_v6, %v436_v8  ;;  %v379_v26 = vsel %vm378_vm6, 0.0, %v376_v25 }
 0x15d   :  { %423 = vst [vmem:[#allocation1 + $0x20] ss:$4 sm:$0xff] %v291_v15  ;;  %v407_v15 = vpack.c.bf16 %v3254_v20, %v3254_v20  ;;  %v502_v28 = vperm.slane %v379_v26, 0 }
 0x15e   :  { %v443_v32 = vpack.c.b16 %v442_v31, %v441_v30 }
 0x15f   :  { %v469_v21 = vunpack.c.l.b16 %v407_v15 }
 0x160   :  { %444 = vrot.lane.b32.xlu0 %v443_v32, %s3041_s17  ;;  %v381_v32 = vrot.slane %v379_v26, 1 }
 0x161   :  { %v470_v23 = vpack.c.b16 %v469_v21, %v468_v22 }
 0x163   :  { %v424_v35 = vld.sshfl [vmem:[#allocation1] sm:$0xff pattern:$0x73625140] }
 0x164   :  { %v425_v37 = vld.sshfl [vmem:[#allocation1 + $0x20] sm:$0xff pattern:$0x73625140]  ;;  %552 = vst [vmem:[#allocation1] ss:$4 sm:$0xff] %v354_v33  ;;  %v432_v38 = vpack.c.bf16 %v424_v35, %v424_v35 }
 0x165   :  { %554 = vst [vmem:[#allocation1 + $0x1] ss:$4 sm:$0xff] %v365_v34  ;;  %v433_v42 = vpack.c.bf16 %v425_v37, %v425_v37 }
 0x166   :  { %556 = vst [vmem:[#allocation1 + $0x2] ss:$4 sm:$0xff] %v366_v36  ;;  %v473_v44 = vunpack.c.l.b16 %v432_v38  ;;  %v503_v36 = vperm.slane %v381_v32, 0 }
 0x167   :  { %558 = vst [vmem:[#allocation1 + $0x3] ss:$4 sm:$0xff] %v367_v41  ;;  %v474_v45 = vunpack.c.l.b16 %v433_v42 }
 0x168   :  { %560 = vst [vmem:[#allocation1 + $0x20] ss:$4 sm:$0xff] %v356_v43 }
 0x169   :  { %v475_v46 = vpack.c.b16 %v474_v45, %v473_v44 }
 0x16b   :  { %476 = vrot.lane.b32.xlu0 %v475_v46, %s3041_s17 }
 0x16e   :  { %v561_v49 = vld.sshfl [vmem:[#allocation1] sm:$0xff pattern:$0x73625140] }
 0x16f   :  { %563 = vst [vmem:[#allocation1] ss:$4 sm:$0xff] %v368_v47  ;;  %v562_v52 = vld.sshfl [vmem:[#allocation1 + $0x20] sm:$0xff pattern:$0x73625140]  ;;  %v574_v57 = vpack.c.bf16 %v561_v49, %v561_v49 }
 0x170   :  { %564 = vst [vmem:[#allocation1 + $0x1] ss:$4 sm:$0xff] %v369_v50  ;;  %v575_v56 = vpack.c.bf16 %v562_v52, %v562_v52 }
 0x171   :  { %565 = vst [vmem:[#allocation1 + $0x2] ss:$4 sm:$0xff] %v370_v51  ;;  %v585_v59 = vunpack.c.l.b16 %v574_v57 }
 0x172   :  { %566 = vst [vmem:[#allocation1 + $0x3] ss:$4 sm:$0xff] %v359_v48  ;;  %v586_v58 = vunpack.c.l.b16 %v575_v56 }
 0x173   :  { %567 = vst [vmem:[#allocation1 + $0x20] ss:$4 sm:$0xff] %v371_v53 }
 0x174   :  { %v587_v61 = vpack.c.b16 %v586_v58, %v585_v59 }
 0x176   :  { %v593_v5 = vsel %vm591_vm5, %v587_v61, 0 }
 0x179   :  { %v568_v0 = vld.sshfl [vmem:[#allocation1] sm:$0xff pattern:$0x73625140] }
 0x17a   :  { %v569_v60 = vld.sshfl [vmem:[#allocation1 + $0x20] sm:$0xff pattern:$0x73625140]  ;;  %v576_v7 = vpack.c.bf16 %v568_v0, %v568_v0 }
 0x17b   :  { %v577_v4 = vpack.c.bf16 %v569_v60, %v569_v60 }
 0x17c   :  { %v616_v13 = vunpack.c.l.b16 %v576_v7 }
 0x17d   :  { %v617_v9 = vunpack.c.l.b16 %v577_v4 }
 0x17f   :  { %v618_v14 = vpack.c.b16 %v617_v9, %v616_v13 }
 0x181   :  { %v623_v18 = vsel %vm591_vm5, %v618_v14, 0 }
 0x1d2   :  { %v445_v1 = vpop.permute.xlu0 %444 }
 0x1d3   :  { %v450_v2 = vsel %vm257_vm4, %v445_v1, 0 }
 0x1d4   :  { %459 = vmatpush.bf16.xpose.msrb.mxu0 %v450_v2 }
 0x1db   :  { %2671 = vmatmul.msk.bf16.vlgmr.msrb.gmra.mxu0 %vm257_vm4, %v438_v12 }
 0x1dc   :  { %602 = vmatpush.bf16.msra.mxu0 %v593_v5 }
 0x1dd   :  { %v477_v16 = vpop.permute.xlu0 %476 }
 0x1de   :  { %v482_v11 = vsel %vm257_vm4, %v477_v16, 0  ;;  %v2944_v16 = vld [vmem:[%s3912_s0 + $0x18] sm:$0xff] }
 0x1df   :  { %491 = vmatpush.bf16.xpose.msrb.mxu1 %v482_v11  ;;  %707 = vmatpush.bf16.msrb.mxu2 %v2944_v16 }
 0x1e6   :  { %2672 = vmatmul.msk.bf16.vlgmr.msrb.gmra.mxu1 %vm257_vm4, %v470_v23 }
 0x1e7   :  { %632 = vmatpush.bf16.msra.mxu1 %v623_v18  ;;  %v2943_v18 = vld [vmem:[%s3912_s0 + $0x10] sm:$0xff] }
 0x1e8   :  { %708 = vmatpush.bf16.msrb.mxu2 %v2943_v18 }
 0x258   :  { %v461_v20 = vpop.f32.mrf.mxu0 }
 0x259   :  { %v498_v29 = vmul.f32 0.17677669, %v461_v20 }
 0x25b   :  { %v506_v30 = vadd.f32 %v502_v28, %v498_v29 }
 0x25d   :  { %v511_v31 = vsel %vm510_vm7, %v506_v30, -inf }
 0x25e   :  { %512 = vmax.xlane.f32.xlu1 %v511_v31 }
 0x260   :  { %v463_v19 = vpop.f32.mrf.mxu0 }
 0x261   :  { %v499_v33 = vmul.f32 0.17677669, %v463_v19 }
 0x263   :  { %v493_v34 = vpop.f32.mrf.mxu1  ;;  %v507_v35 = vadd.f32 %v502_v28, %v499_v33 }
 0x264   :  { %v500_v37 = vmul.f32 0.17677669, %v493_v34 }
 0x265   :  { %v515_v38 = vsel %vm514_vm8, %v507_v35, -inf }
 0x266   :  { %516 = vmax.xlane.f32.xlu2 %v515_v38  ;;  %v508_v41 = vadd.f32 %v503_v36, %v500_v37 }
 0x268   :  { %v518_v44 = vsel %vm510_vm7, %v508_v41, -inf }
 0x26b   :  { %v495_v42 = vpop.f32.mrf.mxu1 }
 0x26c   :  { %v501_v43 = vmul.f32 0.17677669, %v495_v42 }
 0x26e   :  { %519 = vmax.xlane.f32.xlu2 %v518_v44  ;;  %v509_v45 = vadd.f32 %v503_v36, %v501_v43 }
 0x270   :  { %v521_v46 = vsel %vm514_vm8, %v509_v45, -inf }
 0x271   :  { %522 = vmax.xlane.f32.xlu0 %v521_v46 }
 0x2d1   :  { %v513_v47 = vpop.xlane.xlu1 %512 }
 0x2d2   :  { %v524_v48 = vsub.f32 %v506_v30, %v513_v47 }
 0x2d4   :  { %v528_v49 = vmul.f32 1.442695, %v524_v48  ;;  %v682_v48 = vperm.slane %v3185_v10, 4 }
 0x2d6   :  { %3012 = vpow2.f32 %v528_v49 }
 0x2d9   :  { %v517_v50 = vpop.xlane.xlu2 %516 }
 0x2da   :  { %v525_v51 = vsub.f32 %v507_v35, %v517_v50 }
 0x2dc   :  { %v3013_v52 = vpop.eup %3012  ;;  %v530_v53 = vmul.f32 1.442695, %v525_v51 }
 0x2dd   :  { %v536_v54 = vsel %vm510_vm7, %v3013_v52, 0.0  ;;  %v548_v57 = vpack.c.bf16 %v3013_v52, %v3013_v52 }
 0x2de   :  { %3014 = vpow2.f32 %v530_v53  ;;  %537 = vadd.xlane.f32.xlu2 %v536_v54  ;;  %v2958_v54 = vld [vmem:[%s3910_s23 + $0x18] sm:$0xff] }
 0x2df   :  { %v580_v0 = vunpack.c.l.b16 %v548_v57  ;;  %815 = vmatpush.bf16.msrb.mxu3 %v2958_v54  ;;  %v2957_v57 = vld [vmem:[%s3910_s23 + $0x10] sm:$0xff] }
 0x2e0   :  { %v2971_v54 = vld [vmem:[%s3880_s9 + $0x10] sm:$0xff] }
 0x2e1   :  { %v520_v55 = vpop.xlane.xlu2 %519 }
 0x2e2   :  { %v526_v56 = vsub.f32 %v508_v41, %v520_v55 }
 0x2e3   :  { %816 = vmatpush.bf16.msrb.mxu3 %v2957_v57  ;;  %v840_v57 = vperm.slane %v3185_v10, 5  ;;  %v2960_v10 = vld [vmem:[%s3910_s23 + $0x28] sm:$0xff] }
 0x2e4   :  { %v3015_v58 = vpop.eup %3014  ;;  %v532_v59 = vmul.f32 1.442695, %v526_v56  ;;  %v523_v60 = vpop.xlane.xlu0 %522  ;;  %952 = vmatpush.bf16.msrb.mxu1 %v2960_v10 }
 0x2e5   :  { %v549_v61 = vpack.c.bf16 %v3015_v58, %v3015_v58  ;;  %v527_v63 = vsub.f32 %v509_v45, %v523_v60  ;;  %v539_v14 = vsel %vm514_vm8, %v3015_v58, 0.0 }
 0x2e6   :  { %3016 = vpow2.f32 %v532_v59 }
 0x2e7   :  { %v581_v1 = vunpack.c.l.b16 %v549_v61  ;;  %v534_v2 = vmul.f32 1.442695, %v527_v63 }
 0x2e9   :  { %v582_v3 = vpack.c.b16 %v581_v1, %v580_v0  ;;  %3018 = vpow2.f32 %v534_v2 }
 0x2eb   :  { %2673 = vmatmul.msk.bf16.vlgmr.msra.gmra.mxu0 %vm510_vm7, %v582_v3 }
 0x2ec   :  { %v3017_v4 = vpop.eup %3016 }
 0x2ed   :  { %v550_v5 = vpack.c.bf16 %v3017_v4, %v3017_v4  ;;  %v542_v6 = vsel %vm510_vm7, %v3017_v4, 0.0 }
 0x2ee   :  { %543 = vadd.xlane.f32.xlu2 %v542_v6 }
 0x2ef   :  { %v3019_v7 = vpop.eup %3018  ;;  %v611_v8 = vunpack.c.l.b16 %v550_v5 }
 0x2f0   :  { %v551_v9 = vpack.c.bf16 %v3019_v7, %v3019_v7  ;;  %v545_v15 = vsel %vm514_vm8, %v3019_v7, 0.0 }
 0x2f2   :  { %v612_v12 = vunpack.c.l.b16 %v551_v9 }
 0x2f4   :  { %v613_v13 = vpack.c.b16 %v612_v12, %v611_v8 }
 0x2f6   :  { %2674 = vmatmul.msk.bf16.vlgmr.msra.gmra.mxu1 %vm510_vm7, %v613_v13  ;;  %540 = vadd.xlane.f32.xlu2 %v539_v14 }
 0x2fe   :  { %546 = vadd.xlane.f32.xlu2 %v545_v15 }
 0x351   :  { %v538_v11 = vpop.xlane.xlu2 %537 }
 0x352   :  { %3020 = vrcp.f32 %v538_v11 }
 0x358   :  { %v3021_v21 = vpop.eup %3020 }
 0x361   :  { %v544_v17 = vpop.xlane.xlu2 %543 }
 0x368   :  { %v604_v22 = vpop.f32.mrf.mxu0 }
 0x369   :  { %v643_v23 = vmul.f32 %v3021_v21, %v604_v22  ;;  %v541_v25 = vpop.xlane.xlu2 %540  ;;  %v2968_v21 = vld [vmem:[%s3879_s13 + $0x18] sm:$0xff]  ;;  %v2966_v22 = vld [vmem:[%s3879_s13 + $0x8] sm:$0xff] }
 0x36a   :  { %3022 = vrcp.f32 %v541_v25  ;;  %876 = vmatpush.bf16.msrb.mxu0 %v2968_v21 }
 0x36b   :  { %v651_v26 = vrot.slane %v643_v23, 2  ;;  %v652_v28 = vrot.slane %v643_v23, 4  ;;  %v653_v20 = vrot.slane %v643_v23, 6  ;;  %657 = vst [vmem:[#allocation1] ss:$4 sm:$0xff] %v643_v23  ;;  %3024 = vrcp.f32 %v544_v17  ;;  %v2965_v23 = vld [vmem:[%s3879_s13] sm:$0xff] }
 0x36d   :  { %659 = vst [vmem:[#allocation1 + $0x1] ss:$4 sm:$0xff] %v651_v26  ;;  %v790_v26 = vperm.slane %v3245_v62, 1 }
 0x36e   :  { %661 = vst [vmem:[#allocation1 + $0x2] ss:$4 sm:$0xff] %v652_v28 }
 0x36f   :  { %663 = vst [vmem:[#allocation1 + $0x3] ss:$4 sm:$0xff] %v653_v20 }
 0x370   :  { %v3023_v29 = vpop.eup %3022  ;;  %v606_v30 = vpop.f32.mrf.mxu0 }
 0x371   :  { %v644_v31 = vmul.f32 %v3023_v29, %v606_v30  ;;  %v547_v19 = vpop.xlane.xlu2 %546  ;;  %v3025_v32 = vpop.eup %3024 }
 0x372   :  { %3026 = vrcp.f32 %v547_v19 }
 0x373   :  { %665 = vst [vmem:[#allocation1 + $0x20] ss:$4 sm:$0xff] %v644_v31  ;;  %v634_v33 = vpop.f32.mrf.mxu1 }
 0x374   :  { %v645_v34 = vmul.f32 %v3025_v32, %v634_v33 }
 0x376   :  { %v654_v35 = vrot.slane %v645_v34, 2  ;;  %v655_v36 = vrot.slane %v645_v34, 4  ;;  %v656_v37 = vrot.slane %v645_v34, 6  ;;  %v672_v38 = vld.sshfl [vmem:[#allocation1] sm:$0xff pattern:$0x73625140] }
 0x377   :  { %667 = vst [vmem:[#allocation1 + $0x21] ss:$4 sm:$0xff] %v645_v34 }
 0x378   :  { %669 = vst [vmem:[#allocation1 + $0x22] ss:$4 sm:$0xff] %v654_v35  ;;  %v3027_v41 = vpop.eup %3026 }
 0x379   :  { %671 = vst [vmem:[#allocation1 + $0x23] ss:$4 sm:$0xff] %v655_v36 }
 0x37a   :  { %674 = vst [vmem:[#allocation1] ss:$4 sm:$0xff] %v656_v37  ;;  %v2976_v37 = vld [vmem:[%s3880_s9 + $0x38] sm:$0xff] }
 0x37b   :  { %v636_v42 = vpop.f32.mrf.mxu1  ;;  %1207 = vmatpush.bf16.msra.mxu2 %v2976_v37  ;;  %v2997_v37 = vld [vmem:[%s3882_s6 + $0x20] sm:$0xff] }
 0x37c   :  { %v646_v43 = vmul.f32 %v3027_v41, %v636_v42  ;;  %v2992_v41 = vld [vmem:[%s3880_s9 + $0xb8] sm:$0xff]  ;;  %v2975_v42 = vld [vmem:[%s3880_s9 + $0x30] sm:$0xff] }
 0x37e   :  { %675 = vst [vmem:[#allocation1 + $0x1] ss:$4 sm:$0xff] %v646_v43  ;;  %v2983_v43 = vld [vmem:[%s3880_s9 + $0x70] sm:$0xff] }
 0x37f   :  { %1208 = vmatpush.bf16.msra.mxu2 %v2975_v42  ;;  %v922_v42 = vperm.slane %v3245_v62, 2 }
 0x380   :  { %v673_v44 = vld.sshfl [vmem:[#allocation1 + $0x20] sm:$0xff pattern:$0x73625140] }
 0x381   :  { %v680_v45 = vpack.c.bf16 %v673_v44, %v672_v38  ;;  %v2984_v38 = vld [vmem:[%s3880_s9 + $0x78] sm:$0xff]  ;;  %v2991_v44 = vld [vmem:[%s3880_s9 + $0xb0] sm:$0xff] }
 0x382   :  { %1220 = vmatpush.bf16.msra.mxu3 %v2984_v38  ;;  %v2996_v38 = vld [vmem:[%s3882_s6 + $0x18] sm:$0xff] }
 0x383   :  { %2683 = vmatmul.msk.bf16.vlgmr.msrb.gmra.mxu2 %vm257_vm4, %v680_v45  ;;  %v2974_v45 = vld [vmem:[%s3880_s9 + $0x28] sm:$0xff] }
 0x384   :  { %1209 = vmatpush.bf16.msra.mxu2 %v2974_v45  ;;  %v3456_v45 = vld [vmem:[%s3909_s30] sm:$0xff] }
 0x385   :  { %v676_v46 = vld.sshfl [vmem:[#allocation1] sm:$0xff pattern:$0x73625140] }
 0x386   :  { %v681_v47 = vpack.c.bf16 %v676_v46, %v676_v46  ;;  %1221 = vmatpush.bf16.msra.mxu3 %v2983_v43  ;;  %v2982_v46 = vld [vmem:[%s3880_s9 + $0x68] sm:$0xff] }
 0x38a   :  { %1222 = vmatpush.bf16.msra.mxu3 %v2982_v46  ;;  %v1054_v46 = vperm.slane %v3456_v45, 7 }
 0x393   :  { %2684 = vmatmul.msk.bf16.gmra.mxu2 %vm257_vm4, %v681_v47  ;;  %v2990_v47 = vld [vmem:[%s3880_s9 + $0xa8] sm:$0xff] }
 0x406   :  { %v710_v49 = vpop.f32.mrf.mxu2 }
 0x407   :  { %v711_v50 = vadd.f32 %v710_v49, %v682_v48  ;;  %v2981_v49 = vld [vmem:[%s3880_s9 + $0x60] sm:$0xff] }
 0x408   :  { %1223 = vmatpush.bf16.msra.mxu3 %v2981_v49 }
 0x409   :  { %v722_v51 = vrot.slane %v711_v50, 2  ;;  %v723_v52 = vrot.slane %v711_v50, 4  ;;  %v724_v53 = vrot.slane %v711_v50, 6  ;;  %729 = vst [vmem:[#allocation1] ss:$4 sm:$0xff] %v711_v50  ;;  %v2989_v50 = vld [vmem:[%s3880_s9 + $0xa0] sm:$0xff] }
 0x40b   :  { %731 = vst [vmem:[#allocation1 + $0x1] ss:$4 sm:$0xff] %v722_v51  ;;  %v2972_v51 = vld [vmem:[%s3880_s9 + $0x18] sm:$0xff] }
 0x40c   :  { %733 = vst [vmem:[#allocation1 + $0x2] ss:$4 sm:$0xff] %v723_v52  ;;  %v2980_v52 = vld [vmem:[%s3880_s9 + $0x58] sm:$0xff] }
 0x40d   :  { %735 = vst [vmem:[#allocation1 + $0x3] ss:$4 sm:$0xff] %v724_v53  ;;  %v2988_v53 = vld [vmem:[%s3880_s9 + $0x98] sm:$0xff]  ;;  %1224 = vmatpush.bf16.msra.mxu3 %v2980_v52 }
 0x40e   :  { %v712_v55 = vpop.f32.mrf.mxu2 }
 0x40f   :  { %v713_v56 = vadd.f32 %v712_v55, %v682_v48  ;;  %v2979_v55 = vld [vmem:[%s3880_s9 + $0x50] sm:$0xff] }
 0x411   :  { %v725_v58 = vrot.slane %v713_v56, 2  ;;  %737 = vst [vmem:[#allocation1 + $0x20] ss:$4 sm:$0xff] %v713_v56  ;;  %v726_v59 = vrot.slane %v713_v56, 4  ;;  %v727_v60 = vrot.slane %v713_v56, 6  ;;  %v2987_v56 = vld [vmem:[%s3880_s9 + $0x90] sm:$0xff]  ;;  %1225 = vmatpush.bf16.msra.mxu3 %v2979_v55 }
 0x414   :  { %v738_v61 = vld.sshfl [vmem:[#allocation1] sm:$0xff pattern:$0x73625140] }
 0x415   :  { %740 = vst [vmem:[#allocation1] ss:$4 sm:$0xff] %v725_v58  ;;  %v3302_v3 = vadd.f32 %v738_v61, %v3212_v27  ;;  %v2970_v58 = vld [vmem:[%s3880_s9 + $0x8] sm:$0xff] }
 0x416   :  { %741 = vst [vmem:[#allocation1 + $0x1] ss:$4 sm:$0xff] %v726_v59  ;;  %v715_v63 = vpop.f32.mrf.mxu2  ;;  %v2978_v59 = vld [vmem:[%s3880_s9 + $0x48] sm:$0xff] }
 0x417   :  { %742 = vst [vmem:[#allocation1 + $0x2] ss:$4 sm:$0xff] %v727_v60  ;;  %v716_v0 = vadd.f32 %v715_v63, %v682_v48  ;;  %v759_v5 = vrot.slane %v3302_v3, 2  ;;  %v760_v7 = vrot.slane %v3302_v3, 4  ;;  %v761_v9 = vrot.slane %v3302_v3, 6  ;;  %v2973_v48 = vld [vmem:[%s3880_s9 + $0x20] sm:$0xff]  ;;  %1226 = vmatpush.bf16.msra.mxu3 %v2978_v59 }
 0x418   :  { %v739_v2 = vld.sshfl [vmem:[#allocation1 + $0x20] sm:$0xff pattern:$0x73625140]  ;;  %1210 = vmatpush.bf16.msra.mxu2 %v2973_v48  ;;  %v2986_v60 = vld [vmem:[%s3880_s9 + $0x88] sm:$0xff] }
 0x419   :  { %v728_v1 = vrot.slane %v716_v0, 2  ;;  %743 = vst [vmem:[#allocation1 + $0x3] ss:$4 sm:$0xff] %v716_v0  ;;  %v752_v13 = vadd.f32 %v739_v2, %v3204_v24  ;;  %v2969_v0 = vld [vmem:[%s3880_s9] sm:$0xff] }
 0x41a   :  { %v2985_v2 = vld [vmem:[%s3880_s9 + $0x80] sm:$0xff] }
 0x41b   :  { %744 = vst [vmem:[#allocation1 + $0x20] ss:$4 sm:$0xff] %v728_v1  ;;  %v2977_v1 = vld [vmem:[%s3880_s9 + $0x40] sm:$0xff] }
 0x41c   :  { %1211 = vmatpush.bf16.msra.mxu2 %v2972_v51  ;;  %1227 = vmatpush.bf16.msra.mxu3 %v2977_v1  ;;  %v1282_v48 = vld [vmem:[%s3886_s8] sm:$0xf] }
 0x41d   :  { %v1360_v62 = vsel %vm1358_vm12, %v1282_v48, 0  ;;  %v976_v48 = vperm.slane %v3456_v45, 6 }
 0x41e   :  { %v717_v4 = vpop.f32.mrf.mxu2 }
 0x420   :  { %v745_v6 = vld.sshfl [vmem:[#allocation1] sm:$0xff pattern:$0x73625140]  ;;  %1212 = vmatpush.bf16.msra.mxu2 %v2971_v54 }
 0x421   :  { %v3307_v8 = vadd.f32 %v745_v6, %v3224_v40  ;;  %765 = vst [vmem:[#allocation1] ss:$4 sm:$0xff] %v3302_v3 }
 0x422   :  { %v746_v12 = vld.sshfl [vmem:[#allocation1 + $0x20] sm:$0xff pattern:$0x73625140]  ;;  %767 = vst [vmem:[#allocation1 + $0x1] ss:$4 sm:$0xff] %v759_v5 }
 0x423   :  { %v762_v27 = vrot.slane %v3307_v8, 2  ;;  %769 = vst [vmem:[#allocation1 + $0x2] ss:$4 sm:$0xff] %v760_v7  ;;  %v763_v14 = vrot.slane %v3307_v8, 4  ;;  %v764_v40 = vrot.slane %v3307_v8, 6  ;;  %v754_v15 = vadd.f32 %v746_v12, %v3220_v39  ;;  %v2967_v39 = vld [vmem:[%s3879_s13 + $0x10] sm:$0xff] }
 0x424   :  { %771 = vst [vmem:[#allocation1 + $0x3] ss:$4 sm:$0xff] %v761_v9  ;;  %877 = vmatpush.bf16.msrb.mxu0 %v2967_v39  ;;  %1213 = vmatpush.bf16.msra.mxu2 %v2970_v58  ;;  %v2959_v7 = vld [vmem:[%s3910_s23 + $0x20] sm:$0xff]  ;;  %v2995_v12 = vld [vmem:[%s3882_s6 + $0x10] sm:$0xff]  ;;  %s3043_s13 = smov 32  }
 0x425   :  { %773 = vst [vmem:[#allocation1 + $0x20] ss:$4 sm:$0xff] %v752_v13  ;;  %v964_v9 = vld [vmem:[%s3881_s4] sm:$0x3]  ;;  %953 = vmatpush.bf16.msrb.mxu1 %v2959_v7 }
 0x426   :  { %775 = vst [vmem:[#allocation1 + $0x21] ss:$4 sm:$0xff] %v3307_v8  ;;  %966 = vrot.lane.b32.xlu2 %v964_v9, %s3043_s13  ;;  %v1005_v39 = vld [vmem:[%s3883_s3] sm:$0x7] }
 0x427   :  { %777 = vst [vmem:[#allocation1 + $0x22] ss:$4 sm:$0xff] %v762_v27  ;;  %v2994_v27 = vld [vmem:[%s3882_s6 + $0x8] sm:$0xff] }
 0x428   :  { %779 = vst [vmem:[#allocation1 + $0x23] ss:$4 sm:$0xff] %v763_v14  ;;  %878 = vmatpush.bf16.msrb.mxu0 %v2966_v22  ;;  %1214 = vmatpush.bf16.msra.mxu2 %v2969_v0 }
 0x42b   :  { %v780_v16 = vld.sshfl [vmem:[#allocation1] sm:$0xff pattern:$0x73625140] }
 0x42c   :  { %782 = vst [vmem:[#allocation1] ss:$4 sm:$0xff] %v764_v40  ;;  %879 = vmatpush.bf16.msrb.mxu0 %v2965_v23  ;;  %1330 = vmatpush.bf16.msrb.mxu2 %v2995_v12 }
 0x42d   :  { %783 = vst [vmem:[#allocation1 + $0x1] ss:$4 sm:$0xff] %v754_v15 }
 0x42f   :  { %v781_v11 = vld.sshfl [vmem:[#allocation1 + $0x20] sm:$0xff pattern:$0x73625140] }
 0x430   :  { %v788_v24 = vpack.c.bf16 %v781_v11, %v780_v16  ;;  %1233 = vmatpush.bf16.msra.mxu0 %v2992_v41  ;;  %1331 = vmatpush.bf16.msrb.mxu2 %v2994_v27  ;;  %v2993_v16 = vld [vmem:[%s3882_s6] sm:$0xff]  ;;  %v3001_v41 = vld [vmem:[%s3884_s5 + $0x10] sm:$0xff] }
 0x431   :  { %v2945_v27 = vld [vmem:[%s3912_s0 + $0x20] sm:$0xff] }
 0x432   :  { %2693 = vmatmul.msk.bf16.vlgmr.msrb.gmra.mxu3 %vm257_vm4, %v788_v24 }
 0x433   :  { %1369 = vmatpush.bf16.msrb.mxu3 %v1360_v62 }
 0x434   :  { %v784_v17 = vld.sshfl [vmem:[#allocation1] sm:$0xff pattern:$0x73625140]  ;;  %1234 = vmatpush.bf16.msra.mxu0 %v2991_v44  ;;  %1332 = vmatpush.bf16.msrb.mxu2 %v2993_v16 }
 0x435   :  { %v789_v18 = vpack.c.bf16 %v784_v17, %v784_v17 }
 0x438   :  { %1235 = vmatpush.bf16.msra.mxu0 %v2990_v47  ;;  %v2946_v47 = vld [vmem:[%s3912_s0 + $0x28] sm:$0xff] }
 0x439   :  { %998 = vmatpush.bf16.msra.mxu1 %v2946_v47  ;;  %v1246_v47 = vperm.slane %v3456_v45, 2 }
 0x43c   :  { %1236 = vmatpush.bf16.msra.mxu0 %v2989_v50 }
 0x43d   :  { %999 = vmatpush.bf16.msra.mxu1 %v2945_v27  ;;  %v2949_v27 = vld [vmem:[%s3912_s0 + $0x40] sm:$0xff] }
 0x440   :  { %1237 = vmatpush.bf16.msra.mxu0 %v2988_v53 }
 0x442   :  { %2694 = vmatmul.msk.bf16.gmra.mxu3 %vm257_vm4, %v789_v18 }
 0x444   :  { %1238 = vmatpush.bf16.msra.mxu0 %v2987_v56  ;;  %v3002_v56 = vld [vmem:[%s3884_s5 + $0x18] sm:$0xff] }
 0x448   :  { %1239 = vmatpush.bf16.msra.mxu0 %v2986_v60 }
 0x44c   :  { %1240 = vmatpush.bf16.msra.mxu0 %v2985_v2 }
 0x4b5   :  { %v818_v25 = vpop.f32.mrf.mxu3 }
 0x4b6   :  { %v819_v28 = vadd.f32 %v818_v25, %v790_v26 }
 0x4b8   :  { %v827_v30 = vmax.f32 %v819_v28, 0.0 }
 0x4bd   :  { %v820_v20 = vpop.f32.mrf.mxu3 }
 0x4be   :  { %v821_v29 = vadd.f32 %v820_v20, %v790_v26 }
 0x4c0   :  { %v828_v31 = vmax.f32 %v821_v29, 0.0 }
 0x4c2   :  { %v838_v19 = vpack.c.bf16 %v828_v31, %v827_v30 }
 0x4c4   :  { %2711 = vmatmul.msk.bf16.vlgmr.msrb.gmra.mxu0 %vm865_vm9, %v838_v19 }
 0x4c5   :  { %v823_v32 = vpop.f32.mrf.mxu3 }
 0x4c6   :  { %v824_v33 = vadd.f32 %v823_v32, %v790_v26 }
 0x4c8   :  { %v829_v35 = vmax.f32 %v824_v33, 0.0 }
 0x4ca   :  { %v839_v36 = vpack.c.bf16 %v829_v35, %v829_v35 }
 0x4cd   :  { %v825_v34 = vpop.f32.mrf.mxu3 }
 0x4d4   :  { %2712 = vmatmul.msk.bf16.gmra.mxu0 %vm865_vm9, %v839_v36  ;;  %v2998_v36 = vld [vmem:[%s3882_s6 + $0x28] sm:$0xff] }
 0x4d5   :  { %1428 = vmatpush.bf16.msrb.mxu0 %v2998_v36 }
 0x4d9   :  { %1429 = vmatpush.bf16.msrb.mxu0 %v2997_v37 }
 0x4dd   :  { %1430 = vmatpush.bf16.msrb.mxu0 %v2996_v38 }
 0x541   :  { %v881_v61 = vpop.f32.mrf.mxu0 }
 0x542   :  { %v882_v63 = vadd.f32 %v881_v61, %v840_v57  ;;  %v967_v61 = vpop.permute.xlu2 %966 }
 0x544   :  { %v893_v4 = vrot.slane %v882_v63, 2  ;;  %v894_v5 = vrot.slane %v882_v63, 4  ;;  %v895_v6 = vrot.slane %v882_v63, 6  ;;  %900 = vst [vmem:[#allocation1] ss:$4 sm:$0xff] %v882_v63 }
 0x546   :  { %902 = vst [vmem:[#allocation1 + $0x1] ss:$4 sm:$0xff] %v893_v4  ;;  %v3009_v4 = vld [vmem:[%s3885_s7] ss:$0 sm:$0xff] }
 0x547   :  { %904 = vst [vmem:[#allocation1 + $0x2] ss:$4 sm:$0xff] %v894_v5 }
 0x548   :  { %906 = vst [vmem:[#allocation1 + $0x3] ss:$4 sm:$0xff] %v895_v6 }
 0x549   :  { %v883_v13 = vpop.f32.mrf.mxu0 }
 0x54a   :  { %v884_v14 = vadd.f32 %v883_v13, %v840_v57 }
 0x54c   :  { %v896_v40 = vrot.slane %v884_v14, 2  ;;  %908 = vst [vmem:[#allocation1 + $0x20] ss:$4 sm:$0xff] %v884_v14  ;;  %v897_v15 = vrot.slane %v884_v14, 4  ;;  %v898_v11 = vrot.slane %v884_v14, 6 }
 0x54d   :  { %v2829_v14 = vld [vmem:[%s3906_s29 + $0x10] sm:$0xf] }
 0x54f   :  { %v909_v24 = vld.sshfl [vmem:[#allocation1] sm:$0xff pattern:$0x73625140] }
 0x550   :  { %910 = vst [vmem:[#allocation1] ss:$4 sm:$0xff] %v896_v40  ;;  %v918_v23 = vadd.f32 %v909_v24, %v3302_v3  ;;  %v2999_v3 = vld [vmem:[%s3884_s5] sm:$0xff]  ;;  %v2963_v40 = vld [vmem:[%s3906_s29 + $0x10] sm:$0x70] }
 0x551   :  { %911 = vst [vmem:[#allocation1 + $0x1] ss:$4 sm:$0xff] %v897_v15  ;;  %v886_v17 = vpop.f32.mrf.mxu0  ;;  %v2830_v15 = vor.u32 %v2963_v40, %v2829_v14  ;;  %v3542_v40 = vld [vmem:[%s3911_s26 + $0x20] sm:$0xff] }
 0x552   :  { %912 = vst [vmem:[#allocation1 + $0x2] ss:$4 sm:$0xff] %v898_v11  ;;  %v887_v18 = vadd.f32 %v886_v17, %v840_v57  ;;  %v920_v28 = vpack.c.bf16 %v918_v23, %v918_v23 }
 0x553   :  { %v1253_v11 = vsel %vm137_vm0, %v2830_v15, 0 }
 0x554   :  { %v899_v21 = vrot.slane %v887_v18, 2  ;;  %913 = vst [vmem:[#allocation1 + $0x3] ss:$4 sm:$0xff] %v887_v18  ;;  %v925_v30 = vunpack.c.l.b16 %v920_v28 }
 0x556   :  { %914 = vst [vmem:[#allocation1 + $0x20] ss:$4 sm:$0xff] %v899_v21 }
 0x559   :  { %v888_v22 = vpop.f32.mrf.mxu0 }
 0x55b   :  { %v915_v25 = vld.sshfl [vmem:[#allocation1] sm:$0xff pattern:$0x73625140] }
 0x55c   :  { %1056 = vst [vmem:[#allocation1] ss:$9 sm:$0xff] %v1005_v39  ;;  %v919_v26 = vadd.f32 %v915_v25, %v3307_v8  ;;  %v3000_v8 = vld [vmem:[%s3884_s5 + $0x8] sm:$0xff] }
 0x55e   :  { %v921_v20 = vpack.c.bf16 %v919_v26, %v919_v26 }
 0x560   :  { %v926_v29 = vunpack.c.l.b16 %v921_v20 }
 0x562   :  { %v927_v31 = vrot.slane %v926_v29, 7  ;;  %v3039_v29 = vld [vmem:[%s3907_s25] sm:$0x1] }
 0x563   :  { %v1057_v19 = vld [vmem:[#allocation1] sm:$0xff]  ;;  %v1058_v32 = vld [vmem:[#allocation1 + $0x9] sm:$0xff]  ;;  %v1059_v33 = vld [vmem:[#allocation1 + $0x12] sm:$0xff] }
 0x564   :  { %1215 = vmatmul.bf16.vlgmr.msra.gmra.mxu2 %v1057_v19  ;;  %1228 = vmatmul.bf16.vlgmr.msra.gmra.mxu3 %v1058_v32  ;;  %v929_v34 = vsel %vm928_vm10, %v927_v31, %v925_v30  ;;  %v3010_v30 = vld [vmem:[%s3885_s7 + $0x1] ss:$0 sm:$0xff] }
 0x565   :  { %1241 = vmatmul.bf16.vlgmr.msra.gmra.mxu0 %v1059_v33  ;;  %v930_v35 = vpack.c.b16 %v929_v34, %v929_v34 }
 0x567   :  { %2721 = vmatmul.msk.bf16.vlgmr.msrb.gmra.mxu1 %vm257_vm4, %v930_v35 }
 0x568   :  { %1262 = vmatpush.bf16.msrb.mxu1 %v1253_v11 }
 0x574   :  { %2852 = vmatmul.msk.bf16.vlgmr.msrb.gmra.mxu2 %vm1318_vm11, %v2999_v3 }
 0x575   :  { %2880 = vmatmul.msk.bf16.vlgmr.msrb.gmra.mxu0 %vm1318_vm11, %v3001_v41 }
 0x584   :  { %2853 = vmatmul.msk.bf16.gmra.mxu2 %vm1318_vm11, %v3000_v8 }
 0x585   :  { %2881 = vmatmul.msk.bf16.gmra.mxu0 %vm1318_vm11, %v3002_v56 }
 0x5e2   :  { %v1242_v43 = vpop.f32.mrf.mxu0 }
 0x5e4   :  { %v955_v44 = vpop.f32.mrf.mxu1 }
 0x5e5   :  { %v956_v49 = vadd.f32 %v955_v44, %v922_v42  ;;  %v3504_v44 = vld [vmem:[%s3909_s30 + $0x8] sm:$0x1f] }
 0x5e7   :  { %v959_v50 = vsel %vm865_vm9, %v956_v49, 0.0  ;;  %v961_v51 = vmul.f32 0.5, %v956_v49  ;;  %v1216_v52 = vpop.f32.mrf.mxu2  ;;  %v1229_v53 = vpop.f32.mrf.mxu3 }
 0x5e8   :  { %960 = vst [vmem:[%s3887_s20] sm:$0x3] %v959_v50  ;;  %v1217_v54 = vadd.f32 %v1216_v52, %v1054_v46  ;;  %v3507_v46 = vperm.slane %v3504_v44, 4 }
 0x5e9   :  { %v962_v55 = vmul.f32 1.442695, %v961_v51 }
 0x5ea   :  { %v1230_v57 = vadd.f32 %v1229_v53, %v1217_v54  ;;  %v1244_v58 = vpop.f32.mrf.mxu0  ;;  %v2950_v54 = vld [vmem:[%s3912_s0 + $0x48] sm:$0xff] }
 0x5eb   :  { %3028 = vpow2.f32 %v962_v55  ;;  %1747 = vmatpush.bf16.msra.mxu2 %v2950_v54 }
 0x5ec   :  { %v3472_v59 = vadd.f32 %v1242_v43, %v1230_v57  ;;  %v957_v60 = vpop.f32.mrf.mxu1 }
 0x5ed   :  { %v3530_v60 = vld [vmem:[%s3911_s26 + $0x18] sm:$0xff] }
 0x5ee   :  { %v1488_v55 = vperm.slane %v3472_v59, 0 }
 0x5ef   :  { %v1218_v63 = vpop.f32.mrf.mxu2  ;;  %v1231_v10 = vpop.f32.mrf.mxu3  ;;  %1748 = vmatpush.bf16.msra.mxu2 %v2949_v27 }
 0x5f1   :  { %v3029_v0 = vpop.eup %3028 }
 0x5f2   :  { %v969_v1 = vmul.f32 %v3029_v0, %v967_v61  ;;  %v1432_v28 = vpop.f32.mrf.mxu0 }
 0x5f3   :  { %v1433_v31 = vadd.f32 %v3010_v30, %v1432_v28 }
 0x5f4   :  { %971 = vrot.lane.b32.xlu1 %v969_v1, %s3041_s17 }
 0x5f5   :  { %v1442_v33 = vmax.f32 %v1433_v31, 0.0 }
 0x5f7   :  { %v1334_v2 = vpop.f32.mrf.mxu2 }
 0x5f8   :  { %v1335_v6 = vadd.f32 %v3009_v4, %v1334_v2 }
 0x5fa   :  { %v1344_v9 = vmax.f32 %v1335_v6, 0.0  ;;  %v1434_v20 = vpop.f32.mrf.mxu0 }
 0x5fb   :  { %v1435_v19 = vadd.f32 %v3010_v30, %v1434_v20  ;;  %v3561_v20 = vld [vmem:[%s3911_s26 + $0x28] sm:$0xff] }
 0x5fd   :  { %v1443_v34 = vmax.f32 %v1435_v19, 0.0 }
 0x5ff   :  { %v1336_v5 = vpop.f32.mrf.mxu2  ;;  %v1446_v35 = vpack.c.bf16 %v1443_v34, %v1442_v33 }
 0x600   :  { %v1337_v7 = vadd.f32 %v3009_v4, %v1336_v5 }
 0x602   :  { %v1345_v12 = vmax.f32 %v1337_v7, 0.0  ;;  %v1437_v32 = vpop.f32.mrf.mxu0 }
 0x603   :  { %v1438_v8 = vadd.f32 %v3010_v30, %v1437_v32 }
 0x604   :  { %v1348_v13 = vpack.c.bf16 %v1345_v12, %v1344_v9 }
 0x605   :  { %v1444_v37 = vmax.f32 %v1438_v8, 0.0 }
 0x606   :  { %2854 = vmatmul.msk.bf16.vlgmr.msrb.gmra.mxu3 %vm1351_vm13, %v1348_v13 }
 0x607   :  { %v1339_v16 = vpop.f32.mrf.mxu2 }
 0x608   :  { %v1340_v24 = vadd.f32 %v3009_v4, %v1339_v16 }
 0x60a   :  { %v1346_v18 = vmax.f32 %v1340_v24, 0.0  ;;  %v1439_v3 = vpop.f32.mrf.mxu0 }
 0x60b   :  { %v1440_v36 = vadd.f32 %v3010_v30, %v1439_v3 }
 0x60d   :  { %v1445_v38 = vmax.f32 %v1440_v36, 0.0 }
 0x60f   :  { %v1341_v17 = vpop.f32.mrf.mxu2  ;;  %v1447_v41 = vpack.c.bf16 %v1445_v38, %v1444_v37 }
 0x610   :  { %v1342_v21 = vadd.f32 %v3009_v4, %v1341_v17 }
 0x612   :  { %v1347_v39 = vmax.f32 %v1342_v21, 0.0 }
 0x614   :  { %v1349_v22 = vpack.c.bf16 %v1347_v39, %v1346_v18 }
 0x616   :  { %2855 = vmatmul.msk.bf16.gmra.mxu3 %vm1351_vm13, %v1349_v22 }
 0x666   :  { %v972_v23 = vpop.permute.xlu1 %971 }
 0x667   :  { %v974_v25 = vadd.f32 %v972_v23, %v956_v49 }
 0x669   :  { %v975_v26 = vpack.c.bf16 %v974_v25, %v974_v25 }
 0x66b   :  { %2730 = vmatmul.msk.bf16.vlgmr.msra.gmra.mxu1 %vm257_vm4, %v975_v26 }
 0x66c   :  { %1461 = vmatpush.bf16.msra.mxu1 %v1360_v62 }
 0x67b   :  { %2831 = vmatmul.msk.bf16.vlgmr.msrb.gmra.mxu1 %vm133_vm1, %v3039_v29 }
 0x689   :  { %v1371_v49 = vpop.f32.mrf.mxu3 }
 0x68a   :  { %v1372_v50 = vadd.f32 %v1371_v49, %v3507_v46 }
 0x68b   :  { %2882 = vmatmul.msk.bf16.vlgmr.msra.gmra.mxu1 %vm1351_vm13, %v1446_v35 }
 0x68c   :  { %v1501_v56 = vrot.slane %v1372_v50, 5 }
 0x691   :  { %v1373_v63 = vpop.f32.mrf.mxu3 }
 0x692   :  { %v1374_v0 = vadd.f32 %v1373_v63, %v3507_v46 }
 0x694   :  { %v1502_v9 = vrot.slane %v1374_v0, 5 }
 0x696   :  { %v3545_v15 = vsel %vm1500_vm14, %v1501_v56, %v1502_v9 }
 0x697   :  { %v1534_v16 = vadd.f32 %v3545_v15, %v3542_v40 }
 0x699   :  { %v1560_v17 = vrot.slane %v1534_v16, 1  ;;  %v1561_v21 = vrot.slane %v1534_v16, 2  ;;  %v1562_v39 = vrot.slane %v1534_v16, 3  ;;  %v1563_v22 = vrot.slane %v1534_v16, 4  ;;  %v1376_v49 = vpop.f32.mrf.mxu3 }
 0x69a   :  { %v1564_v23 = vrot.slane %v1534_v16, 5  ;;  %v1565_v26 = vrot.slane %v1534_v16, 6  ;;  %v1566_v28 = vrot.slane %v1534_v16, 7 }
 0x69b   :  { %2883 = vmatmul.msk.bf16.gmra.mxu1 %vm1351_vm13, %v1447_v41 }
 0x6a1   :  { %v1378_v27 = vpop.f32.mrf.mxu3 }
 0x6e8   :  { %v1001_v42 = vpop.f32.mrf.mxu1 }
 0x6e9   :  { %v3514_v52 = vadd.f32 %v1001_v42, %v976_v48  ;;  %v3577_v42 = vld [vmem:[%s3911_s26 + $0x30] sm:$0xff] }
 0x6f0   :  { %v1003_v43 = vpop.f32.mrf.mxu1 }
 0x6f8   :  { %v1264_v62 = vpop.f32.mrf.mxu1 }
 0x6f9   :  { %v3512_v51 = vadd.f32 %v1264_v62, %v1246_v47 }
 0x6fb   :  { %v1484_v53 = vperm.slane %v3512_v51, 0  ;;  %v1481_v48 = vrot.slane %v3512_v51, 1 }
 0x6fd   :  { %v1492_v45 = vsel %vm199_vm2, %v3514_v52, %v1484_v53  ;;  %v1485_v53 = vperm.slane %v1481_v48, 0 }
 0x6fe   :  { %v1494_v57 = vsel %vm202_vm3, %v1492_v45, %v1488_v55  ;;  %v1483_v55 = vrot.slane %v3472_v59, 1  ;;  %v1478_v45 = vrot.slane %v3514_v52, 1 }
 0x6ff   :  { %v3525_v58 = vsel %vm1500_vm14, %v1494_v57, %v1501_v56  ;;  %v1377_v57 = vadd.f32 %v1376_v49, %v3507_v46 }
 0x700   :  { %v1266_v61 = vpop.f32.mrf.mxu1  ;;  %v1533_v10 = vadd.f32 %v3525_v58, %v3530_v60  ;;  %v1493_v51 = vsel %vm199_vm2, %v1478_v45, %v1485_v53 }
 0x702   :  { %v1553_v1 = vrot.slane %v1533_v10, 1  ;;  %v1554_v2 = vrot.slane %v1533_v10, 2  ;;  %v1555_v4 = vrot.slane %v1533_v10, 3  ;;  %1613 = vst [vmem:[#allocation1] ss:$9 sm:$0xff] %v1533_v10  ;;  %v1556_v5 = vrot.slane %v1533_v10, 4 }
 0x703   :  { %v1557_v6 = vrot.slane %v1533_v10, 5  ;;  %v1558_v7 = vrot.slane %v1533_v10, 6  ;;  %v1559_v12 = vrot.slane %v1533_v10, 7 }
 0x704   :  { %1615 = vst [vmem:[#allocation1 + $0x1] ss:$9 sm:$0xff] %v1553_v1  ;;  %v1489_v1 = vperm.slane %v1483_v55, 0 }
 0x705   :  { %1617 = vst [vmem:[#allocation1 + $0x2] ss:$9 sm:$0xff] %v1554_v2 }
 0x706   :  { %1619 = vst [vmem:[#allocation1 + $0x3] ss:$9 sm:$0xff] %v1555_v4  ;;  %v1504_v4 = vrot.slane %v1377_v57, 5  ;;  %v1495_v52 = vsel %vm202_vm3, %v1493_v51, %v1489_v1 }
 0x707   :  { %1621 = vst [vmem:[#allocation1 + $0x4] ss:$9 sm:$0xff] %v1556_v5  ;;  %v3602_v5 = vld [vmem:[%s3911_s26 + $0x38] sm:$0xff] }
 0x708   :  { %v1463_v13 = vpop.f32.mrf.mxu1  ;;  %1623 = vst [vmem:[#allocation1 + $0x5] ss:$9 sm:$0xff] %v1557_v6  ;;  %v3610_v6 = vsel %vm1500_vm14, %v1495_v52, %v1504_v4  ;;  %v1850_v52 = vrot.slane %v3525_v58, 3 }
 0x709   :  { %v1464_v14 = vadd.f32 %v1463_v13, %v3507_v46  ;;  %1625 = vst [vmem:[#allocation1 + $0x6] ss:$9 sm:$0xff] %v1558_v7 }
 0x70a   :  { %1627 = vst [vmem:[#allocation1 + $0x7] ss:$9 sm:$0xff] %v1559_v12 }
 0x70b   :  { %1473 = vst.msk [vmem:[%s3888_s22] sm:$0xff] %vm257_vm4, %v1464_v14  ;;  %v1517_v25 = vrot.slane %v1464_v14, 5 }
 0x70d   :  { %v3564_v29 = vsel %vm1500_vm14, %v1502_v9, %v1517_v25  ;;  %v1538_v9 = vadd.f32 %v3610_v6, %v3530_v60 }
 0x70e   :  { %v1535_v30 = vadd.f32 %v3564_v29, %v3561_v20 }
 0x710   :  { %v1465_v11 = vpop.f32.mrf.mxu1  ;;  %v1567_v31 = vrot.slane %v1535_v30, 1  ;;  %v1568_v32 = vrot.slane %v1535_v30, 2  ;;  %v1569_v34 = vrot.slane %v1535_v30, 3  ;;  %v1570_v35 = vrot.slane %v1535_v30, 4 }
 0x711   :  { %v1466_v24 = vadd.f32 %v1465_v11, %v3507_v46  ;;  %v1628_v18 = vld [vmem:[#allocation1] sm:$0xff]  ;;  %v1571_v3 = vrot.slane %v1535_v30, 5  ;;  %v1572_v37 = vrot.slane %v1535_v30, 6  ;;  %v1573_v38 = vrot.slane %v1535_v30, 7 }
 0x712   :  { %1629 = vst [vmem:[#allocation1] ss:$9 sm:$0xff] %v1534_v16  ;;  %v1583_v11 = vrot.slane %v1538_v9, 1 }
 0x713   :  { %1474 = vst.msk [vmem:[%s3888_s22 + $0x8] sm:$0xff] %vm257_vm4, %v1466_v24  ;;  %v3569_v8 = vrot.slane %v1466_v24, 5  ;;  %v1379_v24 = vadd.f32 %v1378_v27, %v3507_v46  ;;  %v1855_v27 = vrot.slane %v3545_v15, 1 }
 0x714   :  { %1630 = vst [vmem:[#allocation1 + $0x1] ss:$9 sm:$0xff] %v1560_v17  ;;  %v1584_v17 = vrot.slane %v1538_v9, 2 }
 0x715   :  { %1631 = vst [vmem:[#allocation1 + $0x2] ss:$9 sm:$0xff] %v1561_v21  ;;  %v3581_v43 = vsel %vm1500_vm14, %v1517_v25, %v3569_v8  ;;  %v1537_v7 = vadd.f32 %v3569_v8, %v3602_v5  ;;  %v1586_v21 = vrot.slane %v1538_v9, 4  ;;  %v1505_v60 = vrot.slane %v1379_v24, 5 }
 0x716   :  { %1632 = vst [vmem:[#allocation1 + $0x3] ss:$9 sm:$0xff] %v1562_v39  ;;  %v1536_v47 = vadd.f32 %v3581_v43, %v3577_v42  ;;  %v1588_v25 = vrot.slane %v1538_v9, 6  ;;  %v1859_v24 = vrot.slane %v3545_v15, 5 }
 0x717   :  { %1633 = vst [vmem:[#allocation1 + $0x4] ss:$9 sm:$0xff] %v1563_v22  ;;  %v1581_v12 = vrot.slane %v1537_v7, 1  ;;  %v1582_v14 = vrot.slane %v1537_v7, 2  ;;  %v3619_v39 = vsel %vm1500_vm14, %v1504_v4, %v1505_v60  ;;  %v1587_v22 = vrot.slane %v1538_v9, 5 }
 0x718   :  { %1634 = vst [vmem:[#allocation1 + $0x5] ss:$9 sm:$0xff] %v1564_v23  ;;  %v1468_v36 = vpop.f32.mrf.mxu1  ;;  %v1574_v50 = vrot.slane %v1536_v47, 1  ;;  %v1575_v54 = vrot.slane %v1536_v47, 2  ;;  %v1576_v56 = vrot.slane %v1536_v47, 3  ;;  %v1577_v61 = vrot.slane %v1536_v47, 4 }
 0x719   :  { %1635 = vst [vmem:[#allocation1 + $0x6] ss:$9 sm:$0xff] %v1565_v26  ;;  %v3572_v41 = vadd.f32 %v1468_v36, %v3507_v46  ;;  %v1578_v63 = vrot.slane %v1536_v47, 5  ;;  %v1579_v10 = vrot.slane %v1536_v47, 6  ;;  %v1580_v2 = vrot.slane %v1536_v47, 7 }
 0x71a   :  { %1636 = vst [vmem:[#allocation1 + $0x7] ss:$9 sm:$0xff] %v1566_v28  ;;  %v1539_v23 = vadd.f32 %v3619_v39, %v3542_v40  ;;  %v1589_v26 = vrot.slane %v1538_v9, 7  ;;  %v1849_v4 = vrot.slane %v3525_v58, 2 }
 0x71b   :  { %1475 = vst.msk [vmem:[%s3888_s22 + $0x10] sm:$0xff] %vm257_vm4, %v3572_v41 }
 0x71c   :  { %v1590_v28 = vrot.slane %v1539_v23, 1  ;;  %v1596_v36 = vrot.slane %v1539_v23, 7 }
 0x720   :  { %v1470_v0 = vpop.f32.mrf.mxu1 }
 0x721   :  { %v1637_v19 = vld [vmem:[#allocation1] sm:$0xff]  ;;  %v3596_v59 = vadd.f32 %v1470_v0, %v3507_v46 }
 0x722   :  { %1638 = vst [vmem:[#allocation1] ss:$9 sm:$0xff] %v1535_v30  ;;  %v1708_v33 = vpack.c.bf16 %v1637_v19, %v1628_v18  ;;  %v1585_v18 = vrot.slane %v1538_v9, 3  ;;  %v1591_v30 = vrot.slane %v1539_v23, 2  ;;  %v1593_v19 = vrot.slane %v1539_v23, 4 }
 0x723   :  { %1639 = vst [vmem:[#allocation1 + $0x1] ss:$9 sm:$0xff] %v1567_v31  ;;  %v1592_v31 = vrot.slane %v1539_v23, 3  ;;  %v3634_v48 = vrot.slane %v3596_v59, 5 }
 0x724   :  { %1640 = vst [vmem:[#allocation1 + $0x2] ss:$9 sm:$0xff] %v1568_v32  ;;  %2892 = vmatmul.msk.bf16.vlgmr.msra.gmra.mxu2 %vm257_vm4, %v1708_v33  ;;  %v1520_v32 = vrot.slane %v3572_v41, 5  ;;  %v1594_v33 = vrot.slane %v1539_v23, 5 }
 0x725   :  { %1641 = vst [vmem:[#allocation1 + $0x3] ss:$9 sm:$0xff] %v1569_v34 }
 0x726   :  { %1642 = vst [vmem:[#allocation1 + $0x4] ss:$9 sm:$0xff] %v1570_v35  ;;  %v3627_v40 = vsel %vm1500_vm14, %v1505_v60, %v1520_v32  ;;  %v1595_v35 = vrot.slane %v1539_v23, 6  ;;  %v1862_v60 = vrot.slane %v3564_v29, 1 }
 0x727   :  { %1643 = vst [vmem:[#allocation1 + $0x5] ss:$9 sm:$0xff] %v1571_v3  ;;  %v1540_v34 = vadd.f32 %v3627_v40, %v3561_v20  ;;  %v3638_v20 = vsel %vm1500_vm14, %v1520_v32, %v3634_v48  ;;  %v2948_v32 = vld [vmem:[%s3912_s0 + $0x38] sm:$0xff] }
 0x728   :  { %1644 = vst [vmem:[#allocation1 + $0x6] ss:$9 sm:$0xff] %v1572_v37  ;;  %2162 = vmatpush.bf16.msra.mxu0 %v2948_v32 }
 0x729   :  { %1645 = vst [vmem:[#allocation1 + $0x7] ss:$9 sm:$0xff] %v1573_v38  ;;  %v1597_v37 = vrot.slane %v1540_v34, 1  ;;  %v1598_v38 = vrot.slane %v1540_v34, 2  ;;  %v1600_v41 = vrot.slane %v1540_v34, 4  ;;  %v1601_v49 = vrot.slane %v1540_v34, 5 }
 0x72a   :  { %1476 = vst.msk [vmem:[%s3888_s22 + $0x18] sm:$0xff] %vm257_vm4, %v3596_v59 }
 0x730   :  { %v1646_v62 = vld [vmem:[#allocation1] sm:$0xff] }
 0x731   :  { %1647 = vst [vmem:[#allocation1] ss:$9 sm:$0xff] %v1536_v47  ;;  %v1599_v47 = vrot.slane %v1540_v34, 3 }
 0x732   :  { %1648 = vst [vmem:[#allocation1 + $0x1] ss:$9 sm:$0xff] %v1574_v50  ;;  %v1602_v50 = vrot.slane %v1540_v34, 6 }
 0x733   :  { %1649 = vst [vmem:[#allocation1 + $0x2] ss:$9 sm:$0xff] %v1575_v54  ;;  %v1603_v54 = vrot.slane %v1540_v34, 7 }
 0x734   :  { %1650 = vst [vmem:[#allocation1 + $0x3] ss:$9 sm:$0xff] %v1576_v56 }
 0x735   :  { %1651 = vst [vmem:[#allocation1 + $0x4] ss:$9 sm:$0xff] %v1577_v61  ;;  %v1542_v61 = vadd.f32 %v3634_v48, %v3602_v5  ;;  %v1851_v5 = vrot.slane %v3525_v58, 4 }
 0x736   :  { %1652 = vst [vmem:[#allocation1 + $0x5] ss:$9 sm:$0xff] %v1578_v63 }
 0x737   :  { %1653 = vst [vmem:[#allocation1 + $0x6] ss:$9 sm:$0xff] %v1579_v10  ;;  %v1611_v0 = vrot.slane %v1542_v61, 1  ;;  %v1612_v1 = vrot.slane %v1542_v61, 2 }
 0x738   :  { %1654 = vst [vmem:[#allocation1 + $0x7] ss:$9 sm:$0xff] %v1580_v2  ;;  %v1848_v2 = vrot.slane %v3525_v58, 1 }
 0x73f   :  { %v1655_v13 = vld [vmem:[#allocation1] sm:$0xff] }
 0x740   :  { %1656 = vst [vmem:[#allocation1] ss:$9 sm:$0xff] %v1537_v7  ;;  %v1709_v16 = vpack.c.bf16 %v1655_v13, %v1646_v62  ;;  %v1541_v62 = vadd.f32 %v3638_v20, %v3577_v42  ;;  %v1852_v7 = vrot.slane %v3525_v58, 5 }
 0x741   :  { %1657 = vst [vmem:[#allocation1 + $0x1] ss:$9 sm:$0xff] %v1581_v12  ;;  %v1854_v12 = vrot.slane %v3525_v58, 7 }
 0x742   :  { %1658 = vst [vmem:[#allocation1 + $0x2] ss:$9 sm:$0xff] %v1582_v14  ;;  %2893 = vmatmul.msk.bf16.gmra.mxu2 %vm257_vm4, %v1709_v16  ;;  %v1604_v55 = vrot.slane %v1541_v62, 1  ;;  %v1605_v56 = vrot.slane %v1541_v62, 2  ;;  %v1606_v45 = vrot.slane %v1541_v62, 3  ;;  %v1607_v57 = vrot.slane %v1541_v62, 4 }
 0x743   :  { %1659 = vst [vmem:[#allocation1 + $0x3] ss:$9 sm:$0xff] %v1538_v9  ;;  %v1608_v42 = vrot.slane %v1541_v62, 5  ;;  %v1609_v63 = vrot.slane %v1541_v62, 6  ;;  %v1610_v10 = vrot.slane %v1541_v62, 7  ;;  %v1853_v9 = vrot.slane %v3525_v58, 6 }
 0x744   :  { %1660 = vst [vmem:[#allocation1 + $0x4] ss:$9 sm:$0xff] %v1583_v11  ;;  %v1856_v16 = vrot.slane %v3545_v15, 2  ;;  %v1857_v11 = vrot.slane %v3545_v15, 3 }
 0x745   :  { %1661 = vst [vmem:[#allocation1 + $0x5] ss:$9 sm:$0xff] %v1584_v17  ;;  %v1860_v17 = vrot.slane %v3545_v15, 6 }
 0x746   :  { %1662 = vst [vmem:[#allocation1 + $0x6] ss:$9 sm:$0xff] %v1585_v18  ;;  %v1861_v18 = vrot.slane %v3545_v15, 7 }
 0x747   :  { %1663 = vst [vmem:[#allocation1 + $0x7] ss:$9 sm:$0xff] %v1586_v21 }
 0x74e   :  { %v3623_v46 = vld [vmem:[#allocation1] sm:$0xff] }
 0x74f   :  { %1665 = vst [vmem:[#allocation1] ss:$9 sm:$0xff] %v1587_v22 }
 0x750   :  { %1666 = vst [vmem:[#allocation1 + $0x1] ss:$9 sm:$0xff] %v1588_v25  ;;  %v1864_v25 = vrot.slane %v3564_v29, 3 }
 0x751   :  { %1667 = vst [vmem:[#allocation1 + $0x2] ss:$9 sm:$0xff] %v1589_v26  ;;  %v1867_v26 = vrot.slane %v3564_v29, 6 }
 0x752   :  { %1668 = vst [vmem:[#allocation1 + $0x3] ss:$9 sm:$0xff] %v1539_v23  ;;  %v1863_v23 = vrot.slane %v3564_v29, 2 }
 0x753   :  { %1669 = vst [vmem:[#allocation1 + $0x4] ss:$9 sm:$0xff] %v1590_v28  ;;  %v1868_v28 = vrot.slane %v3564_v29, 7 }
 0x754   :  { %1670 = vst [vmem:[#allocation1 + $0x5] ss:$9 sm:$0xff] %v1591_v30 }
 0x755   :  { %1671 = vst [vmem:[#allocation1 + $0x6] ss:$9 sm:$0xff] %v1592_v31  ;;  %v2952_v31 = vld [vmem:[%s3912_s0 + $0x58] sm:$0xff] }
 0x756   :  { %1672 = vst [vmem:[#allocation1 + $0x7] ss:$9 sm:$0xff] %v1593_v19  ;;  %2042 = vmatpush.bf16.msra.mxu3 %v2952_v31  ;;  %v2951_v19 = vld [vmem:[%s3912_s0 + $0x50] sm:$0xff] }
 0x75a   :  { %2043 = vmatpush.bf16.msra.mxu3 %v2951_v19 }
 0x75d   :  { %v3631_v3 = vld [vmem:[#allocation1] sm:$0xff] }
 0x75e   :  { %1674 = vst [vmem:[#allocation1] ss:$9 sm:$0xff] %v1594_v33  ;;  %v1710_v13 = vpack.c.bf16 %v3631_v3, %v3623_v46  ;;  %v1865_v46 = vrot.slane %v3564_v29, 4  ;;  %v1871_v3 = vrot.slane %v3581_v43, 3 }
 0x75f   :  { %1675 = vst [vmem:[#allocation1 + $0x1] ss:$9 sm:$0xff] %v1595_v35 }
 0x760   :  { %1676 = vst [vmem:[#allocation1 + $0x2] ss:$9 sm:$0xff] %v1596_v36  ;;  %2894 = vmatmul.msk.bf16.gmra.mxu2 %vm257_vm4, %v1710_v13  ;;  %v2947_v36 = vld [vmem:[%s3912_s0 + $0x30] sm:$0xff] }
 0x761   :  { %1677 = vst [vmem:[#allocation1 + $0x3] ss:$9 sm:$0xff] %v1540_v34  ;;  %v1870_v34 = vrot.slane %v3581_v43, 2  ;;  %2163 = vmatpush.bf16.msra.mxu0 %v2947_v36 }
 0x762   :  { %1678 = vst [vmem:[#allocation1 + $0x4] ss:$9 sm:$0xff] %v1597_v37  ;;  %v1872_v37 = vrot.slane %v3581_v43, 4 }
 0x763   :  { %1679 = vst [vmem:[#allocation1 + $0x5] ss:$9 sm:$0xff] %v1598_v38  ;;  %v1873_v38 = vrot.slane %v3581_v43, 5 }
 0x764   :  { %1680 = vst [vmem:[#allocation1 + $0x6] ss:$9 sm:$0xff] %v1599_v47  ;;  %v1874_v47 = vrot.slane %v3581_v43, 6 }
 0x765   :  { %1681 = vst [vmem:[#allocation1 + $0x7] ss:$9 sm:$0xff] %v1600_v41  ;;  %v1875_v41 = vrot.slane %v3581_v43, 7 }
 0x76c   :  { %v3642_v53 = vld [vmem:[#allocation1] sm:$0xff] }
 0x76d   :  { %1683 = vst [vmem:[#allocation1] ss:$9 sm:$0xff] %v1601_v49  ;;  %v2139_v49 = vld [vmem:[%s3889_s15] sm:$0xf] }
 0x76e   :  { %1684 = vst [vmem:[#allocation1 + $0x1] ss:$9 sm:$0xff] %v1602_v50  ;;  %2918 = vmatmul.msk.bf16.vlgmr.msra.gmra.mxu0 %vm257_vm4, %v2139_v49 }
 0x76f   :  { %1685 = vst [vmem:[#allocation1 + $0x2] ss:$9 sm:$0xff] %v1603_v54 }
 0x770   :  { %1686 = vst [vmem:[#allocation1 + $0x3] ss:$9 sm:$0xff] %v1541_v62  ;;  %v1876_v62 = vrot.slane %v3569_v8, 1 }
 0x771   :  { %1687 = vst [vmem:[#allocation1 + $0x4] ss:$9 sm:$0xff] %v1604_v55  ;;  %v1879_v55 = vrot.slane %v3610_v6, 2 }
 0x772   :  { %1688 = vst [vmem:[#allocation1 + $0x5] ss:$9 sm:$0xff] %v1605_v56  ;;  %v1880_v56 = vrot.slane %v3610_v6, 3 }
 0x773   :  { %1689 = vst [vmem:[#allocation1 + $0x6] ss:$9 sm:$0xff] %v1606_v45  ;;  %v1881_v45 = vrot.slane %v3610_v6, 4 }
 0x774   :  { %1690 = vst [vmem:[#allocation1 + $0x7] ss:$9 sm:$0xff] %v1607_v57  ;;  %v1883_v57 = vrot.slane %v3610_v6, 6 }
 0x77b   :  { %v1691_v51 = vld [vmem:[#allocation1] sm:$0xff] }
 0x77c   :  { %1692 = vst [vmem:[#allocation1] ss:$9 sm:$0xff] %v1608_v42  ;;  %v1711_v21 = vpack.c.bf16 %v1691_v51, %v3642_v53  ;;  %v1877_v53 = vrot.slane %v3569_v8, 2  ;;  %v1884_v42 = vrot.slane %v3610_v6, 7  ;;  %v1886_v51 = vrot.slane %v3619_v39, 2 }
 0x77d   :  { %1693 = vst [vmem:[#allocation1 + $0x1] ss:$9 sm:$0xff] %v1609_v63  ;;  %v1885_v63 = vrot.slane %v3619_v39, 1 }
 0x77e   :  { %1694 = vst [vmem:[#allocation1 + $0x2] ss:$9 sm:$0xff] %v1610_v10  ;;  %2895 = vmatmul.msk.bf16.gmra.mxu2 %vm257_vm4, %v1711_v21  ;;  %v1887_v10 = vrot.slane %v3619_v39, 3 }
 0x77f   :  { %1695 = vst [vmem:[#allocation1 + $0x3] ss:$9 sm:$0xff] %v1542_v61 }
 0x780   :  { %1696 = vst [vmem:[#allocation1 + $0x4] ss:$9 sm:$0xff] %v1611_v0  ;;  %v1888_v0 = vrot.slane %v3619_v39, 4 }
 0x781   :  { %1697 = vst [vmem:[#allocation1 + $0x5] ss:$9 sm:$0xff] %v1612_v1  ;;  %v1889_v1 = vrot.slane %v3619_v39, 5 }
 0x788   :  { %v1698_v59 = vld [vmem:[#allocation1] sm:$0xff] }
 0x789   :  { %1908 = vst [vmem:[#allocation1] ss:$9 sm:$0xff] %v3525_v58  ;;  %v1858_v58 = vrot.slane %v3545_v15, 4  ;;  %v1712_v30 = vpack.c.bf16 %v1698_v59, %v1698_v59  ;;  %v1891_v59 = vrot.slane %v3619_v39, 7 }
 0x78a   :  { %1910 = vst [vmem:[#allocation1 + $0x1] ss:$9 sm:$0xff] %v1848_v2 }
 0x78b   :  { %1912 = vst [vmem:[#allocation1 + $0x2] ss:$9 sm:$0xff] %v1849_v4 }
 0x78c   :  { %1914 = vst [vmem:[#allocation1 + $0x3] ss:$9 sm:$0xff] %v1850_v52  ;;  %v1892_v52 = vrot.slane %v3627_v40, 1 }
 0x78d   :  { %1916 = vst [vmem:[#allocation1 + $0x4] ss:$9 sm:$0xff] %v1851_v5  ;;  %v1893_v5 = vrot.slane %v3627_v40, 2 }
 0x78e   :  { %1918 = vst [vmem:[#allocation1 + $0x5] ss:$9 sm:$0xff] %v1852_v7  ;;  %2896 = vmatmul.msk.bf16.gmra.mxu2 %vm257_vm4, %v1712_v30  ;;  %v1894_v7 = vrot.slane %v3627_v40, 3 }
 0x78f   :  { %1920 = vst [vmem:[#allocation1 + $0x6] ss:$9 sm:$0xff] %v1853_v9  ;;  %v1895_v9 = vrot.slane %v3627_v40, 4 }
 0x790   :  { %1922 = vst [vmem:[#allocation1 + $0x7] ss:$9 sm:$0xff] %v1854_v12  ;;  %v1897_v12 = vrot.slane %v3627_v40, 6 }
 0x797   :  { %v1923_v14 = vld [vmem:[#allocation1] sm:$0xff] }
 0x798   :  { %1924 = vst [vmem:[#allocation1] ss:$9 sm:$0xff] %v3545_v15  ;;  %v1866_v15 = vrot.slane %v3564_v29, 5 }
 0x799   :  { %1925 = vst [vmem:[#allocation1 + $0x1] ss:$9 sm:$0xff] %v1855_v27  ;;  %v1898_v27 = vrot.slane %v3627_v40, 7 }
 0x79a   :  { %1926 = vst [vmem:[#allocation1 + $0x2] ss:$9 sm:$0xff] %v1856_v16  ;;  %v1900_v16 = vrot.slane %v3638_v20, 2 }
 0x79b   :  { %1927 = vst [vmem:[#allocation1 + $0x3] ss:$9 sm:$0xff] %v1857_v11  ;;  %v1901_v11 = vrot.slane %v3638_v20, 3 }
 0x79c   :  { %1928 = vst [vmem:[#allocation1 + $0x4] ss:$9 sm:$0xff] %v1858_v58  ;;  %v1902_v58 = vrot.slane %v3638_v20, 4 }
 0x79d   :  { %1929 = vst [vmem:[#allocation1 + $0x5] ss:$9 sm:$0xff] %v1859_v24  ;;  %v1903_v24 = vrot.slane %v3638_v20, 5 }
 0x79e   :  { %1930 = vst [vmem:[#allocation1 + $0x6] ss:$9 sm:$0xff] %v1860_v17 }
 0x79f   :  { %1931 = vst [vmem:[#allocation1 + $0x7] ss:$9 sm:$0xff] %v1861_v18  ;;  %v1905_v18 = vrot.slane %v3638_v20, 7 }
 0x7a6   :  { %v1932_v22 = vld [vmem:[#allocation1] sm:$0xff] }
 0x7a7   :  { %1933 = vst [vmem:[#allocation1] ss:$9 sm:$0xff] %v3564_v29  ;;  %v1869_v29 = vrot.slane %v3581_v43, 1  ;;  %v2003_v35 = vpack.c.bf16 %v1932_v22, %v1923_v14  ;;  %v1899_v14 = vrot.slane %v3638_v20, 1  ;;  %v1906_v22 = vrot.slane %v3634_v48, 1 }
 0x7a8   :  { %1934 = vst [vmem:[#allocation1 + $0x1] ss:$9 sm:$0xff] %v1862_v60  ;;  %v3739_v60 = vperm.slane %v3504_v44, 1 }
 0x7a9   :  { %1935 = vst [vmem:[#allocation1 + $0x2] ss:$9 sm:$0xff] %v1863_v23  ;;  %2905 = vmatmul.msk.bf16.vlgmr.msra.gmra.mxu3 %vm257_vm4, %v2003_v35  ;;  %v1907_v23 = vrot.slane %v3634_v48, 2 }
 0x7aa   :  { %1936 = vst [vmem:[#allocation1 + $0x3] ss:$9 sm:$0xff] %v1864_v25  ;;  %v1750_v25 = vpop.f32.mrf.mxu2 }
 0x7ab   :  { %1937 = vst [vmem:[#allocation1 + $0x4] ss:$9 sm:$0xff] %v1865_v46 }
 0x7ac   :  { %1938 = vst [vmem:[#allocation1 + $0x5] ss:$9 sm:$0xff] %v1866_v15 }
 0x7ad   :  { %1939 = vst [vmem:[#allocation1 + $0x6] ss:$9 sm:$0xff] %v1867_v26 }
 0x7ae   :  { %1940 = vst [vmem:[#allocation1 + $0x7] ss:$9 sm:$0xff] %v1868_v28 }
 0x7b5   :  { %v1941_v33 = vld [vmem:[#allocation1] sm:$0xff] }
 0x7b6   :  { %1942 = vst [vmem:[#allocation1] ss:$9 sm:$0xff] %v3581_v43  ;;  %v1878_v43 = vrot.slane %v3610_v6, 1 }
 0x7b7   :  { %1943 = vst [vmem:[#allocation1 + $0x1] ss:$9 sm:$0xff] %v1869_v29 }
 0x7b8   :  { %1944 = vst [vmem:[#allocation1 + $0x2] ss:$9 sm:$0xff] %v1870_v34 }
 0x7b9   :  { %1945 = vst [vmem:[#allocation1 + $0x3] ss:$9 sm:$0xff] %v1871_v3 }
 0x7ba   :  { %1946 = vst [vmem:[#allocation1 + $0x4] ss:$9 sm:$0xff] %v1872_v37 }
 0x7bb   :  { %1947 = vst [vmem:[#allocation1 + $0x5] ss:$9 sm:$0xff] %v1873_v38 }
 0x7bc   :  { %1948 = vst [vmem:[#allocation1 + $0x6] ss:$9 sm:$0xff] %v1874_v47 }
 0x7bd   :  { %1949 = vst [vmem:[#allocation1 + $0x7] ss:$9 sm:$0xff] %v1875_v41 }
 0x7c4   :  { %v1950_v50 = vld [vmem:[#allocation1] sm:$0xff] }
 0x7c5   :  { %1951 = vst [vmem:[#allocation1] ss:$9 sm:$0xff] %v3569_v8  ;;  %v2004_v54 = vpack.c.bf16 %v1950_v50, %v1941_v33  ;;  %v1882_v8 = vrot.slane %v3610_v6, 5 }
 0x7c6   :  { %1952 = vst [vmem:[#allocation1 + $0x1] ss:$9 sm:$0xff] %v1876_v62 }
 0x7c7   :  { %1953 = vst [vmem:[#allocation1 + $0x2] ss:$9 sm:$0xff] %v1877_v53  ;;  %2906 = vmatmul.msk.bf16.gmra.mxu3 %vm257_vm4, %v2004_v54 }
 0x7c8   :  { %1954 = vst [vmem:[#allocation1 + $0x3] ss:$9 sm:$0xff] %v3610_v6  ;;  %v1890_v6 = vrot.slane %v3619_v39, 6 }
 0x7c9   :  { %1955 = vst [vmem:[#allocation1 + $0x4] ss:$9 sm:$0xff] %v1878_v43 }
 0x7ca   :  { %1956 = vst [vmem:[#allocation1 + $0x5] ss:$9 sm:$0xff] %v1879_v55 }
 0x7cb   :  { %1957 = vst [vmem:[#allocation1 + $0x6] ss:$9 sm:$0xff] %v1880_v56 }
 0x7cc   :  { %1958 = vst [vmem:[#allocation1 + $0x7] ss:$9 sm:$0xff] %v1881_v45 }
 0x7d3   :  { %v1959_v61 = vld [vmem:[#allocation1] sm:$0xff] }
 0x7d4   :  { %1960 = vst [vmem:[#allocation1] ss:$9 sm:$0xff] %v1882_v8 }
 0x7d5   :  { %1961 = vst [vmem:[#allocation1 + $0x1] ss:$9 sm:$0xff] %v1883_v57 }
 0x7d6   :  { %1962 = vst [vmem:[#allocation1 + $0x2] ss:$9 sm:$0xff] %v1884_v42 }
 0x7d7   :  { %1963 = vst [vmem:[#allocation1 + $0x3] ss:$9 sm:$0xff] %v3619_v39  ;;  %v1896_v39 = vrot.slane %v3627_v40, 5 }
 0x7d8   :  { %1964 = vst [vmem:[#allocation1 + $0x4] ss:$9 sm:$0xff] %v1885_v63 }
 0x7d9   :  { %1965 = vst [vmem:[#allocation1 + $0x5] ss:$9 sm:$0xff] %v1886_v51 }
 0x7da   :  { %1966 = vst [vmem:[#allocation1 + $0x6] ss:$9 sm:$0xff] %v1887_v10 }
 0x7db   :  { %1967 = vst [vmem:[#allocation1 + $0x7] ss:$9 sm:$0xff] %v1888_v0 }
 0x7e2   :  { %v1968_v2 = vld [vmem:[#allocation1] sm:$0xff] }
 0x7e3   :  { %1969 = vst [vmem:[#allocation1] ss:$9 sm:$0xff] %v1889_v1  ;;  %v2005_v4 = vpack.c.bf16 %v1968_v2, %v1959_v61 }
 0x7e4   :  { %1970 = vst [vmem:[#allocation1 + $0x1] ss:$9 sm:$0xff] %v1890_v6 }
 0x7e5   :  { %1971 = vst [vmem:[#allocation1 + $0x2] ss:$9 sm:$0xff] %v1891_v59  ;;  %2907 = vmatmul.msk.bf16.gmra.mxu3 %vm257_vm4, %v2005_v4 }
 0x7e6   :  { %1972 = vst [vmem:[#allocation1 + $0x3] ss:$9 sm:$0xff] %v3627_v40  ;;  %v1904_v40 = vrot.slane %v3638_v20, 6 }
 0x7e7   :  { %1973 = vst [vmem:[#allocation1 + $0x4] ss:$9 sm:$0xff] %v1892_v52 }
 0x7e8   :  { %1974 = vst [vmem:[#allocation1 + $0x5] ss:$9 sm:$0xff] %v1893_v5 }
 0x7e9   :  { %1975 = vst [vmem:[#allocation1 + $0x6] ss:$9 sm:$0xff] %v1894_v7 }
 0x7ea   :  { %1976 = vst [vmem:[#allocation1 + $0x7] ss:$9 sm:$0xff] %v1895_v9 }
 0x7f1   :  { %v1977_v13 = vld [vmem:[#allocation1] sm:$0xff] }
 0x7f2   :  { %1978 = vst [vmem:[#allocation1] ss:$9 sm:$0xff] %v1896_v39 }
 0x7f3   :  { %1979 = vst [vmem:[#allocation1 + $0x1] ss:$9 sm:$0xff] %v1897_v12 }
 0x7f4   :  { %1980 = vst [vmem:[#allocation1 + $0x2] ss:$9 sm:$0xff] %v1898_v27 }
 0x7f5   :  { %1981 = vst [vmem:[#allocation1 + $0x3] ss:$9 sm:$0xff] %v3638_v20  ;;  %v1751_v20 = vadd.f32 %v1750_v25, %v3739_v60 }
 0x7f6   :  { %1982 = vst [vmem:[#allocation1 + $0x4] ss:$9 sm:$0xff] %v1899_v14 }
 0x7f7   :  { %1983 = vst [vmem:[#allocation1 + $0x5] ss:$9 sm:$0xff] %v1900_v16  ;;  %v1783_v46 = vrot.slane %v1751_v20, 1  ;;  %v1784_v15 = vrot.slane %v1751_v20, 2  ;;  %v1785_v28 = vrot.slane %v1751_v20, 3  ;;  %v1786_v44 = vrot.slane %v1751_v20, 4 }
 0x7f8   :  { %1984 = vst [vmem:[#allocation1 + $0x6] ss:$9 sm:$0xff] %v1901_v11  ;;  %v1787_v30 = vrot.slane %v1751_v20, 5  ;;  %v1788_v31 = vrot.slane %v1751_v20, 6  ;;  %v1789_v19 = vrot.slane %v1751_v20, 7 }
 0x7f9   :  { %1985 = vst [vmem:[#allocation1 + $0x7] ss:$9 sm:$0xff] %v1902_v58 }
 0x800   :  { %v1986_v17 = vld [vmem:[#allocation1] sm:$0xff] }
 0x801   :  { %1987 = vst [vmem:[#allocation1] ss:$9 sm:$0xff] %v1903_v24  ;;  %v2006_v21 = vpack.c.bf16 %v1986_v17, %v1977_v13 }
 0x802   :  { %1988 = vst [vmem:[#allocation1 + $0x1] ss:$9 sm:$0xff] %v1904_v40 }
 0x803   :  { %1989 = vst [vmem:[#allocation1 + $0x2] ss:$9 sm:$0xff] %v1905_v18  ;;  %2908 = vmatmul.msk.bf16.gmra.mxu3 %vm257_vm4, %v2006_v21 }
 0x804   :  { %1990 = vst [vmem:[#allocation1 + $0x3] ss:$9 sm:$0xff] %v3634_v48  ;;  %v1752_v48 = vpop.f32.mrf.mxu2 }
 0x805   :  { %1991 = vst [vmem:[#allocation1 + $0x4] ss:$9 sm:$0xff] %v1906_v22  ;;  %v1753_v29 = vadd.f32 %v1752_v48, %v3739_v60 }
 0x806   :  { %1992 = vst [vmem:[#allocation1 + $0x5] ss:$9 sm:$0xff] %v1907_v23 }
 0x807   :  { %v1790_v33 = vrot.slane %v1753_v29, 1  ;;  %v1791_v34 = vrot.slane %v1753_v29, 2  ;;  %v1792_v3 = vrot.slane %v1753_v29, 3  ;;  %v1793_v36 = vrot.slane %v1753_v29, 4 }
 0x808   :  { %v1794_v37 = vrot.slane %v1753_v29, 5  ;;  %v1795_v38 = vrot.slane %v1753_v29, 6  ;;  %v1796_v47 = vrot.slane %v1753_v29, 7 }
 0x80c   :  { %v1755_v41 = vpop.f32.mrf.mxu2 }
 0x80d   :  { %v1993_v26 = vld [vmem:[#allocation1] sm:$0xff]  ;;  %v1756_v49 = vadd.f32 %v1755_v41, %v3739_v60 }
 0x80e   :  { %2170 = vst [vmem:[#allocation1] ss:$9 sm:$0xff] %v1751_v20  ;;  %v2007_v32 = vpack.c.bf16 %v1993_v26, %v1993_v26 }
 0x80f   :  { %2172 = vst [vmem:[#allocation1 + $0x1] ss:$9 sm:$0xff] %v1783_v46  ;;  %v1797_v62 = vrot.slane %v1756_v49, 1  ;;  %v1798_v50 = vrot.slane %v1756_v49, 2  ;;  %v1799_v54 = vrot.slane %v1756_v49, 3  ;;  %v1800_v43 = vrot.slane %v1756_v49, 4 }
 0x810   :  { %2174 = vst [vmem:[#allocation1 + $0x2] ss:$9 sm:$0xff] %v1784_v15  ;;  %v1801_v55 = vrot.slane %v1756_v49, 5  ;;  %v1802_v56 = vrot.slane %v1756_v49, 6  ;;  %v1803_v8 = vrot.slane %v1756_v49, 7 }
 0x811   :  { %2176 = vst [vmem:[#allocation1 + $0x3] ss:$9 sm:$0xff] %v1785_v28 }
 0x812   :  { %2178 = vst [vmem:[#allocation1 + $0x4] ss:$9 sm:$0xff] %v1786_v44 }
 0x813   :  { %2180 = vst [vmem:[#allocation1 + $0x5] ss:$9 sm:$0xff] %v1787_v30  ;;  %2909 = vmatmul.msk.bf16.gmra.mxu3 %vm257_vm4, %v2007_v32 }
 0x814   :  { %2182 = vst [vmem:[#allocation1 + $0x6] ss:$9 sm:$0xff] %v1788_v31  ;;  %v1757_v45 = vpop.f32.mrf.mxu2 }
 0x815   :  { %2184 = vst [vmem:[#allocation1 + $0x7] ss:$9 sm:$0xff] %v1789_v19  ;;  %v1758_v57 = vadd.f32 %v1757_v45, %v3739_v60 }
 0x817   :  { %v1804_v61 = vrot.slane %v1758_v57, 1  ;;  %v1805_v63 = vrot.slane %v1758_v57, 2  ;;  %v1806_v10 = vrot.slane %v1758_v57, 3  ;;  %v1807_v0 = vrot.slane %v1758_v57, 4 }
 0x818   :  { %v1808_v1 = vrot.slane %v1758_v57, 5  ;;  %v1809_v6 = vrot.slane %v1758_v57, 6  ;;  %v1810_v2 = vrot.slane %v1758_v57, 7 }
 0x81c   :  { %v3748_v35 = vld [vmem:[#allocation1] sm:$0xff]  ;;  %v1760_v42 = vpop.f32.mrf.mxu2 }
 0x81d   :  { %2186 = vst [vmem:[#allocation1] ss:$9 sm:$0xff] %v1753_v29  ;;  %v1761_v4 = vadd.f32 %v1760_v42, %v3739_v60  ;;  %v2267_v44 = vpack.c.bf16 %v3748_v35, %v3748_v35 }
 0x81e   :  { %2187 = vst [vmem:[#allocation1 + $0x1] ss:$9 sm:$0xff] %v1790_v33 }
 0x81f   :  { %2188 = vst [vmem:[#allocation1 + $0x2] ss:$9 sm:$0xff] %v1791_v34  ;;  %v1811_v52 = vrot.slane %v1761_v4, 1  ;;  %v1812_v5 = vrot.slane %v1761_v4, 2  ;;  %v1813_v39 = vrot.slane %v1761_v4, 3  ;;  %v1814_v13 = vrot.slane %v1761_v4, 4 }
 0x820   :  { %2189 = vst [vmem:[#allocation1 + $0x3] ss:$9 sm:$0xff] %v1792_v3  ;;  %v1815_v14 = vrot.slane %v1761_v4, 5  ;;  %v1816_v11 = vrot.slane %v1761_v4, 6  ;;  %v1817_v58 = vrot.slane %v1761_v4, 7  ;;  %v2282_v3 = vunpack.c.l.b16 %v2267_v44 }
 0x821   :  { %2190 = vst [vmem:[#allocation1 + $0x4] ss:$9 sm:$0xff] %v1793_v36 }
 0x822   :  { %2191 = vst [vmem:[#allocation1 + $0x5] ss:$9 sm:$0xff] %v1794_v37 }
 0x823   :  { %2192 = vst [vmem:[#allocation1 + $0x6] ss:$9 sm:$0xff] %v1795_v38 }
 0x824   :  { %2193 = vst [vmem:[#allocation1 + $0x7] ss:$9 sm:$0xff] %v1796_v47  ;;  %v1762_v59 = vpop.f32.mrf.mxu2  ;;  %v3768_v47 = vld [vmem:[%s3909_s30 + $0x8] sm:$0x1f] }
 0x825   :  { %v1763_v12 = vadd.f32 %v1762_v59, %v3739_v60  ;;  %v2140_v41 = vperm.slane %v3768_v47, 0 }
 0x827   :  { %v1818_v24 = vrot.slane %v1763_v12, 1  ;;  %v1819_v21 = vrot.slane %v1763_v12, 2  ;;  %v1820_v30 = vrot.slane %v1763_v12, 3  ;;  %v1821_v19 = vrot.slane %v1763_v12, 4 }
 0x828   :  { %v1822_v33 = vrot.slane %v1763_v12, 5  ;;  %v1823_v34 = vrot.slane %v1763_v12, 6  ;;  %v1824_v36 = vrot.slane %v1763_v12, 7 }
 0x82b   :  { %v3751_v53 = vld [vmem:[#allocation1] sm:$0xff] }
 0x82c   :  { %2195 = vst [vmem:[#allocation1] ss:$9 sm:$0xff] %v1756_v49  ;;  %v1765_v9 = vpop.f32.mrf.mxu2  ;;  %v2268_v26 = vpack.c.bf16 %v3751_v53, %v3751_v53  ;;  %v2165_v49 = vpop.f32.mrf.mxu0 }
 0x82d   :  { %2196 = vst [vmem:[#allocation1 + $0x1] ss:$9 sm:$0xff] %v1797_v62  ;;  %v1766_v31 = vadd.f32 %v1765_v9, %v3739_v60  ;;  %v2166_v53 = vadd.f32 %v2165_v49, %v2140_v41 }
 0x82e   :  { %2197 = vst [vmem:[#allocation1 + $0x2] ss:$9 sm:$0xff] %v1798_v50  ;;  %v2283_v29 = vunpack.c.l.b16 %v2268_v26 }
 0x82f   :  { %2198 = vst [vmem:[#allocation1 + $0x3] ss:$9 sm:$0xff] %v1799_v54  ;;  %v1825_v37 = vrot.slane %v1766_v31, 1  ;;  %v1826_v35 = vrot.slane %v1766_v31, 2  ;;  %v3772_v54 = vpack.c.bf16 %v2166_v53, %v2166_v53  ;;  %v1828_v45 = vrot.slane %v1766_v31, 4 }
 0x830   :  { %2199 = vst [vmem:[#allocation1 + $0x4] ss:$9 sm:$0xff] %v1800_v43  ;;  %v2287_v38 = vpack.c.b16 %v2283_v29, %v2282_v3  ;;  %v1827_v43 = vrot.slane %v1766_v31, 3  ;;  %v1831_v42 = vrot.slane %v1766_v31, 7 }
 0x831   :  { %2200 = vst [vmem:[#allocation1 + $0x5] ss:$9 sm:$0xff] %v1801_v55 }
 0x832   :  { %2201 = vst [vmem:[#allocation1 + $0x6] ss:$9 sm:$0xff] %v1802_v56  ;;  %v2294_v50 = vsel %vm257_vm4, %v2287_v38, 0 }
 0x833   :  { %2202 = vst [vmem:[#allocation1 + $0x7] ss:$9 sm:$0xff] %v1803_v8 }
 0x834   :  { %v1767_v17 = vpop.f32.mrf.mxu2  ;;  %v2167_v56 = vpop.f32.mrf.mxu0 }
 0x835   :  { %v1768_v55 = vadd.f32 %v1767_v17, %v3739_v60 }
 0x837   :  { %v1836_v59 = vrot.slane %v1768_v55, 5 }
 0x83a   :  { %v2203_v51 = vld [vmem:[#allocation1] sm:$0xff] }
 0x83b   :  { %2204 = vst [vmem:[#allocation1] ss:$9 sm:$0xff] %v1758_v57  ;;  %v2269_v23 = vpack.c.bf16 %v2203_v51, %v2203_v51  ;;  %v1829_v57 = vrot.slane %v1766_v31, 5  ;;  %v1833_v51 = vrot.slane %v1768_v55, 2 }
 0x83c   :  { %2205 = vst [vmem:[#allocation1 + $0x1] ss:$9 sm:$0xff] %v1804_v61  ;;  %v1770_v28 = vpop.f32.mrf.mxu2  ;;  %v1830_v61 = vrot.slane %v1766_v31, 6 }
 0x83d   :  { %2206 = vst [vmem:[#allocation1 + $0x2] ss:$9 sm:$0xff] %v1805_v63  ;;  %v2284_v46 = vunpack.c.l.b16 %v2269_v23  ;;  %v1832_v63 = vrot.slane %v1768_v55, 1 }
 0x83e   :  { %2207 = vst [vmem:[#allocation1 + $0x3] ss:$9 sm:$0xff] %v1806_v10  ;;  %v2045_v10 = vpop.f32.mrf.mxu3 }
 0x83f   :  { %2208 = vst [vmem:[#allocation1 + $0x4] ss:$9 sm:$0xff] %v1807_v0  ;;  %v1834_v0 = vrot.slane %v1768_v55, 3 }
 0x840   :  { %2209 = vst [vmem:[#allocation1 + $0x5] ss:$9 sm:$0xff] %v1808_v1  ;;  %v1771_v1 = vadd.f32 %v1770_v28, %v3739_v60 }
 0x841   :  { %2210 = vst [vmem:[#allocation1 + $0x6] ss:$9 sm:$0xff] %v1809_v6  ;;  %v1835_v6 = vrot.slane %v1768_v55, 4 }
 0x842   :  { %2211 = vst [vmem:[#allocation1 + $0x7] ss:$9 sm:$0xff] %v1810_v2  ;;  %v1840_v9 = vrot.slane %v1771_v1, 2  ;;  %v1842_v60 = vrot.slane %v1771_v1, 4 }
 0x844   :  { %v1772_v62 = vpop.f32.mrf.mxu2 }
 0x849   :  { %v2212_v7 = vld [vmem:[#allocation1] sm:$0xff] }
 0x84a   :  { %2213 = vst [vmem:[#allocation1] ss:$9 sm:$0xff] %v1761_v4  ;;  %v2270_v18 = vpack.c.bf16 %v2212_v7, %v2212_v7  ;;  %v1838_v4 = vrot.slane %v1768_v55, 7  ;;  %v1839_v7 = vrot.slane %v1771_v1, 1 }
 0x84b   :  { %2214 = vst [vmem:[#allocation1 + $0x1] ss:$9 sm:$0xff] %v1811_v52  ;;  %v2047_v52 = vpop.f32.mrf.mxu3 }
 0x84c   :  { %2215 = vst [vmem:[#allocation1 + $0x2] ss:$9 sm:$0xff] %v1812_v5  ;;  %v2285_v20 = vunpack.c.l.b16 %v2270_v18  ;;  %v1837_v5 = vrot.slane %v1768_v55, 6 }
 0x84e   :  { %v2288_v15 = vpack.c.b16 %v2285_v20, %v2284_v46 }
 0x850   :  { %v2297_v48 = vsel %vm257_vm4, %v2288_v15, 0 }
 0x853   :  { %v2216_v27 = vld [vmem:[#allocation1] sm:$0xff] }
 0x854   :  { %2217 = vst [vmem:[#allocation1] ss:$9 sm:$0xff] %v1813_v39  ;;  %v2271_v16 = vpack.c.bf16 %v2216_v27, %v2216_v27  ;;  %v3780_v39 = vpop.f32.mrf.mxu3  ;;  %v3783_v27 = vperm.slane %v3768_v47, 2 }
 0x855   :  { %2218 = vst [vmem:[#allocation1 + $0x1] ss:$9 sm:$0xff] %v1814_v13 }
 0x856   :  { %2219 = vst [vmem:[#allocation1 + $0x2] ss:$9 sm:$0xff] %v1815_v14  ;;  %v2286_v40 = vunpack.c.l.b16 %v2271_v16  ;;  %v1843_v14 = vrot.slane %v1771_v1, 5  ;;  %v2046_v16 = vadd.f32 %v2045_v10, %v3783_v27  ;;  %v2051_v56 = vadd.f32 %v3780_v39, %v3783_v27 }
 0x857   :  { %2220 = vst [vmem:[#allocation1 + $0x3] ss:$9 sm:$0xff] %v1816_v11 }
 0x858   :  { %2221 = vst [vmem:[#allocation1 + $0x4] ss:$9 sm:$0xff] %v1817_v58  ;;  %v2289_v22 = vpack.c.b16 %v2286_v40, %v2286_v40  ;;  %v2081_v58 = vrot.slane %v2046_v16, 4  ;;  %v2078_v40 = vrot.slane %v2046_v16, 1  ;;  %v2079_v18 = vrot.slane %v2046_v16, 2 }
 0x859   :  { %2222 = vst [vmem:[#allocation1 + $0x5] ss:$9 sm:$0xff] %v1763_v12  ;;  %v1841_v12 = vrot.slane %v1771_v1, 3  ;;  %v2083_v20 = vrot.slane %v2046_v16, 6  ;;  %v2084_v26 = vrot.slane %v2046_v16, 7  ;;  %v2097_v10 = vrot.slane %v2051_v56, 6 }
 0x85a   :  { %2223 = vst [vmem:[#allocation1 + $0x6] ss:$9 sm:$0xff] %v1818_v24  ;;  %v2300_v25 = vsel %vm257_vm4, %v2289_v22, 0 }
 0x85b   :  { %2224 = vst [vmem:[#allocation1 + $0x7] ss:$9 sm:$0xff] %v1819_v21  ;;  %2307 = vmatpush.bf16.xpose.msrb.mxu1 %v2300_v25  ;;  %v2080_v21 = vrot.slane %v2046_v16, 3  ;;  %v2082_v25 = vrot.slane %v2046_v16, 5 }
 0x85c   :  { %v3786_v11 = vpop.f32.mrf.mxu3 }
 0x862   :  { %v3762_v32 = vld [vmem:[#allocation1] sm:$0xff] }
 0x863   :  { %2226 = vst [vmem:[#allocation1] ss:$9 sm:$0xff] %v1820_v30  ;;  %2308 = vmatpush.bf16.xpose.msrb.mxu1 %v2297_v48 }
 0x864   :  { %2227 = vst [vmem:[#allocation1 + $0x1] ss:$9 sm:$0xff] %v1821_v19  ;;  %v2048_v19 = vadd.f32 %v2047_v52, %v3783_v27 }
 0x865   :  { %2228 = vst [vmem:[#allocation1 + $0x2] ss:$9 sm:$0xff] %v1822_v33  ;;  %v2272_v33 = vpack.c.bf16 %v3762_v32, %v3762_v32 }
 0x866   :  { %2229 = vst [vmem:[#allocation1 + $0x3] ss:$9 sm:$0xff] %v1823_v34  ;;  %v2085_v34 = vrot.slane %v2048_v19, 1  ;;  %v2087_v38 = vrot.slane %v2048_v19, 3  ;;  %v2088_v62 = vrot.slane %v2048_v19, 4  ;;  %v2090_v32 = vrot.slane %v2048_v19, 6 }
 0x867   :  { %2230 = vst [vmem:[#allocation1 + $0x4] ss:$9 sm:$0xff] %v1824_v36  ;;  %v2320_v41 = vunpack.c.l.b16 %v2272_v33 }
 0x868   :  { %2231 = vst [vmem:[#allocation1 + $0x5] ss:$9 sm:$0xff] %v1766_v31  ;;  %v3789_v30 = vpop.f32.mrf.mxu3 }
 0x869   :  { %2232 = vst [vmem:[#allocation1 + $0x6] ss:$9 sm:$0xff] %v1825_v37 }
 0x86a   :  { %2233 = vst [vmem:[#allocation1 + $0x7] ss:$9 sm:$0xff] %v1826_v35  ;;  %v2086_v35 = vrot.slane %v2048_v19, 2 }
 0x86b   :  { %2309 = vmatpush.bf16.xpose.msrb.mxu1 %v2294_v50  ;;  %v2089_v50 = vrot.slane %v2048_v19, 5 }
 0x870   :  { %v3799_v49 = vpop.f32.mrf.mxu3 }
 0x871   :  { %v3775_v8 = vld [vmem:[#allocation1] sm:$0xff] }
 0x872   :  { %2235 = vst [vmem:[#allocation1] ss:$9 sm:$0xff] %v1827_v43  ;;  %2919 = vmatmul.msk.bf16.vlgmr.msrb.gmra.mxu1 %vm257_vm4, %v3772_v54  ;;  %v2273_v29 = vpack.c.bf16 %v3775_v8, %v3775_v8  ;;  %v2091_v43 = vrot.slane %v2048_v19, 7  ;;  %v2092_v8 = vrot.slane %v2051_v56, 1 }
 0x873   :  { %2236 = vst [vmem:[#allocation1 + $0x1] ss:$9 sm:$0xff] %v1828_v45 }
 0x874   :  { %2237 = vst [vmem:[#allocation1 + $0x2] ss:$9 sm:$0xff] %v1829_v57  ;;  %v2321_v36 = vunpack.c.l.b16 %v2273_v29 }
 0x875   :  { %2238 = vst [vmem:[#allocation1 + $0x3] ss:$9 sm:$0xff] %v1830_v61  ;;  %v2093_v61 = vrot.slane %v2051_v56, 2 }
 0x876   :  { %2239 = vst [vmem:[#allocation1 + $0x4] ss:$9 sm:$0xff] %v1831_v42  ;;  %v2325_v53 = vpack.c.b16 %v2321_v36, %v2320_v41  ;;  %v2094_v42 = vrot.slane %v2051_v56, 3 }
 0x877   :  { %2240 = vst [vmem:[#allocation1 + $0x5] ss:$9 sm:$0xff] %v1768_v55 }
 0x878   :  { %2241 = vst [vmem:[#allocation1 + $0x6] ss:$9 sm:$0xff] %v1832_v63  ;;  %v2329_v55 = vsel %vm257_vm4, %v2325_v53, 0  ;;  %v2095_v63 = vrot.slane %v2051_v56, 4 }
 0x879   :  { %2242 = vst [vmem:[#allocation1 + $0x7] ss:$9 sm:$0xff] %v1833_v51  ;;  %v2096_v51 = vrot.slane %v2051_v56, 5 }
 0x880   :  { %v2243_v2 = vld [vmem:[#allocation1] sm:$0xff] }
 0x881   :  { %2244 = vst [vmem:[#allocation1] ss:$9 sm:$0xff] %v1834_v0  ;;  %v2274_v15 = vpack.c.bf16 %v2243_v2, %v2243_v2  ;;  %v2098_v0 = vrot.slane %v2051_v56, 7 }
 0x882   :  { %2245 = vst [vmem:[#allocation1 + $0x1] ss:$9 sm:$0xff] %v1835_v6  ;;  %v2053_v6 = vadd.f32 %v3786_v11, %v3783_v27 }
 0x883   :  { %2246 = vst [vmem:[#allocation1 + $0x2] ss:$9 sm:$0xff] %v1836_v59  ;;  %v2322_v31 = vunpack.c.l.b16 %v2274_v15 }
 0x884   :  { %2248 = vst [vmem:[#allocation1 + $0x4] ss:$9 sm:$0xff] %v1838_v4  ;;  %v2099_v2 = vrot.slane %v2053_v6, 1  ;;  %v2100_v59 = vrot.slane %v2053_v6, 2  ;;  %v2101_v4 = vrot.slane %v2053_v6, 3  ;;  %v2105_v39 = vrot.slane %v2053_v6, 7 }
 0x885   :  { %2247 = vst [vmem:[#allocation1 + $0x3] ss:$9 sm:$0xff] %v1837_v5  ;;  %v2102_v5 = vrot.slane %v2053_v6, 4 }
 0x886   :  { %2249 = vst [vmem:[#allocation1 + $0x5] ss:$9 sm:$0xff] %v1771_v1  ;;  %v3804_v45 = vpop.f32.mrf.mxu3 }
 0x887   :  { %2250 = vst [vmem:[#allocation1 + $0x6] ss:$9 sm:$0xff] %v1839_v7  ;;  %v2103_v7 = vrot.slane %v2053_v6, 5 }
 0x888   :  { %2251 = vst [vmem:[#allocation1 + $0x7] ss:$9 sm:$0xff] %v1840_v9  ;;  %v2104_v9 = vrot.slane %v2053_v6, 6 }
 0x88e   :  { %v3810_v1 = vpop.f32.mrf.mxu3 }
 0x88f   :  { %v2252_v13 = vld [vmem:[#allocation1] sm:$0xff] }
 0x890   :  { %2253 = vst [vmem:[#allocation1] ss:$9 sm:$0xff] %v1841_v12  ;;  %v2275_v23 = vpack.c.bf16 %v2252_v13, %v2252_v13 }
 0x891   :  { %2254 = vst [vmem:[#allocation1 + $0x1] ss:$9 sm:$0xff] %v1842_v60  ;;  %v2056_v60 = vadd.f32 %v3789_v30, %v3783_v27 }
 0x892   :  { %2255 = vst [vmem:[#allocation1 + $0x2] ss:$9 sm:$0xff] %v1843_v14  ;;  %v2323_v44 = vunpack.c.l.b16 %v2275_v23 }
 0x893   :  { %v2106_v13 = vrot.slane %v2056_v60, 1  ;;  %v2108_v11 = vrot.slane %v2056_v60, 3  ;;  %v2111_v23 = vrot.slane %v2056_v60, 6 }
 0x894   :  { %v2326_v48 = vpack.c.b16 %v2323_v44, %v2322_v31 }
 0x896   :  { %v2332_v3 = vsel %vm257_vm4, %v2326_v48, 0  ;;  %v3814_v52 = vpop.f32.mrf.mxu3 }
 0x899   :  { %v2256_v24 = vld [vmem:[#allocation1] sm:$0xff] }
 0x89a   :  { %2381 = vst [vmem:[#allocation1 + $0x4] ss:$9 sm:$0xff] %v2081_v58  ;;  %v2276_v17 = vpack.c.bf16 %v2256_v24, %v2256_v24  ;;  %v2109_v58 = vrot.slane %v2056_v60, 4 }
 0x89b   :  { %2373 = vst [vmem:[#allocation1] ss:$9 sm:$0xff] %v2046_v16  ;;  %v2107_v16 = vrot.slane %v2056_v60, 2 }
 0x89c   :  { %2375 = vst [vmem:[#allocation1 + $0x1] ss:$9 sm:$0xff] %v2078_v40  ;;  %v2324_v22 = vunpack.c.l.b16 %v2276_v17  ;;  %v2110_v40 = vrot.slane %v2056_v60, 5  ;;  %v2058_v17 = vadd.f32 %v3799_v49, %v3783_v27 }
 0x89d   :  { %2377 = vst [vmem:[#allocation1 + $0x2] ss:$9 sm:$0xff] %v2079_v18 }
 0x89e   :  { %2379 = vst [vmem:[#allocation1 + $0x3] ss:$9 sm:$0xff] %v2080_v21  ;;  %v2327_v46 = vpack.c.b16 %v2324_v22, %v2324_v22  ;;  %v2067_v12 = vpop.f32.mrf.mxu3  ;;  %v3044_v21 = vmov 65535   ;;  %v2114_v30 = vrot.slane %v2058_v17, 2  ;;  %v2118_v53 = vrot.slane %v2058_v17, 6 }
 0x89f   :  { %2383 = vst [vmem:[#allocation1 + $0x5] ss:$9 sm:$0xff] %v2082_v25  ;;  %v2498_v22 = vsel %vm199_vm2, 4294967295, %v3044_v21  ;;  %v2112_v25 = vrot.slane %v2056_v60, 7 }
 0x8a0   :  { %2385 = vst [vmem:[#allocation1 + $0x6] ss:$9 sm:$0xff] %v2083_v20  ;;  %v2335_v28 = vsel %vm257_vm4, %v2327_v46, 0  ;;  %v3822_v15 = vsel %vm202_vm3, %v2498_v22, 0 }
 0x8a1   :  { %2387 = vst [vmem:[#allocation1 + $0x7] ss:$9 sm:$0xff] %v2084_v26  ;;  %2342 = vmatpush.bf16.xpose.msrb.mxu0 %v2335_v28  ;;  %v2113_v26 = vrot.slane %v2058_v17, 1 }
 0x8a8   :  { %v3797_v37 = vld [vmem:[#allocation1] sm:$0xff] }
 0x8a9   :  { %2343 = vmatpush.bf16.xpose.msrb.mxu0 %v2332_v3  ;;  %2389 = vst [vmem:[#allocation1] ss:$9 sm:$0xff] %v2048_v19  ;;  %v2470_v33 = vpack.c.bf16 %v3797_v37, %v3797_v37 }
 0x8aa   :  { %2390 = vst [vmem:[#allocation1 + $0x1] ss:$9 sm:$0xff] %v2085_v34 }
 0x8ab   :  { %2391 = vst [vmem:[#allocation1 + $0x2] ss:$9 sm:$0xff] %v2086_v35  ;;  %v2485_v36 = vunpack.c.l.b16 %v2470_v33  ;;  %v2115_v35 = vrot.slane %v2058_v17, 3 }
 0x8ac   :  { %2392 = vst [vmem:[#allocation1 + $0x3] ss:$9 sm:$0xff] %v2087_v38  ;;  %v2116_v38 = vrot.slane %v2058_v17, 4 }
 0x8ad   :  { %2393 = vst [vmem:[#allocation1 + $0x4] ss:$9 sm:$0xff] %v2088_v62  ;;  %v2117_v62 = vrot.slane %v2058_v17, 5 }
 0x8ae   :  { %2394 = vst [vmem:[#allocation1 + $0x5] ss:$9 sm:$0xff] %v2089_v50  ;;  %v2061_v50 = vadd.f32 %v3804_v45, %v3783_v27  ;;  %v2063_v45 = vadd.f32 %v3810_v1, %v3783_v27 }
 0x8af   :  { %2395 = vst [vmem:[#allocation1 + $0x6] ss:$9 sm:$0xff] %v2090_v32  ;;  %v2119_v32 = vrot.slane %v2058_v17, 7 }
 0x8b0   :  { %2396 = vst [vmem:[#allocation1 + $0x7] ss:$9 sm:$0xff] %v2091_v43  ;;  %v2120_v37 = vrot.slane %v2061_v50, 1  ;;  %v2121_v43 = vrot.slane %v2061_v50, 2  ;;  %v2132_v1 = vrot.slane %v2063_v45, 6 }
 0x8b1   :  { %2344 = vmatpush.bf16.xpose.msrb.mxu0 %v2329_v55  ;;  %v2122_v55 = vrot.slane %v2061_v50, 3 }
 0x8b7   :  { %v3806_v57 = vld [vmem:[#allocation1] sm:$0xff] }
 0x8b8   :  { %2920 = vmatmul.msk.bf16.vlgmr.msrb.gmra.mxu0 %vm257_vm4, %v3772_v54  ;;  %2398 = vst [vmem:[#allocation1] ss:$9 sm:$0xff] %v2051_v56  ;;  %v2471_v48 = vpack.c.bf16 %v3806_v57, %v3806_v57  ;;  %v2123_v56 = vrot.slane %v2061_v50, 4  ;;  %v2124_v57 = vrot.slane %v2061_v50, 5 }
 0x8b9   :  { %2399 = vst [vmem:[#allocation1 + $0x1] ss:$9 sm:$0xff] %v2092_v8 }
 0x8ba   :  { %2400 = vst [vmem:[#allocation1 + $0x2] ss:$9 sm:$0xff] %v2093_v61  ;;  %v2486_v3 = vunpack.c.l.b16 %v2471_v48  ;;  %v2125_v61 = vrot.slane %v2061_v50, 6 }
 0x8bb   :  { %2401 = vst [vmem:[#allocation1 + $0x3] ss:$9 sm:$0xff] %v2094_v42  ;;  %v2126_v42 = vrot.slane %v2061_v50, 7 }
 0x8bc   :  { %2402 = vst [vmem:[#allocation1 + $0x4] ss:$9 sm:$0xff] %v2095_v63  ;;  %v2490_v41 = vpack.c.b16 %v2486_v3, %v2485_v36  ;;  %v2127_v63 = vrot.slane %v2063_v45, 1 }
 0x8bd   :  { %2403 = vst [vmem:[#allocation1 + $0x5] ss:$9 sm:$0xff] %v2096_v51  ;;  %v2128_v51 = vrot.slane %v2063_v45, 2 }
 0x8be   :  { %2404 = vst [vmem:[#allocation1 + $0x6] ss:$9 sm:$0xff] %v2097_v10  ;;  %v2129_v10 = vrot.slane %v2063_v45, 3 }
 0x8bf   :  { %2405 = vst [vmem:[#allocation1 + $0x7] ss:$9 sm:$0xff] %v2098_v0  ;;  %v2130_v0 = vrot.slane %v2063_v45, 4 }
 0x8c6   :  { %v2406_v54 = vld [vmem:[#allocation1] sm:$0xff] }
 0x8c7   :  { %2407 = vst [vmem:[#allocation1] ss:$9 sm:$0xff] %v2053_v6  ;;  %v2472_v44 = vpack.c.bf16 %v2406_v54, %v2406_v54  ;;  %v2066_v54 = vadd.f32 %v3814_v52, %v3783_v27 }
 0x8c8   :  { %2408 = vst [vmem:[#allocation1 + $0x1] ss:$9 sm:$0xff] %v2099_v2  ;;  %v2131_v2 = vrot.slane %v2063_v45, 5 }
 0x8c9   :  { %2409 = vst [vmem:[#allocation1 + $0x2] ss:$9 sm:$0xff] %v2100_v59  ;;  %v2487_v29 = vunpack.c.l.b16 %v2472_v44  ;;  %v2133_v59 = vrot.slane %v2063_v45, 7  ;;  %v2136_v12 = vrot.slane %v2066_v54, 3  ;;  %v2137_v27 = vrot.slane %v2066_v54, 4 }
 0x8ca   :  { %2410 = vst [vmem:[#allocation1 + $0x3] ss:$9 sm:$0xff] %v2101_v4  ;;  %v2134_v4 = vrot.slane %v2066_v54, 1 }
 0x8cb   :  { %2411 = vst [vmem:[#allocation1 + $0x4] ss:$9 sm:$0xff] %v2102_v5  ;;  %v2135_v5 = vrot.slane %v2066_v54, 2 }
 0x8cc   :  { %2412 = vst [vmem:[#allocation1 + $0x5] ss:$9 sm:$0xff] %v2103_v7 }
 0x8cd   :  { %2413 = vst [vmem:[#allocation1 + $0x6] ss:$9 sm:$0xff] %v2104_v9 }
 0x8ce   :  { %2414 = vst [vmem:[#allocation1 + $0x7] ss:$9 sm:$0xff] %v2105_v39 }
 0x8d5   :  { %v2415_v14 = vld [vmem:[#allocation1] sm:$0xff] }
 0x8d6   :  { %2416 = vst [vmem:[#allocation1] ss:$9 sm:$0xff] %v2056_v60  ;;  %v2473_v46 = vpack.c.bf16 %v2415_v14, %v2415_v14  ;;  %v2138_v60 = vrot.slane %v2066_v54, 5 }
 0x8d7   :  { %2417 = vst [vmem:[#allocation1 + $0x1] ss:$9 sm:$0xff] %v2106_v13 }
 0x8d8   :  { %2418 = vst [vmem:[#allocation1 + $0x2] ss:$9 sm:$0xff] %v2107_v16  ;;  %v2488_v19 = vunpack.c.l.b16 %v2473_v46 }
 0x8da   :  { %v2491_v34 = vpack.c.b16 %v2488_v19, %v2487_v29 }
 0x8df   :  { %v2419_v24 = vld [vmem:[#allocation1] sm:$0xff] }
 0x8e0   :  { %v2474_v18 = vpack.c.bf16 %v2419_v24, %v2419_v24  ;;  %2420 = vst [vmem:[#allocation1] ss:$9 sm:$0xff] %v2108_v11 }
 0x8e1   :  { %2421 = vst [vmem:[#allocation1 + $0x1] ss:$9 sm:$0xff] %v2109_v58 }
 0x8e2   :  { %v2489_v20 = vunpack.c.l.b16 %v2474_v18  ;;  %2422 = vst [vmem:[#allocation1 + $0x2] ss:$9 sm:$0xff] %v2110_v40 }
 0x8e3   :  { %2423 = vst [vmem:[#allocation1 + $0x3] ss:$9 sm:$0xff] %v2111_v23 }
 0x8e4   :  { %v2492_v28 = vpack.c.b16 %v2489_v20, %v2489_v20  ;;  %2424 = vst [vmem:[#allocation1 + $0x4] ss:$9 sm:$0xff] %v2112_v25 }
 0x8e5   :  { %2425 = vst [vmem:[#allocation1 + $0x5] ss:$9 sm:$0xff] %v2058_v17 }
 0x8e6   :  { %v2501_v31 = vand.u32 %v3822_v15, %v2492_v28  ;;  %2426 = vst [vmem:[#allocation1 + $0x6] ss:$9 sm:$0xff] %v2113_v26 }
 0x8e7   :  { %2427 = vst [vmem:[#allocation1 + $0x7] ss:$9 sm:$0xff] %v2114_v30 }
 0x8e8   :  { %2508 = vmatpush.bf16.msra.mxu1 %v2501_v31 }
 0x8ec   :  { %2509 = vmatpush.bf16.msra.mxu1 %v2491_v34 }
 0x8ee   :  { %v3829_v49 = vld [vmem:[#allocation1] sm:$0xff] }
 0x8ef   :  { %2429 = vst [vmem:[#allocation1] ss:$9 sm:$0xff] %v2115_v35  ;;  %v2311_v7 = vpop.f32.mrf.mxu1  ;;  %v2475_v23 = vpack.c.bf16 %v3829_v49, %v3829_v49 }
 0x8f0   :  { %2510 = vmatpush.bf16.msra.mxu1 %v2490_v41  ;;  %2430 = vst [vmem:[#allocation1 + $0x1] ss:$9 sm:$0xff] %v2116_v38  ;;  %v2350_v9 = vmul.f32 0.17677669, %v2311_v7 }
 0x8f1   :  { %2431 = vst [vmem:[#allocation1 + $0x2] ss:$9 sm:$0xff] %v2117_v62  ;;  %v2521_v46 = vunpack.c.l.b16 %v2475_v23  ;;  %v2954_v62 = vld [vmem:[%s3912_s0 + $0x68] sm:$0xff] }
 0x8f2   :  { %2432 = vst [vmem:[#allocation1 + $0x3] ss:$9 sm:$0xff] %v2118_v53  ;;  %v2353_v39 = vsel %vm2352_vm15, %v2350_v9, -inf  ;;  %2577 = vmatpush.bf16.msra.mxu0 %v2954_v62  ;;  %v2953_v53 = vld [vmem:[%s3912_s0 + $0x60] sm:$0xff] }
 0x8f3   :  { %2433 = vst [vmem:[#allocation1 + $0x4] ss:$9 sm:$0xff] %v2119_v32  ;;  %2354 = vmax.xlane.f32.xlu0 %v2353_v39 }
 0x8f4   :  { %2434 = vst [vmem:[#allocation1 + $0x5] ss:$9 sm:$0xff] %v2061_v50 }
 0x8f5   :  { %2435 = vst [vmem:[#allocation1 + $0x6] ss:$9 sm:$0xff] %v2120_v37 }
 0x8f6   :  { %2436 = vst [vmem:[#allocation1 + $0x7] ss:$9 sm:$0xff] %v2121_v43  ;;  %2578 = vmatpush.bf16.msra.mxu0 %v2953_v53 }
 0x8f7   :  { %v2313_v13 = vpop.f32.mrf.mxu1 }
 0x8fd   :  { %v2437_v8 = vld [vmem:[#allocation1] sm:$0xff] }
 0x8fe   :  { %2438 = vst [vmem:[#allocation1] ss:$9 sm:$0xff] %v2122_v55  ;;  %v2476_v21 = vpack.c.bf16 %v2437_v8, %v2437_v8 }
 0x8ff   :  { %2439 = vst [vmem:[#allocation1 + $0x1] ss:$9 sm:$0xff] %v2123_v56 }
 0x900   :  { %2440 = vst [vmem:[#allocation1 + $0x2] ss:$9 sm:$0xff] %v2124_v57  ;;  %v2522_v20 = vunpack.c.l.b16 %v2476_v21 }
 0x901   :  { %2441 = vst [vmem:[#allocation1 + $0x3] ss:$9 sm:$0xff] %v2125_v61 }
 0x902   :  { %2442 = vst [vmem:[#allocation1 + $0x4] ss:$9 sm:$0xff] %v2126_v42  ;;  %v2526_v26 = vpack.c.b16 %v2522_v20, %v2521_v46 }
 0x903   :  { %2443 = vst [vmem:[#allocation1 + $0x5] ss:$9 sm:$0xff] %v2063_v45 }
 0x904   :  { %2444 = vst [vmem:[#allocation1 + $0x6] ss:$9 sm:$0xff] %v2127_v63  ;;  %v3004_v63 = vld [vmem:[%s3891_s14 + $0x8] sm:$0xff] }
 0x905   :  { %2445 = vst [vmem:[#allocation1 + $0x7] ss:$9 sm:$0xff] %v2128_v51  ;;  %v3003_v51 = vld [vmem:[%s3891_s14] sm:$0xff] }
 0x90c   :  { %v2446_v6 = vld [vmem:[#allocation1] sm:$0xff] }
 0x90d   :  { %2447 = vst [vmem:[#allocation1] ss:$9 sm:$0xff] %v2129_v10  ;;  %v2477_v40 = vpack.c.bf16 %v2446_v6, %v2446_v6 }
 0x90e   :  { %2448 = vst [vmem:[#allocation1 + $0x1] ss:$9 sm:$0xff] %v2130_v0  ;;  %v2555_v0 = vperm.slane %v3768_v47, 3 }
 0x90f   :  { %2449 = vst [vmem:[#allocation1 + $0x2] ss:$9 sm:$0xff] %v2131_v2  ;;  %v2523_v22 = vunpack.c.l.b16 %v2477_v40 }
 0x910   :  { %2450 = vst [vmem:[#allocation1 + $0x3] ss:$9 sm:$0xff] %v2132_v1 }
 0x911   :  { %2451 = vst [vmem:[#allocation1 + $0x4] ss:$9 sm:$0xff] %v2133_v59  ;;  %v3011_v59 = vld [vmem:[%s3890_s18] ss:$0 sm:$0xff] }
 0x912   :  { %2452 = vst [vmem:[#allocation1 + $0x5] ss:$9 sm:$0xff] %v2066_v54 }
 0x913   :  { %2453 = vst [vmem:[#allocation1 + $0x6] ss:$9 sm:$0xff] %v2134_v4 }
 0x914   :  { %2454 = vst [vmem:[#allocation1 + $0x7] ss:$9 sm:$0xff] %v2135_v5 }
 0x91b   :  { %v2455_v52 = vld [vmem:[#allocation1] sm:$0xff] }
 0x91c   :  { %2456 = vst [vmem:[#allocation1] ss:$9 sm:$0xff] %v2136_v12  ;;  %v2478_v58 = vpack.c.bf16 %v2455_v52, %v2455_v52 }
 0x91d   :  { %2457 = vst [vmem:[#allocation1 + $0x1] ss:$9 sm:$0xff] %v2137_v27 }
 0x91e   :  { %2458 = vst [vmem:[#allocation1 + $0x2] ss:$9 sm:$0xff] %v2138_v60  ;;  %v2524_v18 = vunpack.c.l.b16 %v2478_v58 }
 0x920   :  { %v2527_v25 = vpack.c.b16 %v2524_v18, %v2523_v22 }
 0x925   :  { %v2459_v14 = vld [vmem:[#allocation1] sm:$0xff] }
 0x926   :  { %v2479_v16 = vpack.c.bf16 %v2459_v14, %v2459_v14 }
 0x928   :  { %v2525_v11 = vunpack.c.l.b16 %v2479_v16 }
 0x92a   :  { %v2528_v24 = vpack.c.b16 %v2525_v11, %v2525_v11 }
 0x92c   :  { %v2535_v17 = vand.u32 %v2528_v24, %v3822_v15 }
 0x92e   :  { %2542 = vmatpush.bf16.msrb.mxu1 %v2535_v17 }
 0x932   :  { %2543 = vmatpush.bf16.msrb.mxu1 %v2527_v25 }
 0x935   :  { %v2346_v28 = vpop.f32.mrf.mxu0 }
 0x936   :  { %2544 = vmatpush.bf16.msrb.mxu1 %v2526_v26  ;;  %v2351_v44 = vmul.f32 0.17677669, %v2346_v28 }
 0x938   :  { %v2356_v30 = vsel %vm2352_vm15, %v2351_v44, -inf }
 0x939   :  { %2357 = vmax.xlane.f32.xlu0 %v2356_v30 }
 0x93d   :  { %v2348_v31 = vpop.f32.mrf.mxu0 }
 0x966   :  { %v2355_v15 = vpop.xlane.xlu0 %2354 }
 0x967   :  { %v2359_v19 = vsub.f32 %v2350_v9, %v2355_v15 }
 0x969   :  { %v2361_v48 = vmul.f32 1.442695, %v2359_v19 }
 0x96b   :  { %3030 = vpow2.f32 %v2361_v48 }
 0x971   :  { %v3031_v29 = vpop.eup %3030 }
 0x972   :  { %v2371_v33 = vpack.c.bf16 %v3031_v29, %v3031_v29  ;;  %v2365_v34 = vsel %vm2352_vm15, %v3031_v29, 0.0 }
 0x973   :  { %2366 = vadd.xlane.f32.xlu2 %v2365_v34 }
 0x974   :  { %2921 = vmatmul.msk.bf16.vlgmr.msra.gmra.mxu1 %vm2352_vm15, %v2371_v33 }
 0x975   :  { %2615 = vmatpush.bf16.msra.mxu1 %v3004_v63 }
 0x979   :  { %2616 = vmatpush.bf16.msra.mxu1 %v3003_v51 }
 0x9ac   :  { %v2358_v3 = vpop.xlane.xlu0 %2357 }
 0x9ad   :  { %v2360_v36 = vsub.f32 %v2351_v44, %v2358_v3 }
 0x9af   :  { %v2363_v35 = vmul.f32 1.442695, %v2360_v36 }
 0x9b1   :  { %3032 = vpow2.f32 %v2363_v35 }
 0x9b7   :  { %v3033_v38 = vpop.eup %3032 }
 0x9b8   :  { %v2372_v41 = vpack.c.bf16 %v3033_v38, %v3033_v38  ;;  %v2368_v49 = vsel %vm2352_vm15, %v3033_v38, 0.0 }
 0x9b9   :  { %2369 = vadd.xlane.f32.xlu0 %v2368_v49 }
 0x9ba   :  { %2922 = vmatmul.msk.bf16.vlgmr.msrb.gmra.mxu1 %vm2352_vm15, %v2372_v41 }
 0x9e6   :  { %v2367_v37 = vpop.xlane.xlu2 %2366 }
 0x9e7   :  { %3034 = vrcp.f32 %v2367_v37 }
 0x9ed   :  { %v3035_v55 = vpop.eup %3034 }
 0x9f1   :  { %v2512_v50 = vpop.f32.mrf.mxu1 }
 0x9f2   :  { %v2552_v57 = vmul.f32 %v3035_v55, %v2512_v50 }
 0x9f9   :  { %v2514_v32 = vpop.f32.mrf.mxu1 }
 0xa2c   :  { %v2370_v43 = vpop.xlane.xlu0 %2369 }
 0xa2d   :  { %3036 = vrcp.f32 %v2370_v43 }
 0xa33   :  { %v3037_v56 = vpop.eup %3036 }
 0xa37   :  { %v2546_v8 = vpop.f32.mrf.mxu1 }
 0xa38   :  { %v2553_v45 = vmul.f32 %v3037_v56, %v2546_v8 }
 0xa3a   :  { %v2554_v61 = vpack.c.bf16 %v2553_v45, %v2552_v57 }
 0xa3c   :  { %2931 = vmatmul.msk.bf16.vlgmr.msra.gmra.mxu0 %vm257_vm4, %v2554_v61 }
 0xa3f   :  { %v2548_v42 = vpop.f32.mrf.mxu1 }
 0xab9   :  { %v2580_v10 = vpop.f32.mrf.mxu0 }
 0xaba   :  { %v2581_v2 = vadd.f32 %v2580_v10, %v2555_v0 }
 0xac1   :  { %v2582_v6 = vpop.f32.mrf.mxu0 }
 0xac2   :  { %v2583_v54 = vadd.f32 %v2582_v6, %v2555_v0 }
 0xac4   :  { %v2590_v1 = vpack.c.bf16 %v2583_v54, %v2581_v2 }
 0xac6   :  { %2940 = vmatmul.msk.bf16.vlgmr.msra.gmra.mxu1 %vm257_vm4, %v2590_v1 }
 0xb43   :  { %v2618_v4 = vpop.f32.mrf.mxu1 }
 0xb44   :  { %v2619_v5 = vadd.f32 %v3011_v59, %v2618_v4 }
 0xb46   :  { %2623 = vst [vmem:[%s3892_s21] sm:$0xff] %v2619_v5 }
 0xb4b   :  { %v2620_v7 = vpop.f32.mrf.mxu1 }
 0xb4c   :  { %v2621_v9 = vadd.f32 %v3011_v59, %v2620_v7 }
 0xb4e   :  { %2624 = vst [vmem:[%s3892_s21 + $0x8] sm:$0xff] %v2621_v9 }

</bundles_post_ra>
